<compile_context>
chip_gen: v7x
topology: tpu7x:2x2x1
jax: 0.10.0
libtpu: 0.0.40
codegen_flags: <defaults>
</compile_context>

<pallas_src>
import jax
import jax.numpy as jnp
from jax import lax
from jax.experimental import pallas as pl
from jax.experimental.pallas import tpu as pltpu


# ----------------------------------------------------------------------------
# Exact (erf-based) GELU, matching torch.nn.functional.gelu's default.
# erf via Abramowitz & Stegun 7.1.26 (|err| < 1.5e-7) -- only +,*,/,exp,where,
# all of which lower cleanly in Mosaic (exp goes to the EUP slot).
# ----------------------------------------------------------------------------
_SQRT_HALF = 0.7071067811865476


def _erf(x):
    a1, a2, a3, a4, a5 = 0.254829592, -0.284496736, 1.421413741, -1.453152027, 1.061405429
    p = 0.3275911
    ax = jnp.abs(x)
    t = 1.0 / (1.0 + p * ax)
    poly = ((((a5 * t + a4) * t + a3) * t + a2) * t + a1) * t
    y = 1.0 - poly * jnp.exp(-ax * ax)
    return jnp.where(x < 0.0, -y, y)


def _gelu(x):
    return 0.5 * x * (1.0 + _erf(x * _SQRT_HALF))


# ----------------------------------------------------------------------------
# Fused FFN kernel: one batch element per grid step.
#   x_ref : (1, Hp, Wp, C)   bf16, zero halo (top/left 1 px, right pad to %8)
#   w1_ref: (C, Cm)          bf16   (1x1 expand)
#   wd_ref: (9, Cm)          f32    (3x3 depthwise, row = 3*di + dj)
#   w2_ref: (Cm, C)          bf16   (1x1 project)
#   o_ref : (1, H, W, C)     f32
# ----------------------------------------------------------------------------
def _ffn_fused_kernel(x_ref, w1_ref, wd_ref, w2_ref, o_ref):
    _, Hp, Wp, C = x_ref.shape
    Cm = w1_ref.shape[1]
    H, W = o_ref.shape[1], o_ref.shape[2]

    # --- 1x1 expand conv (MXU, bf16 in / f32 acc) + exact GELU (EUP) --------
    x = x_ref[0].reshape(Hp * Wp, C)          # layout-trivial: Wp % 8 == 0
    h1 = jnp.dot(x, w1_ref[...], preferred_element_type=jnp.float32)
    h1 = _gelu(h1).reshape(Hp, Wp, Cm)        # zero halo stays zero: gelu(0)=0

    # --- 3x3 depthwise conv (VPU, f32): 9 shifted taps of the halo'd hidden -
    wd = wd_ref[...]                          # (9, Cm)
    acc = jnp.zeros((H, W, Cm), jnp.float32)
    for di in range(3):
        for dj in range(3):
            tap = h1[di:di + H, dj:dj + W, :]
            acc = acc + tap * wd[3 * di + dj][None, None, :]
    acc = _gelu(acc)

    # --- 1x1 project conv (MXU, bf16 in / f32 acc) ---------------------------
    out = jnp.dot(acc.reshape(H * W, Cm).astype(jnp.bfloat16), w2_ref[...],
                  preferred_element_type=jnp.float32)
    o_ref[0] = out.reshape(H, W, C).astype(o_ref.dtype)


def feed_forward(x, w1_oihw, wd_oihw, w2_oihw):
    """x: [B,H,W,C] f32; weights in PyTorch Conv2d (OIHW) layout. -> [B,H,W,C] f32."""
    B, H, W, C = x.shape
    Cm = w1_oihw.shape[0]
    assert w1_oihw.shape == (Cm, C, 1, 1)
    assert wd_oihw.shape == (Cm, 1, 3, 3)
    assert w2_oihw.shape == (C, Cm, 1, 1)

    # One-time weight reformatting (matmul-ready; bf16 for the MXU operands).
    w1 = jnp.asarray(w1_oihw)[:, :, 0, 0].T.astype(jnp.bfloat16)              # (C, Cm)
    w2 = jnp.asarray(w2_oihw)[:, :, 0, 0].T.astype(jnp.bfloat16)              # (Cm, C)
    wd = jnp.asarray(wd_oihw)[:, 0].transpose(1, 2, 0).reshape(9, Cm)
    wd = wd.astype(jnp.float32)                                               # (9, Cm)

    # Zero halo: 1 px top/bottom/left (3x3 conv, pad=1); right-pad so that the
    # padded width is a multiple of 8 (keeps in-kernel reshapes layout-trivial).
    Hp = H + 2
    Wp = ((W + 2 + 7) // 8) * 8
    xp = jnp.pad(x, ((0, 0), (1, 1), (1, Wp - W - 1), (0, 0))).astype(jnp.bfloat16)

    return pl.pallas_call(
        _ffn_fused_kernel,
        out_shape=jax.ShapeDtypeStruct((B, H, W, C), jnp.float32),
        grid=(B,),
        in_specs=[
            pl.BlockSpec((1, Hp, Wp, C), lambda b: (b, 0, 0, 0)),
            pl.BlockSpec((C, Cm), lambda b: (0, 0)),
            pl.BlockSpec((9, Cm), lambda b: (0, 0)),
            pl.BlockSpec((Cm, C), lambda b: (0, 0)),
        ],
        out_specs=pl.BlockSpec((1, H, W, C), lambda b: (b, 0, 0, 0)),
        compiler_params=pltpu.CompilerParams(dimension_semantics=("parallel",)),
    )(xp, w1, wd, w2)


# ----------------------------------------------------------------------------
# Pure-JAX f32 reference (mirrors the PyTorch module exactly).
# ----------------------------------------------------------------------------
def _feed_forward_reference(x, w1, wd, w2):
    Cm = wd.shape[0]
    t = x.transpose(0, 3, 1, 2)
    t = lax.conv_general_dilated(t, w1, (1, 1), 'VALID',
                                 dimension_numbers=('NCHW', 'OIHW', 'NCHW'))
    t = jax.nn.gelu(t, approximate=False)
    t = lax.conv_general_dilated(t, wd, (1, 1), ((1, 1), (1, 1)),
                                 dimension_numbers=('NCHW', 'OIHW', 'NCHW'),
                                 feature_group_count=Cm)
    t = jax.nn.gelu(t, approximate=False)
    t = lax.conv_general_dilated(t, w2, (1, 1), 'VALID',
                                 dimension_numbers=('NCHW', 'OIHW', 'NCHW'))
    return t.transpose(0, 2, 3, 1)


# ----------------------------------------------------------------------------
# Main
# ----------------------------------------------------------------------------
if __name__ == "__main__":
    key = jax.random.PRNGKey(0)
    B, H, W, dim, mult = 4, 16, 16, 32, 4
    Cm = dim * mult

    k0, k1, k2, k3 = jax.random.split(key, 4)
    x = jax.random.normal(k0, (B, H, W, dim), jnp.float32)
    w1 = jax.random.normal(k1, (Cm, dim, 1, 1), jnp.float32) * (dim ** -0.5)
    wd = jax.random.normal(k2, (Cm, 1, 3, 3), jnp.float32) * (1.0 / 3.0)
    w2 = jax.random.normal(k3, (dim, Cm, 1, 1), jnp.float32) * (Cm ** -0.5)

    ff = jax.jit(feed_forward)
    out = jax.block_until_ready(ff(x, w1, wd, w2))

    assert out.shape == (B, H, W, dim), out.shape
    assert bool(jnp.all(jnp.isfinite(out)))

    ref = jax.block_until_ready(_feed_forward_reference(x, w1, wd, w2))
    err = float(jnp.max(jnp.abs(out - ref)))
    assert err < 5e-2, f"max abs error too large: {err}"

    print("KERNEL_OK")
</pallas_src>

<mosaic_0001>
module attributes {stable_mosaic.version = 11 : i64} {
  func.func @_ffn_fused_kernel(%arg0: i32, %arg1: memref<1x18x24x32xbf16, #tpu.memory_space<vmem>>, %arg2: memref<32x128xbf16, #tpu.memory_space<vmem>>, %arg3: memref<9x128xf32, #tpu.memory_space<vmem>>, %arg4: memref<128x32xbf16, #tpu.memory_space<vmem>>, %arg5: memref<1x16x16x32xf32, #tpu.memory_space<vmem>>) attributes {dimension_semantics = [#tpu.dimension_semantics<parallel>], iteration_bounds = array<i64: 4>, scalar_prefetch = 0 : i64, scratch_operands = 0 : i64, tpu.core_type = #tpu.core_type<tc>, window_params = [{transform_indices = @transform_0, window_bounds = array<i64: 1, 18, 24, 32>}, {pipeline_mode = #tpu.pipeline_mode<synchronous>, transform_indices = @transform_1, window_bounds = array<i64: 32, 128>}, {pipeline_mode = #tpu.pipeline_mode<synchronous>, transform_indices = @transform_2, window_bounds = array<i64: 9, 128>}, {pipeline_mode = #tpu.pipeline_mode<synchronous>, transform_indices = @transform_3, window_bounds = array<i64: 128, 32>}, {transform_indices = @transform_4, window_bounds = array<i64: 1, 16, 16, 32>}]} {
    %c0 = arith.constant 0 : index
    %c0_0 = arith.constant 0 : index
    %c0_1 = arith.constant 0 : index
    %c0_2 = arith.constant 0 : index
    %0 = vector.load %arg1[%c0, %c0_0, %c0_1, %c0_2] : memref<1x18x24x32xbf16, #tpu.memory_space<vmem>>, vector<1x18x24x32xbf16>
    %1 = vector.shape_cast %0 : vector<1x18x24x32xbf16> to vector<18x24x32xbf16>
    %2 = vector.shape_cast %1 : vector<18x24x32xbf16> to vector<432x32xbf16>
    %c0_3 = arith.constant 0 : index
    %c0_4 = arith.constant 0 : index
    %3 = vector.load %arg2[%c0_3, %c0_4] : memref<32x128xbf16, #tpu.memory_space<vmem>>, vector<32x128xbf16>
    %cst = arith.constant dense<0.000000e+00> : vector<432x128xf32>
    %4 = tpu.matmul %2, %3, %cst {dimension_numbers = #tpu.dot_dimension_numbers<[1], [0], [0], [1], [0, 0, 1, 1], [], []>} : vector<432x32xbf16>, vector<32x128xbf16>, vector<432x128xf32> -> vector<432x128xf32>
    %cst_5 = arith.constant 5.000000e-01 : f32
    %5 = vector.broadcast %cst_5 : f32 to vector<432x128xf32>
    %6 = arith.mulf %5, %4 : vector<432x128xf32>
    %cst_6 = arith.constant 0.707106769 : f32
    %7 = vector.broadcast %cst_6 : f32 to vector<432x128xf32>
    %8 = arith.mulf %4, %7 : vector<432x128xf32>
    %9 = math.absf %8 : vector<432x128xf32>
    %cst_7 = arith.constant 0.327591091 : f32
    %10 = vector.broadcast %cst_7 : f32 to vector<432x128xf32>
    %11 = arith.mulf %10, %9 : vector<432x128xf32>
    %cst_8 = arith.constant 1.000000e+00 : f32
    %12 = vector.broadcast %cst_8 : f32 to vector<432x128xf32>
    %13 = arith.addf %12, %11 : vector<432x128xf32>
    %cst_9 = arith.constant 1.000000e+00 : f32
    %14 = vector.broadcast %cst_9 : f32 to vector<432x128xf32>
    %15 = arith.divf %14, %13 : vector<432x128xf32>
    %cst_10 = arith.constant 1.06140542 : f32
    %16 = vector.broadcast %cst_10 : f32 to vector<432x128xf32>
    %17 = arith.mulf %16, %15 : vector<432x128xf32>
    %cst_11 = arith.constant -1.45315206 : f32
    %18 = vector.broadcast %cst_11 : f32 to vector<432x128xf32>
    %19 = arith.addf %17, %18 : vector<432x128xf32>
    %20 = arith.mulf %19, %15 : vector<432x128xf32>
    %cst_12 = arith.constant 1.42141378 : f32
    %21 = vector.broadcast %cst_12 : f32 to vector<432x128xf32>
    %22 = arith.addf %20, %21 : vector<432x128xf32>
    %23 = arith.mulf %22, %15 : vector<432x128xf32>
    %cst_13 = arith.constant -0.284496725 : f32
    %24 = vector.broadcast %cst_13 : f32 to vector<432x128xf32>
    %25 = arith.addf %23, %24 : vector<432x128xf32>
    %26 = arith.mulf %25, %15 : vector<432x128xf32>
    %cst_14 = arith.constant 0.254829586 : f32
    %27 = vector.broadcast %cst_14 : f32 to vector<432x128xf32>
    %28 = arith.addf %26, %27 : vector<432x128xf32>
    %29 = arith.mulf %28, %15 : vector<432x128xf32>
    %cst_15 = arith.constant 0.000000e+00 : f32
    %30 = vector.broadcast %cst_15 : f32 to vector<432x128xf32>
    %31 = arith.subf %30, %9 : vector<432x128xf32>
    %32 = arith.mulf %31, %9 : vector<432x128xf32>
    %33 = math.exp %32 : vector<432x128xf32>
    %34 = arith.mulf %29, %33 : vector<432x128xf32>
    %cst_16 = arith.constant 1.000000e+00 : f32
    %35 = vector.broadcast %cst_16 : f32 to vector<432x128xf32>
    %36 = arith.subf %35, %34 : vector<432x128xf32>
    %cst_17 = arith.constant 0.000000e+00 : f32
    %37 = vector.broadcast %cst_17 : f32 to vector<432x128xf32>
    %38 = arith.cmpf olt, %8, %37 : vector<432x128xf32>
    %cst_18 = arith.constant 0.000000e+00 : f32
    %39 = vector.broadcast %cst_18 : f32 to vector<432x128xf32>
    %40 = arith.subf %39, %36 : vector<432x128xf32>
    %41 = arith.select %38, %40, %36 : vector<432x128xi1>, vector<432x128xf32>
    %cst_19 = arith.constant 1.000000e+00 : f32
    %42 = vector.broadcast %cst_19 : f32 to vector<432x128xf32>
    %43 = arith.addf %42, %41 : vector<432x128xf32>
    %44 = arith.mulf %6, %43 : vector<432x128xf32>
    %45 = vector.shape_cast %44 : vector<432x128xf32> to vector<18x24x128xf32>
    %c0_20 = arith.constant 0 : index
    %c0_21 = arith.constant 0 : index
    %46 = vector.load %arg3[%c0_20, %c0_21] : memref<9x128xf32, #tpu.memory_space<vmem>>, vector<9x128xf32>
    %cst_22 = arith.constant 0.000000e+00 : f32
    %47 = vector.broadcast %cst_22 : f32 to vector<16x16x128xf32>
    %48 = vector.extract_strided_slice %45 {offsets = [0, 0, 0], sizes = [16, 16, 128], strides = [1, 1, 1]} : vector<18x24x128xf32> to vector<16x16x128xf32>
    %49 = vector.extract_strided_slice %46 {offsets = [0, 0], sizes = [1, 128], strides = [1, 1]} : vector<9x128xf32> to vector<1x128xf32>
    %50 = vector.shape_cast %49 : vector<1x128xf32> to vector<128xf32>
    %51 = vector.shape_cast %50 : vector<128xf32> to vector<1x1x128xf32>
    %52 = vector.broadcast %51 : vector<1x1x128xf32> to vector<16x16x128xf32>
    %53 = arith.mulf %48, %52 : vector<16x16x128xf32>
    %54 = arith.addf %47, %53 : vector<16x16x128xf32>
    %55 = vector.extract_strided_slice %45 {offsets = [0, 1, 0], sizes = [16, 16, 128], strides = [1, 1, 1]} : vector<18x24x128xf32> to vector<16x16x128xf32>
    %56 = vector.extract_strided_slice %46 {offsets = [1, 0], sizes = [1, 128], strides = [1, 1]} : vector<9x128xf32> to vector<1x128xf32>
    %57 = vector.shape_cast %56 : vector<1x128xf32> to vector<128xf32>
    %58 = vector.shape_cast %57 : vector<128xf32> to vector<1x1x128xf32>
    %59 = vector.broadcast %58 : vector<1x1x128xf32> to vector<16x16x128xf32>
    %60 = arith.mulf %55, %59 : vector<16x16x128xf32>
    %61 = arith.addf %54, %60 : vector<16x16x128xf32>
    %62 = vector.extract_strided_slice %45 {offsets = [0, 2, 0], sizes = [16, 16, 128], strides = [1, 1, 1]} : vector<18x24x128xf32> to vector<16x16x128xf32>
    %63 = vector.extract_strided_slice %46 {offsets = [2, 0], sizes = [1, 128], strides = [1, 1]} : vector<9x128xf32> to vector<1x128xf32>
    %64 = vector.shape_cast %63 : vector<1x128xf32> to vector<128xf32>
    %65 = vector.shape_cast %64 : vector<128xf32> to vector<1x1x128xf32>
    %66 = vector.broadcast %65 : vector<1x1x128xf32> to vector<16x16x128xf32>
    %67 = arith.mulf %62, %66 : vector<16x16x128xf32>
    %68 = arith.addf %61, %67 : vector<16x16x128xf32>
    %69 = vector.extract_strided_slice %45 {offsets = [1, 0, 0], sizes = [16, 16, 128], strides = [1, 1, 1]} : vector<18x24x128xf32> to vector<16x16x128xf32>
    %70 = vector.extract_strided_slice %46 {offsets = [3, 0], sizes = [1, 128], strides = [1, 1]} : vector<9x128xf32> to vector<1x128xf32>
    %71 = vector.shape_cast %70 : vector<1x128xf32> to vector<128xf32>
    %72 = vector.shape_cast %71 : vector<128xf32> to vector<1x1x128xf32>
    %73 = vector.broadcast %72 : vector<1x1x128xf32> to vector<16x16x128xf32>
    %74 = arith.mulf %69, %73 : vector<16x16x128xf32>
    %75 = arith.addf %68, %74 : vector<16x16x128xf32>
    %76 = vector.extract_strided_slice %45 {offsets = [1, 1, 0], sizes = [16, 16, 128], strides = [1, 1, 1]} : vector<18x24x128xf32> to vector<16x16x128xf32>
    %77 = vector.extract_strided_slice %46 {offsets = [4, 0], sizes = [1, 128], strides = [1, 1]} : vector<9x128xf32> to vector<1x128xf32>
    %78 = vector.shape_cast %77 : vector<1x128xf32> to vector<128xf32>
    %79 = vector.shape_cast %78 : vector<128xf32> to vector<1x1x128xf32>
    %80 = vector.broadcast %79 : vector<1x1x128xf32> to vector<16x16x128xf32>
    %81 = arith.mulf %76, %80 : vector<16x16x128xf32>
    %82 = arith.addf %75, %81 : vector<16x16x128xf32>
    %83 = vector.extract_strided_slice %45 {offsets = [1, 2, 0], sizes = [16, 16, 128], strides = [1, 1, 1]} : vector<18x24x128xf32> to vector<16x16x128xf32>
    %84 = vector.extract_strided_slice %46 {offsets = [5, 0], sizes = [1, 128], strides = [1, 1]} : vector<9x128xf32> to vector<1x128xf32>
    %85 = vector.shape_cast %84 : vector<1x128xf32> to vector<128xf32>
    %86 = vector.shape_cast %85 : vector<128xf32> to vector<1x1x128xf32>
    %87 = vector.broadcast %86 : vector<1x1x128xf32> to vector<16x16x128xf32>
    %88 = arith.mulf %83, %87 : vector<16x16x128xf32>
    %89 = arith.addf %82, %88 : vector<16x16x128xf32>
    %90 = vector.extract_strided_slice %45 {offsets = [2, 0, 0], sizes = [16, 16, 128], strides = [1, 1, 1]} : vector<18x24x128xf32> to vector<16x16x128xf32>
    %91 = vector.extract_strided_slice %46 {offsets = [6, 0], sizes = [1, 128], strides = [1, 1]} : vector<9x128xf32> to vector<1x128xf32>
    %92 = vector.shape_cast %91 : vector<1x128xf32> to vector<128xf32>
    %93 = vector.shape_cast %92 : vector<128xf32> to vector<1x1x128xf32>
    %94 = vector.broadcast %93 : vector<1x1x128xf32> to vector<16x16x128xf32>
    %95 = arith.mulf %90, %94 : vector<16x16x128xf32>
    %96 = arith.addf %89, %95 : vector<16x16x128xf32>
    %97 = vector.extract_strided_slice %45 {offsets = [2, 1, 0], sizes = [16, 16, 128], strides = [1, 1, 1]} : vector<18x24x128xf32> to vector<16x16x128xf32>
    %98 = vector.extract_strided_slice %46 {offsets = [7, 0], sizes = [1, 128], strides = [1, 1]} : vector<9x128xf32> to vector<1x128xf32>
    %99 = vector.shape_cast %98 : vector<1x128xf32> to vector<128xf32>
    %100 = vector.shape_cast %99 : vector<128xf32> to vector<1x1x128xf32>
    %101 = vector.broadcast %100 : vector<1x1x128xf32> to vector<16x16x128xf32>
    %102 = arith.mulf %97, %101 : vector<16x16x128xf32>
    %103 = arith.addf %96, %102 : vector<16x16x128xf32>
    %104 = vector.extract_strided_slice %45 {offsets = [2, 2, 0], sizes = [16, 16, 128], strides = [1, 1, 1]} : vector<18x24x128xf32> to vector<16x16x128xf32>
    %105 = vector.extract_strided_slice %46 {offsets = [8, 0], sizes = [1, 128], strides = [1, 1]} : vector<9x128xf32> to vector<1x128xf32>
    %106 = vector.shape_cast %105 : vector<1x128xf32> to vector<128xf32>
    %107 = vector.shape_cast %106 : vector<128xf32> to vector<1x1x128xf32>
    %108 = vector.broadcast %107 : vector<1x1x128xf32> to vector<16x16x128xf32>
    %109 = arith.mulf %104, %108 : vector<16x16x128xf32>
    %110 = arith.addf %103, %109 : vector<16x16x128xf32>
    %cst_23 = arith.constant 5.000000e-01 : f32
    %111 = vector.broadcast %cst_23 : f32 to vector<16x16x128xf32>
    %112 = arith.mulf %111, %110 : vector<16x16x128xf32>
    %cst_24 = arith.constant 0.707106769 : f32
    %113 = vector.broadcast %cst_24 : f32 to vector<16x16x128xf32>
    %114 = arith.mulf %110, %113 : vector<16x16x128xf32>
    %115 = math.absf %114 : vector<16x16x128xf32>
    %cst_25 = arith.constant 0.327591091 : f32
    %116 = vector.broadcast %cst_25 : f32 to vector<16x16x128xf32>
    %117 = arith.mulf %116, %115 : vector<16x16x128xf32>
    %cst_26 = arith.constant 1.000000e+00 : f32
    %118 = vector.broadcast %cst_26 : f32 to vector<16x16x128xf32>
    %119 = arith.addf %118, %117 : vector<16x16x128xf32>
    %cst_27 = arith.constant 1.000000e+00 : f32
    %120 = vector.broadcast %cst_27 : f32 to vector<16x16x128xf32>
    %121 = arith.divf %120, %119 : vector<16x16x128xf32>
    %cst_28 = arith.constant 1.06140542 : f32
    %122 = vector.broadcast %cst_28 : f32 to vector<16x16x128xf32>
    %123 = arith.mulf %122, %121 : vector<16x16x128xf32>
    %cst_29 = arith.constant -1.45315206 : f32
    %124 = vector.broadcast %cst_29 : f32 to vector<16x16x128xf32>
    %125 = arith.addf %123, %124 : vector<16x16x128xf32>
    %126 = arith.mulf %125, %121 : vector<16x16x128xf32>
    %cst_30 = arith.constant 1.42141378 : f32
    %127 = vector.broadcast %cst_30 : f32 to vector<16x16x128xf32>
    %128 = arith.addf %126, %127 : vector<16x16x128xf32>
    %129 = arith.mulf %128, %121 : vector<16x16x128xf32>
    %cst_31 = arith.constant -0.284496725 : f32
    %130 = vector.broadcast %cst_31 : f32 to vector<16x16x128xf32>
    %131 = arith.addf %129, %130 : vector<16x16x128xf32>
    %132 = arith.mulf %131, %121 : vector<16x16x128xf32>
    %cst_32 = arith.constant 0.254829586 : f32
    %133 = vector.broadcast %cst_32 : f32 to vector<16x16x128xf32>
    %134 = arith.addf %132, %133 : vector<16x16x128xf32>
    %135 = arith.mulf %134, %121 : vector<16x16x128xf32>
    %cst_33 = arith.constant 0.000000e+00 : f32
    %136 = vector.broadcast %cst_33 : f32 to vector<16x16x128xf32>
    %137 = arith.subf %136, %115 : vector<16x16x128xf32>
    %138 = arith.mulf %137, %115 : vector<16x16x128xf32>
    %139 = math.exp %138 : vector<16x16x128xf32>
    %140 = arith.mulf %135, %139 : vector<16x16x128xf32>
    %cst_34 = arith.constant 1.000000e+00 : f32
    %141 = vector.broadcast %cst_34 : f32 to vector<16x16x128xf32>
    %142 = arith.subf %141, %140 : vector<16x16x128xf32>
    %cst_35 = arith.constant 0.000000e+00 : f32
    %143 = vector.broadcast %cst_35 : f32 to vector<16x16x128xf32>
    %144 = arith.cmpf olt, %114, %143 : vector<16x16x128xf32>
    %cst_36 = arith.constant 0.000000e+00 : f32
    %145 = vector.broadcast %cst_36 : f32 to vector<16x16x128xf32>
    %146 = arith.subf %145, %142 : vector<16x16x128xf32>
    %147 = arith.select %144, %146, %142 : vector<16x16x128xi1>, vector<16x16x128xf32>
    %cst_37 = arith.constant 1.000000e+00 : f32
    %148 = vector.broadcast %cst_37 : f32 to vector<16x16x128xf32>
    %149 = arith.addf %148, %147 : vector<16x16x128xf32>
    %150 = arith.mulf %112, %149 : vector<16x16x128xf32>
    %151 = vector.shape_cast %150 : vector<16x16x128xf32> to vector<256x128xf32>
    %152 = arith.truncf %151 : vector<256x128xf32> to vector<256x128xbf16>
    %c0_38 = arith.constant 0 : index
    %c0_39 = arith.constant 0 : index
    %153 = vector.load %arg4[%c0_38, %c0_39] : memref<128x32xbf16, #tpu.memory_space<vmem>>, vector<128x32xbf16>
    %cst_40 = arith.constant dense<0.000000e+00> : vector<256x32xf32>
    %154 = tpu.matmul %152, %153, %cst_40 {dimension_numbers = #tpu.dot_dimension_numbers<[1], [0], [0], [1], [0, 0, 1, 1], [], []>} : vector<256x128xbf16>, vector<128x32xbf16>, vector<256x32xf32> -> vector<256x32xf32>
    %155 = vector.shape_cast %154 : vector<256x32xf32> to vector<16x16x32xf32>
    %c0_41 = arith.constant 0 : index
    %c0_42 = arith.constant 0 : index
    %c0_43 = arith.constant 0 : index
    %c0_44 = arith.constant 0 : index
    %156 = vector.load %arg5[%c0_41, %c0_42, %c0_43, %c0_44] : memref<1x16x16x32xf32, #tpu.memory_space<vmem>>, vector<1x16x16x32xf32>
    %157 = vector.shape_cast %156 : vector<1x16x16x32xf32> to vector<16x16x32xf32>
    %158 = vector.shape_cast %155 : vector<16x16x32xf32> to vector<1x16x16x32xf32>
    tpu.vector_store %arg5[%c0_41, %c0_42, %c0_43, %c0_44], %158 {strides = array<i32>} : memref<1x16x16x32xf32, #tpu.memory_space<vmem>>, vector<1x16x16x32xf32>,
    return
  }
  func.func @transform_0(%arg0: i32) -> (i32, i32, i32, i32) {
    %c0_i32 = arith.constant 0 : i32
    %c0_i32_0 = arith.constant 0 : i32
    %c0_i32_1 = arith.constant 0 : i32
    %c0_i32_2 = arith.constant 0 : i32
    return %arg0, %c0_i32, %c0_i32_0, %c0_i32_1 : i32, i32, i32, i32
  }
  func.func @transform_1(%arg0: i32) -> (i32, i32) {
    %c0_i32 = arith.constant 0 : i32
    %c0_i32_0 = arith.constant 0 : i32
    %c0_i32_1 = arith.constant 0 : i32
    return %c0_i32, %c0_i32_0 : i32, i32
  }
  func.func @transform_2(%arg0: i32) -> (i32, i32) {
    %c0_i32 = arith.constant 0 : i32
    %c0_i32_0 = arith.constant 0 : i32
    %c0_i32_1 = arith.constant 0 : i32
    return %c0_i32, %c0_i32_0 : i32, i32
  }
  func.func @transform_3(%arg0: i32) -> (i32, i32) {
    %c0_i32 = arith.constant 0 : i32
    %c0_i32_0 = arith.constant 0 : i32
    %c0_i32_1 = arith.constant 0 : i32
    return %c0_i32, %c0_i32_0 : i32, i32
  }
  func.func @transform_4(%arg0: i32) -> (i32, i32, i32, i32) {
    %c0_i32 = arith.constant 0 : i32
    %c0_i32_0 = arith.constant 0 : i32
    %c0_i32_1 = arith.constant 0 : i32
    %c0_i32_2 = arith.constant 0 : i32
    return %arg0, %c0_i32, %c0_i32_0, %c0_i32_1 : i32, i32, i32, i32
  }
}

</mosaic_0001>

<bundles_post_ra>
// kernel: feed_forward.1
= control target key start
LH: loop header
LB: loop body
LE: loop exit
PB: predicated region body
PF: predicated region fallthrough
CT: control target
= control target key end

     0   :  { %9 = vsyncpa [#allocation3], 0  ;;  %s9629_s0 = inlined_call_operand.vmem [shape: bf16[4,18,24,32], index: 0, kind: input, shape index: {}]   ;;  %s9630_s1 = inlined_call_operand.vmem [shape: bf16[32,128], index: 1, kind: input, shape index: {}]   ;;  %s9631_s2 = inlined_call_operand.vmem [shape: f32[9,128], index: 2, kind: input, shape index: {}]   ;;  %s9632_s3 = inlined_call_operand.vmem [shape: bf16[128,32], index: 3, kind: input, shape index: {}]   ;;  %s9633_s4 = inlined_call_operand.hbm [shape: f32[4,16,16,32], index: 4, kind: output, shape index: {}]  }
   0x1   :  { %11 = vsyncpa [#allocation3 + $0x1], 0  ;;  %s5894_s15 = smov 0   ;;  %s5896_s16 = smov 0  }
   0x2   :  { %s5898_s17 = smov 0   ;;  %s5900_s18 = smov 0  }
   0x3 LB: > { %s5915_s19 = sadd.s32 4294967295, %s5862_s18   ;;  %s5076_s20 = sadd.s32 4294967294, %s5862_s18   ;;  %s5862_s18 = sphi %s5900_s18, %s10132_s18   ;;  %s5858_s17 = sphi %s5898_s17, %s10131_s17   ;;  %s5854_s16 = sphi %s5896_s16, %s10130_s16   ;;  %s5850_s15 = sphi %s5894_s15, %s10129_s15  }
   0x4   : > { %s5919_s21 = sadd.s32 1, %s5862_s18   ;;  %s113_s22 = sadd.s32 1, %s5858_s17 }
   0x5   : > { %s110_s23 = ssub.s32 %s5862_s18, %s5919_s21  ;;  %p123_p0 = scmp.ne.s32.totalorder %s5858_s17, %s5854_s16 }
   0x6   : > { %p111_p1 = scmp.eq.s32.totalorder %s110_s23, 0  ;;  %p124_p2 = scmp.eq.s32.totalorder %s5915_s19, 3 }
   0x7   : > { %p129_p3 = scmp.ne.s32.totalorder %s5854_s16, %s5850_s15  ;;  %p130_p4 = scmp.eq.s32.totalorder %s5076_s20, 3 }
   0x8   : > { %s5930_s24 = scalar_select %p111_p1, %s5858_s17, %s113_s22  }
   0x9   : > { %p5932_p5 = por %p124_p2, %p123_p0  ;;  %p5936_p6 = por %p130_p4, %p129_p3 }
   0xa   : > { %p5079_p7 = scmp.ge.s32.totalorder %s5862_s18, 1  ;;  %p165_p8 = scmp.lt.s32.totalorder %s5862_s18, 5 }
   0xc   : > { %p166_p9 = pnand %p5079_p7, %p165_p8 }
   0xe   : > { %169 = sbr.rel (%p166_p9) target bundleno = 1354 (0x54a), region = 36 }
  0x15   : > { %v5414_v0 = vld [vmem:[%s9630_s1] sm:$0xff]   ;;  %v5864_v1 = vmov 0.0   ;;  %v5415_v2 = vld [vmem:[%s9630_s1 + $0x8] sm:$0xff]   ;;  %p191_p10 = scmp.lt.s32.totalorder %s5915_s19, 3  ;;  %vm5865_vm0 = vmmov 0   ;;  %vm402_vm1 = vcmask 261120  }
  0x16   : > { %5206 = vmatprep.subr.bf16.mxu0 %v5864_v1  ;;  %5366 = vmatprep.subr.bf16.mxu1 %v5864_v1  ;;  %vm2361_vm4 = vcmask 1046528   ;;  %vm2606_vm5 = vcmask 1045504   ;;  %s188_s30 = sand.u32 1, %s5854_s16   ;;  %s5866_s20 = smov [#allocation2]  }
  0x17   : > { %5207 = vmatpush3.bf16.msra.mxu0 %v5414_v0  ;;  %5368 = vmatpush3.bf16.msra.mxu1 %v5414_v0  ;;  %s192_s5 = scalar_select %p191_p10, %s5915_s19, 3 }
  0x18   : > { %5208 = vmatprep.subr.bf16.mxu0 %v5864_v1  ;;  %5367 = vmatprep.subr.bf16.mxu1 %v5864_v1  ;;  %s5804_s22 = sshll.u32 %s5866_s20, 4  ;;  %s5805_s22 = int_to_ptr.vmem [resolvable:$false] %s5804_s22 }
  0x19   : > { %5210 = vmatprep.mubr.msk.bf16.mxu0 %vm5865_vm0, %v5864_v1  ;;  %5282 = vmatprep.mubr.msk.bf16.mxu1 %vm5865_vm0, %v5864_v1  ;;  %s5370_s6 = smul.u32 216, %s192_s5  ;;  %s5080_s5 = sshll.u32 %s188_s30, 8 }
  0x1a   : > { %s5806_s23 = scalar_lea.vmem %s5805_s22, 8192 }
  0x1b   : > { %5209 = vmatpush3.bf16.msra.mxu0 %v5415_v2  ;;  %5369 = vmatpush3.bf16.msra.mxu1 %v5415_v2  ;;  %s5961_s9 = scalar_lea.vmem %s9629_s0, %s5370_s6  ;;  %v2193_v2 = vlaneseq  ;;  %s9221_s6 = scalar_lea.vmem [#allocation2], %s5080_s5 }
  0x1c   : > { %v5416_v3 = vld [vmem:[%s5961_s9] sm:$0xff]   ;;  %v5417_v4 = vld [vmem:[%s5961_s9 + $0x90] sm:$0xff]   ;;  %v5418_v5 = vld [vmem:[%s5961_s9 + $0x8] sm:$0xff]   ;;  %s5014_s10 = sshll.u32 %s9221_s6, 4  ;;  %s9578_s10 = int_to_ptr.vmem [resolvable:$true] %s5014_s10 }
  0x1d   : > { %v5419_v6 = vld [vmem:[%s5961_s9 + $0x98] sm:$0xff]   ;;  %v5420_v7 = vld [vmem:[%s5961_s9 + $0x10] sm:$0xff]   ;;  %v5421_v8 = vld [vmem:[%s5961_s9 + $0xa0] sm:$0xff]   ;;  %s5800_s14 = scalar_lea.vmem %s9578_s10, 4096  ;;  %p5807_p0 = scmp.lt.s32.totalorder %s9578_s10, %s5805_s22 }
  0x1e   : > { %5211 = vmatmul.mubr.msk.bf16.vlgmr.msra.gmra.mrb[0].mxu0 %vm402_vm1, %v5416_v3  ;;  %5283 = vmatmul.mubr.msk.bf16.vlgmr.msra.gmra.mrb[0].mxu1 %vm402_vm1, %v5417_v4  ;;  %v5422_v9 = vld [vmem:[%s5961_s9 + $0x18] sm:$0xff]   ;;  %v5423_v10 = vld [vmem:[%s5961_s9 + $0xa8] sm:$0xff]   ;;  %v5424_v11 = vld [vmem:[%s5961_s9 + $0x20] sm:$0xff]   ;;  %p5801_p11 = scmp.ne.s32.totalorder %s9578_s10, %s5800_s14  ;;  %p5808_p1 = scmp.lt.s32.totalorder %s5806_s23, %s5800_s14 }
  0x1f   : > { %5214 = vmatprep.mubr.msk.bf16.mxu0 %vm5865_vm0, %v5864_v1  ;;  %5286 = vmatprep.mubr.msk.bf16.mxu1 %vm5865_vm0, %v5864_v1  ;;  %v5425_v12 = vld [vmem:[%s5961_s9 + $0xb0] sm:$0xff]   ;;  %v5426_v13 = vld [vmem:[%s5961_s9 + $0x28] sm:$0xff]   ;;  %v5427_v14 = vld [vmem:[%s5961_s9 + $0xb8] sm:$0xff]  }
  0x20   : > { %v5428_v15 = vld [vmem:[%s5961_s9 + $0x30] sm:$0xff]   ;;  %v5429_v16 = vld [vmem:[%s5961_s9 + $0xc0] sm:$0xff]   ;;  %v5430_v17 = vld [vmem:[%s5961_s9 + $0x38] sm:$0xff]   ;;  %p5802_p12 = pnand %p5801_p11, %p5932_p5  ;;  %p5809_p2 = por %p5808_p1, %p5807_p0 }
  0x21   : > { %v5431_v18 = vld [vmem:[%s5961_s9 + $0xc8] sm:$0xff]   ;;  %v5432_v19 = vld [vmem:[%s5961_s9 + $0x40] sm:$0xff]   ;;  %v5433_v20 = vld [vmem:[%s5961_s9 + $0xd0] sm:$0xff]  }
  0x22   : > { %v5434_v21 = vld [vmem:[%s5961_s9 + $0x48] sm:$0xff]   ;;  %v5435_v22 = vld [vmem:[%s5961_s9 + $0x50] sm:$0xff]   ;;  %v5436_v23 = vld [vmem:[%s5961_s9 + $0x58] sm:$0xff]   ;;  %p5803_p13 = pneg %p5802_p12 }
  0x23   : > { %v5437_v24 = vld [vmem:[%s5961_s9 + $0x60] sm:$0xff]   ;;  %v5438_v25 = vld [vmem:[%s5961_s9 + $0x68] sm:$0xff]   ;;  %v5439_v26 = vld [vmem:[%s5961_s9 + $0x70] sm:$0xff]  }
  0x24   : > { %v5440_v27 = vld [vmem:[%s5961_s9 + $0x78] sm:$0xff]   ;;  %v5441_v28 = vld [vmem:[%s5961_s9 + $0x80] sm:$0xff]   ;;  %v5442_v29 = vld [vmem:[%s5961_s9 + $0x88] sm:$0xff]   ;;  %s5152_s9 = sshll.u32 %s5915_s19, 12  ;;  %s9588_s19 = scalar_lea.sflag [#allocation3], %s188_s30 }
  0x25   : > { %s9576_s13 = scalar_lea.hbm %s9633_s4, %s5152_s9  ;;  %p5810_p3 = pnand %p5809_p2, %p5803_p13 }
  0x26   : > { %5215 = vmatmul.mubr.msk.bf16.gmra.mrb[4].mxu0 %vm402_vm1, %v5418_v5  ;;  %5287 = vmatmul.mubr.msk.bf16.gmra.mrb[4].mxu1 %vm402_vm1, %v5419_v6 }
  0x27   : > { %5218 = vmatprep.mubr.msk.bf16.mxu0 %vm5865_vm0, %v5864_v1  ;;  %5290 = vmatprep.mubr.msk.bf16.mxu1 %vm5865_vm0, %v5864_v1 }
  0x2e   : > { %5219 = vmatmul.mubr.msk.bf16.gmra.mrb[8].mxu0 %vm402_vm1, %v5420_v7  ;;  %5291 = vmatmul.mubr.msk.bf16.gmra.mrb[8].mxu1 %vm402_vm1, %v5421_v8 }
  0x2f   : > { %5222 = vmatprep.mubr.msk.bf16.mxu0 %vm5865_vm0, %v5864_v1  ;;  %5294 = vmatprep.mubr.msk.bf16.mxu1 %vm5865_vm0, %v5864_v1 }
  0x36   : > { %5223 = vmatmul.mubr.msk.bf16.gmra.mrb[12].mxu0 %vm402_vm1, %v5422_v9  ;;  %5295 = vmatmul.mubr.msk.bf16.gmra.mrb[12].mxu1 %vm402_vm1, %v5423_v10 }
  0x37   : > { %5226 = vmatprep.mubr.msk.bf16.mxu0 %vm5865_vm0, %v5864_v1  ;;  %5298 = vmatprep.mubr.msk.bf16.mxu1 %vm5865_vm0, %v5864_v1 }
  0x3e   : > { %5227 = vmatmul.mubr.msk.bf16.gmra.mrb[16].mxu0 %vm402_vm1, %v5424_v11  ;;  %5299 = vmatmul.mubr.msk.bf16.gmra.mrb[16].mxu1 %vm402_vm1, %v5425_v12 }
  0x3f   : > { %5230 = vmatprep.mubr.msk.bf16.mxu0 %vm5865_vm0, %v5864_v1  ;;  %5302 = vmatprep.mubr.msk.bf16.mxu1 %vm5865_vm0, %v5864_v1 }
  0x46   : > { %5231 = vmatmul.mubr.msk.bf16.gmra.mrb[20].mxu0 %vm402_vm1, %v5426_v13  ;;  %5303 = vmatmul.mubr.msk.bf16.gmra.mrb[20].mxu1 %vm402_vm1, %v5427_v14 }
  0x47   : > { %5234 = vmatprep.mubr.msk.bf16.mxu0 %vm5865_vm0, %v5864_v1  ;;  %5306 = vmatprep.mubr.msk.bf16.mxu1 %vm5865_vm0, %v5864_v1 }
  0x4e   : > { %5235 = vmatmul.mubr.msk.bf16.gmra.mrb[24].mxu0 %vm402_vm1, %v5428_v15  ;;  %5307 = vmatmul.mubr.msk.bf16.gmra.mrb[24].mxu1 %vm402_vm1, %v5429_v16  ;;  %v6128_v15 = vshrl.u32 %v2193_v2, 7 }
  0x4f   : > { %5238 = vmatprep.mubr.msk.bf16.mxu0 %vm5865_vm0, %v5864_v1  ;;  %5310 = vmatprep.mubr.msk.bf16.mxu1 %vm5865_vm0, %v5864_v1 }
  0x50   : > { %9787 = vst [vmem:[#allocation5_spill] sm:$0xff] %v6128_v15 }
  0x56   : > { %5239 = vmatmul.mubr.msk.bf16.gmra.mrb[28].mxu0 %vm402_vm1, %v5430_v17  ;;  %5311 = vmatmul.mubr.msk.bf16.gmra.mrb[28].mxu1 %vm402_vm1, %v5431_v18 }
  0x57   : > { %5242 = vmatprep.mubr.msk.bf16.mxu0 %vm5865_vm0, %v5864_v1  ;;  %5314 = vmatprep.mubr.msk.bf16.mxu1 %vm5865_vm0, %v5864_v1 }
  0x5e   : > { %5243 = vmatmul.mubr.msk.bf16.gmra.mrb[32].mxu0 %vm402_vm1, %v5432_v19  ;;  %5315 = vmatmul.mubr.msk.bf16.gmra.mrb[32].mxu1 %vm402_vm1, %v5433_v20 }
  0x5f   : > { %5246 = vmatprep.mubr.msk.bf16.mxu0 %vm5865_vm0, %v5864_v1 }
  0x66   : > { %5247 = vmatmul.mubr.msk.bf16.gmra.mrb[36].mxu0 %vm402_vm1, %v5434_v21 }
  0x67   : > { %5250 = vmatprep.mubr.msk.bf16.mxu0 %vm5865_vm0, %v5864_v1 }
  0x6e   : > { %5251 = vmatmul.mubr.msk.bf16.gmra.mrb[40].mxu0 %vm402_vm1, %v5435_v22 }
  0x6f   : > { %5254 = vmatprep.mubr.msk.bf16.mxu0 %vm5865_vm0, %v5864_v1 }
  0x76   : > { %5255 = vmatmul.mubr.msk.bf16.gmra.mrb[44].mxu0 %vm402_vm1, %v5436_v23 }
  0x77   : > { %5258 = vmatprep.mubr.msk.bf16.mxu0 %vm5865_vm0, %v5864_v1 }
  0x7e   : > { %5259 = vmatmul.mubr.msk.bf16.gmra.mrb[48].mxu0 %vm402_vm1, %v5437_v24 }
  0x7f   : > { %5262 = vmatprep.mubr.msk.bf16.mxu0 %vm5865_vm0, %v5864_v1 }
  0x86   : > { %5263 = vmatmul.mubr.msk.bf16.gmra.mrb[52].mxu0 %vm402_vm1, %v5438_v25 }
  0x87   : > { %5266 = vmatprep.mubr.msk.bf16.mxu0 %vm5865_vm0, %v5864_v1 }
  0x8e   : > { %5267 = vmatmul.mubr.msk.bf16.gmra.mrb[56].mxu0 %vm402_vm1, %v5439_v26 }
  0x8f   : > { %5270 = vmatprep.mubr.msk.bf16.mxu0 %vm5865_vm0, %v5864_v1 }
  0x96   : > { %5271 = vmatmul.mubr.msk.bf16.gmra.mrb[60].mxu0 %vm402_vm1, %v5440_v27 }
  0x97   : > { %5274 = vmatprep.mubr.msk.bf16.mxu0 %vm5865_vm0, %v5864_v1 }
  0x9e   : > { %5275 = vmatmul.mubr.msk.bf16.gmra.mrb[64].mxu0 %vm402_vm1, %v5441_v28 }
  0x9f   : > { %5278 = vmatprep.mubr.msk.bf16.mxu0 %vm5865_vm0, %v5864_v1 }
  0xa6   : > { %5279 = vmatmul.mubr.msk.bf16.gmra.mrb[68].mxu0 %vm402_vm1, %v5442_v29 }
  0xf1   : > { %v6067_v30 = vpop.f32.mrb[0].mxu0  ;;  %v6072_v33 = vpop.f32.mrb[0].mxu1 }
  0xf2   : > { %v6070_v31 = vmul.f32 0.70710677, %v6067_v30  ;;  %v5212_v32 = vpop.f32.mrb[1].mxu0  ;;  %v6077_v35 = vmul.f32 0.70710677, %v6072_v33  ;;  %v5284_v36 = vpop.f32.mrb[1].mxu1 }
  0xf3   : > { %v6074_v34 = vpop.f32.mrb[2].mxu0  ;;  %v6086_v41 = vpop.f32.mrb[2].mxu1  ;;  %v2195_v36 = vsub.s32 0, %v6128_v15 }
  0xf4   : > { %v841_v37 = vand.u32 2147483647, %v6070_v31  ;;  %v6081_v38 = vmul.f32 0.70710677, %v6074_v34  ;;  %v5213_v39 = vpop.f32.mrb[3].mxu0  ;;  %v5285_v46 = vpop.f32.mrb[3].mxu1 }
  0xf5   : > { %v6084_v40 = vand.u32 2147483647, %v6077_v35  ;;  %v6093_v49 = vmul.f32 0.70710677, %v6086_v41  ;;  %vm1921_vm2 = vcmp.lt.f32.partialorder %v6070_v31, 0.0  ;;  %vm1957_vm9 = vcmp.lt.f32.partialorder %v6077_v35, 0.0 }
  0xf6   : > { %v895_v42 = vmul.f32 0.3275911, %v841_v37  ;;  %v842_v43 = vand.u32 2147483647, %v6081_v38  ;;  %v1597_v1 = vsub.f32 0.0, %v841_v37  ;;  %vm1922_vm3 = vcmp.lt.f32.partialorder %v6081_v38, 0.0 }
  0xf7   : > { %v931_v48 = vmul.f32 0.3275911, %v6084_v40  ;;  %v6107_v59 = vand.u32 2147483647, %v6093_v49  ;;  %vm1958_vm10 = vcmp.lt.f32.partialorder %v6093_v49, 0.0 }
  0xf8   : > { %v949_v44 = vadd.f32 1.0, %v895_v42  ;;  %v896_v45 = vmul.f32 0.3275911, %v842_v43  ;;  %v1598_v11 = vsub.f32 0.0, %v842_v43  ;;  %v1651_v14 = vmul.f32 %v1597_v1, %v841_v37 }
  0xf9   : > { %v6089_v47 = vpop.f32.mrb[4].mxu0  ;;  %v6095_v52 = vpop.f32.mrb[4].mxu1  ;;  %v985_v58 = vadd.f32 1.0, %v931_v48  ;;  %v932_v5 = vmul.f32 0.3275911, %v6107_v59  ;;  %v2263_v48 = vsub.s32 1, %v6128_v15 }
  0xfa   : > { %5451 = vrcp.f32 %v949_v44  ;;  %v950_v50 = vadd.f32 1.0, %v896_v45  ;;  %v5216_v51 = vpop.f32.mrb[5].mxu0  ;;  %v6098_v53 = vmul.f32 0.70710677, %v6089_v47  ;;  %v5288_v60 = vpop.f32.mrb[5].mxu1  ;;  %v1652_v27 = vmul.f32 %v1598_v11, %v842_v43  ;;  %v6153_v43 = vld [vmem:[%s9631_s2] sm:$0xff] }
  0xfb   : > { %v6100_v54 = vpop.f32.mrb[6].mxu0  ;;  %v6112_v62 = vpop.f32.mrb[6].mxu1  ;;  %v6119_v8 = vmul.f32 0.70710677, %v6095_v52  ;;  %v986_v22 = vadd.f32 1.0, %v932_v5 }
  0xfc   : > { %v6103_v55 = vmul.f32 0.70710677, %v6100_v54  ;;  %v5217_v56 = vpop.f32.mrb[7].mxu0  ;;  %5453 = vrcp.f32 %v950_v50  ;;  %v843_v57 = vand.u32 2147483647, %v6098_v53  ;;  %v5289_v0 = vpop.f32.mrb[7].mxu1 }
  0xfd   : > { %5455 = vrcp.f32 %v985_v58  ;;  %v6137_v23 = vand.u32 2147483647, %v6119_v8  ;;  %v1705_v32 = vmul.f32 1.442695, %v1651_v14  ;;  %v1707_v60 = vmul.f32 1.442695, %v1652_v27 }
  0xfe   : > { %v6110_v61 = vand.u32 2147483647, %v6103_v55  ;;  %v897_v63 = vmul.f32 0.3275911, %v843_v57  ;;  %v1599_v19 = vsub.f32 0.0, %v843_v57  ;;  %v1633_v14 = vsub.f32 0.0, %v6084_v40 }
  0xff   : > { %vm1923_vm6 = vcmp.lt.f32.partialorder %v6098_v53, 0.0  ;;  %vm1924_vm7 = vcmp.lt.f32.partialorder %v6103_v55, 0.0  ;;  %vm1959_vm12 = vcmp.lt.f32.partialorder %v6119_v8, 0.0 }
 0x100   : > { %v898_v3 = vmul.f32 0.3275911, %v6110_v61  ;;  %v951_v4 = vadd.f32 1.0, %v897_v63  ;;  %v1653_v42 = vmul.f32 %v1599_v19, %v843_v57  ;;  %v1600_v44 = vsub.f32 0.0, %v6110_v61 }
 0x101   : > { %v6116_v6 = vpop.f32.mrb[8].mxu0  ;;  %v6121_v10 = vpop.f32.mrb[8].mxu1  ;;  %v933_v63 = vmul.f32 0.3275911, %v6137_v23 }
 0x102   : > { %v952_v7 = vadd.f32 1.0, %v898_v3  ;;  %v5220_v9 = vpop.f32.mrb[9].mxu0  ;;  %5457 = vrcp.f32 %v951_v4  ;;  %v6124_v12 = vmul.f32 0.70710677, %v6116_v6  ;;  %v5292_v17 = vpop.f32.mrb[9].mxu1  ;;  %v1654_v11 = vmul.f32 %v1600_v44, %v6110_v61 }
 0x103   : > { %v6130_v16 = vpop.f32.mrb[10].mxu0  ;;  %v6139_v24 = vpop.f32.mrb[10].mxu1  ;;  %v1709_v9 = vmul.f32 1.442695, %v1653_v42  ;;  %v987_v61 = vadd.f32 1.0, %v933_v63  ;;  %v6189_v44 = vmul.f32 0.5, %v6067_v30 }
 0x104   : > { %v6126_v13 = vpop.eup %5451  ;;  %5459 = vrcp.f32 %v952_v7  ;;  %v6134_v20 = vand.u32 2147483647, %v6124_v12  ;;  %v5221_v21 = vpop.f32.mrb[11].mxu0  ;;  %v6164_v2 = vmul.f32 0.70710677, %v6130_v16  ;;  %vm1925_vm8 = vcmp.lt.f32.partialorder %v6124_v12, 0.0 }
 0x105   : > { %v1111_v18 = vmul.f32 1.0614054, %v6126_v13  ;;  %v5293_v29 = vpop.f32.mrb[11].mxu1  ;;  %5461 = vrcp.f32 %v986_v22  ;;  %v6178_v21 = vrot.slane %v6153_v43, %v2195_v36 }
 0x106   : > { %v6141_v25 = vpop.eup %5453  ;;  %v899_v28 = vmul.f32 0.3275911, %v6134_v20  ;;  %v6186_v42 = vand.u32 2147483647, %v6164_v2  ;;  %vm1926_vm11 = vcmp.lt.f32.partialorder %v6164_v2, 0.0 }
 0x107   : > { %v1165_v26 = vadd.f32 -1.4531521, %v1111_v18  ;;  %v1112_v37 = vmul.f32 1.0614054, %v6141_v25  ;;  %v6158_v58 = vpop.eup %5455  ;;  %9788 = vst [vmem:[#allocation6_spill] sm:$0xff] %v6178_v21 }
 0x108   : > { %v953_v45 = vadd.f32 1.0, %v899_v28  ;;  %v1147_v27 = vmul.f32 1.0614054, %v6158_v58 }
 0x109   : > { %v1219_v39 = vmul.f32 %v6126_v13, %v1165_v26  ;;  %v6148_v46 = vpop.f32.mrb[12].mxu0  ;;  %v1166_v50 = vadd.f32 -1.4531521, %v1112_v37  ;;  %v6156_v51 = vpop.f32.mrb[12].mxu1 }
 0x10a   : > { %v5224_v56 = vpop.f32.mrb[13].mxu0  ;;  %5463 = vrcp.f32 %v953_v45  ;;  %v5296_v3 = vpop.f32.mrb[13].mxu1 }
 0x10b   : > { %v1273_v57 = vadd.f32 1.4214138, %v1219_v39  ;;  %5465 = vpow2.f32 %v1705_v32  ;;  %v1220_v1 = vmul.f32 %v6141_v25, %v1166_v50  ;;  %v6166_v4 = vpop.f32.mrb[14].mxu0  ;;  %v6173_v17 = vpop.f32.mrb[14].mxu1  ;;  %v1711_v56 = vmul.f32 1.442695, %v1654_v11 }
 0x10c   : > { %v6168_v5 = vpop.eup %5457  ;;  %v5225_v18 = vpop.f32.mrb[15].mxu0  ;;  %5467 = vpow2.f32 %v1707_v60  ;;  %v6195_v60 = vrot.slane %v6153_v43, %v2263_v48  ;;  %v1201_v3 = vadd.f32 -1.4531521, %v1147_v27  ;;  %v900_v27 = vmul.f32 0.3275911, %v6186_v42 }
 0x10d   : > { %v1327_v7 = vmul.f32 %v6126_v13, %v1273_v57  ;;  %v1274_v22 = vadd.f32 1.4214138, %v1220_v1  ;;  %v1113_v26 = vmul.f32 1.0614054, %v6168_v5  ;;  %v5297_v36 = vpop.f32.mrb[15].mxu1  ;;  %5469 = vrcp.f32 %v987_v61 }
 0x10e   : > { %v6175_v19 = vpop.eup %5459  ;;  %5471 = vpow2.f32 %v1709_v9  ;;  %v1255_v9 = vmul.f32 %v6158_v58, %v1201_v3 }
 0x10f   : > { %v1381_v28 = vadd.f32 -0.28449672, %v1327_v7  ;;  %v1114_v29 = vmul.f32 1.0614054, %v6175_v19  ;;  %v1328_v32 = vmul.f32 %v6141_v25, %v1274_v22  ;;  %v1167_v37 = vadd.f32 -1.4531521, %v1113_v26 }
 0x110   : > { %v1687_v26 = vmul.f32 %v1633_v14, %v6084_v40  ;;  %v6215_v14 = vmul.f32 0.5, %v6074_v34  ;;  %5473 = vpow2.f32 %v1711_v56 }
 0x111   : > { %v1435_v45 = vmul.f32 %v6126_v13, %v1381_v28  ;;  %v1168_v50 = vadd.f32 -1.4531521, %v1114_v29  ;;  %v6192_v57 = vpop.f32.mrb[16].mxu0  ;;  %v1382_v63 = vadd.f32 -0.28449672, %v1328_v32  ;;  %v1221_v1 = vmul.f32 %v6168_v5, %v1167_v37  ;;  %v6198_v7 = vpop.f32.mrb[16].mxu1 }
 0x112   : > { %9789 = vst [vmem:[#allocation7_spill] sm:$0xff] %v6192_v57  ;;  %9790 = vst [vmem:[#allocation8_spill] sm:$0xff] %v6198_v7  ;;  %v5228_v18 = vpop.f32.mrb[17].mxu0  ;;  %v5300_v11 = vpop.f32.mrb[17].mxu1  ;;  %v1777_v56 = vmul.f32 1.442695, %v1687_v26 }
 0x113   : > { %v1489_v22 = vadd.f32 0.2548296, %v1435_v45  ;;  %v1222_v30 = vmul.f32 %v6175_v19, %v1168_v50  ;;  %v6202_v28 = vpop.f32.mrb[18].mxu0  ;;  %v6204_v29 = vpop.eup %5461  ;;  %v1436_v48 = vmul.f32 %v6141_v25, %v1382_v63  ;;  %v1275_v32 = vadd.f32 1.4214138, %v1221_v1 }
 0x114   : > { %9791 = vst [vmem:[#allocation9_spill] sm:$0xff] %v6202_v28  ;;  %v5229_v37 = vpop.f32.mrb[19].mxu0  ;;  %v6209_v36 = vpop.f32.mrb[18].mxu1  ;;  %v1601_v1 = vsub.f32 0.0, %v6134_v20  ;;  %v1148_v0 = vmul.f32 1.0614054, %v6204_v29 }
 0x115   : > { %9792 = vst [vmem:[#allocation10_spill] sm:$0xff] %v6209_v36  ;;  %v6211_v45 = vpop.eup %5463  ;;  %v1543_v40 = vmul.f32 %v6126_v13, %v1489_v22  ;;  %v1276_v61 = vadd.f32 1.4214138, %v1222_v30  ;;  %v1490_v18 = vadd.f32 0.2548296, %v1436_v48  ;;  %v1329_v63 = vmul.f32 %v6168_v5, %v1275_v32  ;;  %v5301_v11 = vpop.f32.mrb[19].mxu1 }
 0x116   : > { %v5466_v50 = vpop.eup %5465  ;;  %v1115_v13 = vmul.f32 1.0614054, %v6211_v45  ;;  %v954_v30 = vadd.f32 1.0, %v900_v27  ;;  %v9793_v32 = vsub.s32 2, %v6128_v15  ;;  %v1309_v7 = vadd.f32 1.4214138, %v1255_v9 }
 0x117   : > { %v1813_v37 = vmul.f32 %v5466_v50, %v1543_v40  ;;  %v1330_v39 = vmul.f32 %v6175_v19, %v1276_v61  ;;  %v1544_v34 = vmul.f32 %v6141_v25, %v1490_v18  ;;  %v1383_v22 = vadd.f32 -0.28449672, %v1329_v63  ;;  %v5468_v48 = vpop.eup %5467 }
 0x118   : > { %v6227_v3 = vrot.slane %v6153_v43, %v9793_v32  ;;  %v1169_v40 = vadd.f32 -1.4531521, %v1115_v13  ;;  %v1655_v25 = vmul.f32 %v1601_v1, %v6134_v20  ;;  %5475 = vrcp.f32 %v954_v30  ;;  %v6242_v1 = vpop.eup %5469 }
 0x119   : > { %v1867_v36 = vsub.f32 1.0, %v1813_v37  ;;  %v1384_v11 = vadd.f32 -0.28449672, %v1330_v39  ;;  %v6229_v50 = vpop.f32.mrb[20].mxu0  ;;  %v1814_v61 = vmul.f32 %v5468_v48, %v1544_v34  ;;  %v1437_v28 = vmul.f32 %v6168_v5, %v1383_v22  ;;  %v6233_v18 = vpop.f32.mrb[20].mxu1 }
 0x11a   : > { %v5232_v26 = vpop.f32.mrb[21].mxu0  ;;  %v1202_v37 = vadd.f32 -1.4531521, %v1148_v0  ;;  %v1223_v32 = vmul.f32 %v6211_v45, %v1169_v40  ;;  %v5304_v57 = vpop.f32.mrb[21].mxu1  ;;  %v6247_v0 = vmul.f32 0.5, %v6089_v47  ;;  %v1634_v30 = vsub.f32 0.0, %v6107_v59 }
 0x11b   : > { %v1975_v27 = vsub.f32 0.0, %v1867_v36  ;;  %v1438_v63 = vmul.f32 %v6175_v19, %v1384_v11  ;;  %v6237_v39 = vpop.f32.mrb[22].mxu0  ;;  %v1868_v13 = vsub.f32 1.0, %v1814_v61  ;;  %v1491_v34 = vadd.f32 0.2548296, %v1437_v28  ;;  %v6240_v9 = vpop.f32.mrb[22].mxu1 }
 0x11c   : > { %9794 = vst [vmem:[#allocation11_spill] sm:$0xff] %v6240_v9  ;;  %v5233_v20 = vpop.f32.mrb[23].mxu0  ;;  %v1277_v57 = vadd.f32 1.4214138, %v1223_v32  ;;  %v5305_v11 = vpop.f32.mrb[23].mxu1  ;;  %v1256_v31 = vmul.f32 %v6204_v29, %v1202_v37  ;;  %5477 = vpow2.f32 %v1777_v56 }
 0x11d   : > { %v2029_v22 = vsel %vm1921_vm2, %v1975_v27, %v1867_v36  ;;  %v1492_v48 = vadd.f32 0.2548296, %v1438_v63  ;;  %v5472_v40 = vpop.eup %5471  ;;  %v1976_v26 = vsub.f32 0.0, %v1868_v13  ;;  %v1545_v28 = vmul.f32 %v6168_v5, %v1491_v34 }
 0x11e   : > { %v2083_v61 = vadd.f32 1.0, %v2029_v22  ;;  %v5474_v20 = vpop.eup %5473  ;;  %v1331_v47 = vmul.f32 %v6211_v45, %v1277_v57  ;;  %v1713_v36 = vmul.f32 1.442695, %v1655_v25  ;;  %v1149_v22 = vmul.f32 1.0614054, %v6242_v1 }
 0x11f   : > { %v1546_v9 = vmul.f32 %v6175_v19, %v1492_v48  ;;  %v2030_v63 = vsel %vm1922_vm3, %v1976_v26, %v1868_v13  ;;  %v1815_v32 = vmul.f32 %v5472_v40, %v1545_v28  ;;  %v1363_v34 = vmul.f32 %v6158_v58, %v1309_v7 }
 0x120   : > { %v2137_v27 = vmul.f32 %v2083_v61, %v6189_v44  ;;  %v2084_v11 = vadd.f32 1.0, %v2030_v63  ;;  %v1385_v40 = vadd.f32 -0.28449672, %v1331_v47  ;;  %5479 = vpow2.f32 %v1713_v36 }
 0x121   : > { %v1816_v5 = vmul.f32 %v5474_v20, %v1546_v9  ;;  %v6260_v19 = vpop.f32.mrb[24].mxu0  ;;  %v1869_v48 = vsub.f32 1.0, %v1815_v32  ;;  %v6265_v38 = vpop.f32.mrb[24].mxu1  ;;  %v1310_v26 = vadd.f32 1.4214138, %v1256_v31  ;;  %v1688_v28 = vmul.f32 %v1634_v30, %v6107_v59 }
 0x122   : > { %9795 = vst [vmem:[#allocation12_spill] sm:$0xff] %v6260_v19  ;;  %v2265_v37 = vmul.f32 %v6195_v60, %v2137_v27  ;;  %v2510_v25 = vmul.f32 %v6227_v3, %v2137_v27  ;;  %9796 = vst [vmem:[#allocation13_spill] sm:$0xff] %v6265_v38  ;;  %v5236_v44 = vpop.f32.mrb[25].mxu0  ;;  %v2138_v13 = vmul.f32 %v2084_v11, %v6215_v14  ;;  %v5308_v9 = vpop.f32.mrb[25].mxu1  ;;  %v1203_v20 = vadd.f32 -1.4531521, %v1149_v22 }
 0x123   : > { %v1870_v57 = vsub.f32 1.0, %v1816_v5  ;;  %v6268_v7 = vpop.f32.mrb[26].mxu0  ;;  %v1977_v61 = vsub.f32 0.0, %v1869_v48  ;;  %v1417_v38 = vadd.f32 -0.28449672, %v1363_v34  ;;  %v1602_v44 = vsub.f32 0.0, %v6186_v42  ;;  %v6274_v14 = vpop.eup %5475 }
 0x124   : > { %9797 = vst [vmem:[#allocation14_spill] sm:$0xff] %v6268_v7  ;;  %v5237_v63 = vpop.f32.mrb[27].mxu0  ;;  %v2266_v32 = vmul.f32 %v6195_v60, %v2138_v13  ;;  %v2511_v56 = vmul.f32 %v6227_v3, %v2138_v13  ;;  %v2362_v47 = vrot.slane %v2265_v37, 1  ;;  %v2607_v36 = vrot.slane %v2510_v25, 2  ;;  %v6279_v5 = vpop.f32.mrb[26].mxu1 }
 0x125   : > { %v2031_v11 = vsel %vm1923_vm6, %v1977_v61, %v1869_v48  ;;  %v1439_v31 = vmul.f32 %v6211_v45, %v1385_v40  ;;  %9798 = vst [vmem:[#allocation15_spill] sm:$0xff] %v6279_v5  ;;  %v1978_v9 = vsub.f32 0.0, %v1870_v57  ;;  %v5309_v63 = vpop.f32.mrb[27].mxu1  ;;  %v2197_v34 = vmul.f32 %v6178_v21, %v2137_v27 }
 0x126   : > { %v2363_v59 = vrot.slane %v2266_v32, 1  ;;  %v2608_v30 = vrot.slane %v2511_v56, 2  ;;  %v2085_v22 = vadd.f32 1.0, %v2031_v11  ;;  %v1364_v7 = vmul.f32 %v6204_v29, %v1310_v26 }
 0x127   : > { %v1493_v19 = vadd.f32 0.2548296, %v1439_v31  ;;  %v1257_v37 = vmul.f32 %v6242_v1, %v1203_v20  ;;  %v1116_v40 = vmul.f32 1.0614054, %v6274_v14  ;;  %v1779_v32 = vmul.f32 1.442695, %v1688_v28 }
 0x128   : > { %v2364_v25 = vsel %vm2361_vm4, %v2362_v47, %v2363_v59  ;;  %v2609_v53 = vsel %vm2606_vm5, %v2607_v36, %v2608_v30  ;;  %v2139_v48 = vmul.f32 %v2085_v22, %v6247_v0  ;;  %v1635_v11 = vsub.f32 0.0, %v6137_v23  ;;  %v5478_v36 = vpop.eup %5477 }
 0x129   : > { %v2474_v61 = vadd.f32 %v2364_v25, %v2197_v34  ;;  %v1547_v56 = vmul.f32 %v6211_v45, %v1493_v19  ;;  %v2032_v20 = vsel %vm1924_vm7, %v1978_v9, %v1870_v57  ;;  %v1471_v47 = vmul.f32 %v6158_v58, %v1417_v38 }
 0x12a   : > { %v2267_v27 = vmul.f32 %v6195_v60, %v2139_v48  ;;  %v2512_v26 = vmul.f32 %v6227_v3, %v2139_v48  ;;  %v736_v0 = vmul.f32 0.5, %v6100_v54  ;;  %v1170_v22 = vadd.f32 -1.4531521, %v1116_v40  ;;  %v5480_v45 = vpop.eup %5479 }
 0x12b   : > { %v6295_v31 = vadd.f32 %v2609_v53, %v2474_v61  ;;  %v1656_v28 = vmul.f32 %v1602_v44, %v6186_v42  ;;  %v1418_v34 = vadd.f32 -0.28449672, %v1364_v7  ;;  %v1311_v25 = vadd.f32 1.4214138, %v1257_v37 }
 0x12c   : > { %v2365_v19 = vrot.slane %v2267_v27, 1  ;;  %v2610_v63 = vrot.slane %v2512_v26, 2  ;;  %v2198_v48 = vmul.f32 %v6178_v21, %v2138_v13  ;;  %v2086_v5 = vadd.f32 1.0, %v2032_v20 }
 0x12d   : > { %9799 = vst [vmem:[#allocation16_spill] sm:$0xff] %v6295_v31  ;;  %5481 = vpow2.f32 %v1779_v32  ;;  %v1817_v55 = vmul.f32 %v5480_v45, %v1547_v56  ;;  %v1525_v9 = vadd.f32 0.2548296, %v1471_v47  ;;  %v1689_v54 = vmul.f32 %v1635_v11, %v6137_v23  ;;  %v6314_v56 = vpop.f32.mrb[28].mxu0  ;;  %v6316_v11 = vpop.f32.mrb[28].mxu1 }
 0x12e   : > { %v2366_v38 = vsel %vm2361_vm4, %v2363_v59, %v2365_v19  ;;  %v2611_v57 = vsel %vm2606_vm5, %v2608_v30, %v2610_v63  ;;  %v1224_v42 = vmul.f32 %v6274_v14, %v1170_v22  ;;  %v1715_v44 = vmul.f32 1.442695, %v1656_v28  ;;  %9800 = vst [vmem:[#allocation17_spill] sm:$0xff] %v6314_v56  ;;  %9801 = vst [vmem:[#allocation18_spill] sm:$0xff] %v6316_v11  ;;  %v5240_v47 = vpop.f32.mrb[29].mxu0 }
 0x12f   : > { %v2475_v53 = vadd.f32 %v2366_v38, %v2198_v48  ;;  %v1871_v40 = vsub.f32 1.0, %v1817_v55  ;;  %v1472_v7 = vmul.f32 %v6204_v29, %v1418_v34  ;;  %v1365_v37 = vmul.f32 %v6242_v1, %v1311_v25 }
 0x130   : > { %v6307_v13 = vmul.f32 0.70710677, %v6112_v62  ;;  %v6310_v61 = vmul.f32 0.70710677, %v6121_v10  ;;  %v6312_v30 = vmul.f32 %v2086_v5, %v736_v0  ;;  %v1278_v23 = vadd.f32 1.4214138, %v1224_v42 }
 0x131   : > { %v2720_v59 = vadd.f32 %v2611_v57, %v2475_v53  ;;  %v1979_v32 = vsub.f32 0.0, %v1871_v40  ;;  %v1579_v27 = vmul.f32 %v6158_v58, %v1525_v9  ;;  %v1781_v26 = vmul.f32 1.442695, %v1689_v54  ;;  %v5312_v0 = vpop.f32.mrb[29].mxu1 }
 0x132   : > { %v6321_v20 = vand.u32 2147483647, %v6307_v13  ;;  %v1332_v28 = vmul.f32 %v6274_v14, %v1278_v23  ;;  %5483 = vpow2.f32 %v1715_v44  ;;  %v6325_v5 = vand.u32 2147483647, %v6310_v61 }
 0x133   : > { %v2033_v22 = vsel %vm1925_vm8, %v1979_v32, %v1871_v40  ;;  %v1526_v45 = vadd.f32 0.2548296, %v1472_v7  ;;  %v737_v19 = vmul.f32 0.5, %v6116_v6  ;;  %v2268_v12 = vmul.f32 %v6195_v60, %v6312_v30  ;;  %v6354_v32 = vpop.f32.mrb[30].mxu0 }
 0x134   : > { %v2087_v63 = vadd.f32 1.0, %v2033_v22  ;;  %v934_v58 = vmul.f32 0.3275911, %v6321_v20  ;;  %v2513_v34 = vmul.f32 %v6227_v3, %v6312_v30  ;;  %v1419_v25 = vadd.f32 -0.28449672, %v1365_v37  ;;  %9804 = vst [vmem:[#allocation20_spill] sm:$0xff] %v6354_v32 }
 0x135   : > { %v1386_v48 = vadd.f32 -0.28449672, %v1332_v28  ;;  %v9802_v55 = vsub.s32 3, %v6128_v15  ;;  %v2821_v57 = vsub.s32 4, %v6128_v15  ;;  %v6341_v54 = vmul.f32 %v5478_v36, %v1579_v27 }
 0x136   : > { %v6339_v9 = vmul.f32 %v2087_v63, %v737_v19  ;;  %5485 = vpow2.f32 %v1781_v26  ;;  %v988_v53 = vadd.f32 1.0, %v934_v58  ;;  %v935_v40 = vmul.f32 0.3275911, %v6325_v5 }
 0x137   : > { %v6336_v38 = vrot.slane %v6153_v43, %v9802_v55  ;;  %v5482_v6 = vpop.eup %5481  ;;  %v1580_v42 = vmul.f32 %v6204_v29, %v1526_v45  ;;  %v1440_v44 = vmul.f32 %v6274_v14, %v1386_v48  ;;  %v2367_v36 = vrot.slane %v2268_v12, 1  ;;  %v5241_v29 = vpop.f32.mrb[31].mxu0 }
 0x138   : > { %v6348_v7 = vmul.f32 %v6195_v60, %v6339_v9  ;;  %v6352_v37 = vmul.f32 %v6227_v3, %v6339_v9  ;;  %v2612_v23 = vrot.slane %v2513_v34, 2  ;;  %v1473_v27 = vmul.f32 %v6242_v1, %v1419_v25 }
 0x139   : > { %9803 = vst [vmem:[#allocation19_spill] sm:$0xff] %v6336_v38  ;;  %v2756_v26 = vmul.f32 %v6336_v38, %v6339_v9  ;;  %v1494_v47 = vadd.f32 0.2548296, %v1440_v44  ;;  %v6362_v0 = vmul.f32 0.70710677, %v6139_v24  ;;  %v2199_v45 = vmul.f32 %v6178_v21, %v6312_v30 }
 0x13a   : > { %v9644_v22 = vrot.slane %v6348_v7, 1  ;;  %v9643_v28 = vrot.slane %v6352_v37, 2  ;;  %5487 = vrcp.f32 %v988_v53  ;;  %v989_v63 = vadd.f32 1.0, %v935_v40 }
 0x13b   : > { %v6366_v19 = vadd.f32 %v2756_v26, %v2720_v59  ;;  %v1850_v58 = vmul.f32 %v5482_v6, %v1580_v42  ;;  %v1548_v12 = vmul.f32 %v6274_v14, %v1494_v47  ;;  %v3065_v55 = vsub.s32 5, %v6128_v15 }
 0x13c   : > { %v2369_v34 = vsel %vm2361_vm4, %v2367_v36, %v9644_v22  ;;  %v2614_v25 = vsel %vm2606_vm5, %v2612_v23, %v9643_v28  ;;  %v5484_v48 = vpop.eup %5483  ;;  %v1527_v29 = vadd.f32 0.2548296, %v1473_v27  ;;  %v6377_v53 = vand.u32 2147483647, %v6362_v0  ;;  %v6432_v22 = vpop.f32.mrb[30].mxu1 }
 0x13d   : > { %v2476_v44 = vadd.f32 %v2369_v34, %v2199_v45  ;;  %v1818_v59 = vmul.f32 %v5484_v48, %v1548_v12  ;;  %v1903_v6 = vsub.f32 1.0, %v6341_v54  ;;  %5489 = vrcp.f32 %v989_v63  ;;  %9808 = vst [vmem:[#allocation24_spill] sm:$0xff] %v6432_v22 }
 0x13e   : > { %v6383_v40 = vmul.f32 0.70710677, %v6148_v46  ;;  %v6386_v42 = vrot.slane %v6153_v43, %v2821_v57  ;;  %v1904_v36 = vsub.f32 1.0, %v1850_v58  ;;  %v936_v26 = vmul.f32 0.3275911, %v6377_v53 }
 0x13f   : > { %v6380_v14 = vadd.f32 %v2614_v25, %v2476_v44  ;;  %v1872_v23 = vsub.f32 1.0, %v1818_v59  ;;  %v6390_v47 = vrot.slane %v6153_v43, %v3065_v55  ;;  %v6397_v45 = vmul.f32 0.70710677, %v6156_v51 }
 0x140   : > { %v5486_v27 = vpop.eup %5485  ;;  %v6394_v54 = vand.u32 2147483647, %v6383_v40  ;;  %v1581_v57 = vmul.f32 %v6242_v1, %v1527_v29  ;;  %v990_v58 = vadd.f32 1.0, %v936_v26  ;;  %v2011_v12 = vsub.f32 0.0, %v1903_v6 }
 0x141   : > { %9805 = vst [vmem:[#allocation21_spill] sm:$0xff] %v6380_v14  ;;  %v1980_v63 = vsub.f32 0.0, %v1872_v23  ;;  %v6404_v34 = vand.u32 2147483647, %v6397_v45  ;;  %v2012_v25 = vsub.f32 0.0, %v1904_v36  ;;  %v738_v1 = vmul.f32 0.5, %v6130_v16 }
 0x142   : > { %v901_v43 = vmul.f32 0.3275911, %v6394_v54  ;;  %5491 = vrcp.f32 %v990_v58  ;;  %v6407_v55 = vmul.f32 0.70710677, %v6166_v4  ;;  %v6413_v2 = vmul.f32 %v5486_v27, %v1581_v57 }
 0x143   : > { %v2034_v48 = vsel %vm1926_vm11, %v1980_v63, %v1872_v23  ;;  %v937_v26 = vmul.f32 0.3275911, %v6404_v34  ;;  %v6417_v28 = vmul.f32 %v6386_v42, %v6339_v9  ;;  %v6421_v23 = vmul.f32 %v6390_v47, %v6339_v9 }
 0x144   : > { %v6409_v44 = vpop.eup %5487  ;;  %v2088_v29 = vadd.f32 1.0, %v2034_v48  ;;  %v955_v59 = vadd.f32 1.0, %v901_v43  ;;  %v6424_v63 = vand.u32 2147483647, %v6407_v55  ;;  %v2065_v16 = vsel %vm1957_vm9, %v2011_v12, %v1903_v6  ;;  %v5313_v12 = vpop.f32.mrb[31].mxu1 }
 0x145   : > { %9806 = vst [vmem:[#allocation22_spill] sm:$0xff] %v6417_v28  ;;  %9807 = vst [vmem:[#allocation23_spill] sm:$0xff] %v6421_v23  ;;  %v2066_v27 = vsel %vm1958_vm10, %v2012_v25, %v1904_v36  ;;  %v1150_v57 = vmul.f32 1.0614054, %v6409_v44  ;;  %v991_v43 = vadd.f32 1.0, %v937_v26  ;;  %v1905_v49 = vsub.f32 1.0, %v6413_v2 }
 0x146   : > { %v2142_v58 = vmul.f32 %v2088_v29, %v738_v1  ;;  %5493 = vrcp.f32 %v955_v59  ;;  %v902_v48 = vmul.f32 0.3275911, %v6424_v63  ;;  %v2200_v36 = vmul.f32 %v6178_v21, %v6339_v9 }
 0x147   : > { %v6434_v14 = vpop.eup %5489  ;;  %v9652_v25 = vrot.slane %v6417_v28, 1  ;;  %v9651_v1 = vrot.slane %v6421_v23, 2  ;;  %v1204_v11 = vadd.f32 -1.4531521, %v1150_v57  ;;  %5495 = vrcp.f32 %v991_v43 }
 0x148   : > { %v2270_v31 = vmul.f32 %v6195_v60, %v2142_v58  ;;  %v2515_v32 = vmul.f32 %v6227_v3, %v2142_v58  ;;  %v2825_v35 = vmul.f32 %v6386_v42, %v2142_v58  ;;  %v3069_v6 = vmul.f32 %v6390_v47, %v2142_v58 }
 0x149   : > { %v1151_v56 = vmul.f32 1.0614054, %v6434_v14  ;;  %v956_v15 = vadd.f32 1.0, %v902_v48  ;;  %v9809_v58 = vrot.slane %v6348_v7, 1  ;;  %v9810_v12 = vrot.slane %v6352_v37, 2 }
 0x14a   : > { %v2370_v29 = vrot.slane %v2270_v31, 1  ;;  %v2615_v59 = vrot.slane %v2515_v32, 2  ;;  %v2922_v26 = vrot.slane %v2825_v35, 1  ;;  %v3166_v22 = vrot.slane %v3069_v6, 2 }
 0x14b   : > { %v769_v43 = vmul.f32 0.5, %v6072_v33  ;;  %v2119_v37 = vadd.f32 1.0, %v2065_v16  ;;  %v770_v35 = vmul.f32 0.5, %v6086_v41  ;;  %v2120_v6 = vadd.f32 1.0, %v2066_v27 }
 0x14c   : > { %v2371_v2 = vsel %vm2361_vm4, %v9809_v58, %v2370_v29  ;;  %v2616_v9 = vsel %vm2606_vm5, %v9810_v12, %v2615_v59  ;;  %v2923_v31 = vsel %vm2361_vm4, %v9652_v25, %v2922_v26  ;;  %v6458_v32 = vsel %vm2606_vm5, %v9651_v1, %v3166_v22  ;;  %v6460_v57 = vpop.eup %5491 }
 0x14d   : > { %9811 = vst [vmem:[#allocation25_spill] sm:$0xff] %v6458_v32  ;;  %v2477_v7 = vadd.f32 %v2371_v2, %v2200_v36  ;;  %v6464_v48 = vadd.f32 %v2923_v31, %v6366_v19  ;;  %v1152_v29 = vmul.f32 1.0614054, %v6460_v57  ;;  %v1258_v26 = vmul.f32 %v6409_v44, %v1204_v11  ;;  %v9816_v11 = vld [vmem:[#allocation7_spill] sm:$0xff] }
 0x14e   : > { %v1205_v22 = vadd.f32 -1.4531521, %v1151_v56  ;;  %5497 = vrcp.f32 %v956_v15  ;;  %v771_v33 = vmul.f32 0.5, %v6095_v52  ;;  %v2013_v19 = vsub.f32 0.0, %v1905_v49 }
 0x14f   : > { %9812 = vst [vmem:[#allocation26_spill] sm:$0xff] %v6464_v48  ;;  %v6468_v59 = vadd.f32 %v2616_v9, %v2477_v7  ;;  %v1206_v36 = vadd.f32 -1.4531521, %v1152_v29  ;;  %v6476_v16 = vmul.f32 0.5, %v6112_v62  ;;  %v1636_v41 = vsub.f32 0.0, %v6321_v20 }
 0x150   : > { %v6471_v58 = vpop.eup %5493  ;;  %v6481_v2 = vmul.f32 0.70710677, %v6173_v17  ;;  %v6483_v56 = vmul.f32 %v2119_v37, %v769_v43  ;;  %v6485_v15 = vmul.f32 %v2120_v6, %v770_v35  ;;  %v6489_v8 = vmul.f32 0.70710677, %v9816_v11 }
 0x151   : > { %9813 = vst [vmem:[#allocation27_spill] sm:$0xff] %v6468_v59  ;;  %v1117_v27 = vmul.f32 1.0614054, %v6471_v58  ;;  %v1260_v52 = vmul.f32 %v6460_v57, %v1206_v36  ;;  %v6493_v62 = vmul.f32 %v6336_v38, %v6312_v30  ;;  %v6497_v12 = vmul.f32 %v6386_v42, %v6312_v30  ;;  %v6504_v6 = vpop.eup %5495 }
 0x152   : > { %9814 = vst [vmem:[#allocation28_spill] sm:$0xff] %v6483_v56  ;;  %9815 = vst [vmem:[#allocation29_spill] sm:$0xff] %v6485_v15  ;;  %v1312_v9 = vadd.f32 1.4214138, %v1258_v26  ;;  %v1259_v31 = vmul.f32 %v6434_v14, %v1205_v22  ;;  %v2067_v43 = vsel %vm1959_vm12, %v2013_v19, %v1905_v49  ;;  %v1638_v7 = vsub.f32 0.0, %v6377_v53  ;;  %v6511_v26 = vpop.f32.mrb[32].mxu0 }
 0x153   : > { %9817 = vst [vmem:[#allocation7_spill] sm:$0xff] %v6493_v62  ;;  %9818 = vst [vmem:[#allocation30_spill] sm:$0xff] %v6497_v12  ;;  %v1171_v37 = vadd.f32 -1.4531521, %v1117_v27  ;;  %v6502_v35 = vand.u32 2147483647, %v6481_v2  ;;  %v1690_v29 = vmul.f32 %v1636_v41, %v6321_v20  ;;  %v6515_v49 = vmul.f32 %v6390_v47, %v6312_v30 }
 0x154   : > { %v1637_v36 = vsub.f32 0.0, %v6325_v5  ;;  %v1314_v1 = vadd.f32 1.4214138, %v1260_v52  ;;  %v6509_v25 = vand.u32 2147483647, %v6489_v8  ;;  %9819 = vst [vmem:[#allocation31_spill] sm:$0xff] %v6511_v26  ;;  %v1366_v41 = vmul.f32 %v6409_v44, %v1312_v9 }
 0x155   : > { %9820 = vst [vmem:[#allocation32_spill] sm:$0xff] %v6515_v49  ;;  %v1153_v22 = vmul.f32 1.0614054, %v6504_v6  ;;  %v1604_v19 = vsub.f32 0.0, %v6424_v63  ;;  %v938_v27 = vmul.f32 0.3275911, %v6502_v35  ;;  %v1692_v23 = vmul.f32 %v1638_v7, %v6377_v53 }
 0x156   : > { %v5244_v15 = vpop.f32.mrb[33].mxu0  ;;  %v2121_v20 = vadd.f32 1.0, %v2067_v43  ;;  %v1313_v52 = vadd.f32 1.4214138, %v1259_v31  ;;  %v903_v56 = vmul.f32 0.3275911, %v6509_v25  ;;  %v1225_v30 = vmul.f32 %v6471_v58, %v1171_v37 }
 0x157   : > { %v992_v32 = vadd.f32 1.0, %v938_v27  ;;  %v1783_v49 = vmul.f32 1.442695, %v1690_v29  ;;  %v1691_v28 = vmul.f32 %v1637_v36, %v6325_v5  ;;  %v1368_v15 = vmul.f32 %v6460_v57, %v1314_v1 }
 0x158   : > { %v6525_v48 = vpop.eup %5497  ;;  %v957_v43 = vadd.f32 1.0, %v903_v56  ;;  %v1207_v62 = vadd.f32 -1.4531521, %v1153_v22  ;;  %v1658_v31 = vmul.f32 %v1604_v19, %v6424_v63  ;;  %v6531_v59 = vmul.f32 %v2121_v20, %v771_v33  ;;  %v9822_v20 = vld [vmem:[#allocation8_spill] sm:$0xff] }
 0x159   : > { %v1118_v9 = vmul.f32 1.0614054, %v6525_v48  ;;  %5499 = vrcp.f32 %v992_v32  ;;  %v1420_v53 = vadd.f32 -0.28449672, %v1366_v41  ;;  %v6534_v7 = vmul.f32 0.5, %v6121_v10 }
 0x15a   : > { %9821 = vst [vmem:[#allocation33_spill] sm:$0xff] %v6531_v59  ;;  %v1367_v37 = vmul.f32 %v6434_v14, %v1313_v52  ;;  %v1787_v29 = vmul.f32 1.442695, %v1692_v23  ;;  %v1279_v27 = vadd.f32 1.4214138, %v1225_v30  ;;  %5501 = vrcp.f32 %v957_v43 }
 0x15b   : > { %v1172_v5 = vadd.f32 -1.4531521, %v1118_v9  ;;  %v1785_v1 = vmul.f32 1.442695, %v1691_v28  ;;  %v6538_v56 = vmul.f32 0.5, %v6139_v24  ;;  %v1603_v63 = vsub.f32 0.0, %v6394_v54 }
 0x15c   : > { %v1422_v36 = vadd.f32 -0.28449672, %v1368_v15  ;;  %5503 = vpow2.f32 %v1783_v49  ;;  %v1261_v32 = vmul.f32 %v6504_v6, %v1207_v62  ;;  %v1719_v10 = vmul.f32 1.442695, %v1658_v31  ;;  %v6558_v15 = vpop.f32.mrb[32].mxu1 }
 0x15d   : > { %v1226_v33 = vmul.f32 %v6525_v48, %v1172_v5  ;;  %v1474_v22 = vmul.f32 %v6409_v44, %v1420_v53  ;;  %v1421_v19 = vadd.f32 -0.28449672, %v1367_v37  ;;  %v1639_v23 = vsub.f32 0.0, %v6404_v34  ;;  %9824 = vst [vmem:[#allocation34_spill] sm:$0xff] %v6558_v15  ;;  %v5316_v53 = vpop.f32.mrb[33].mxu1 }
 0x15e   : > { %v6546_v41 = vmul.f32 0.70710677, %v9822_v20  ;;  %v6550_v24 = vmul.f32 %v6195_v60, %v6531_v59  ;;  %5505 = vpow2.f32 %v1787_v29  ;;  %v1333_v28 = vmul.f32 %v6471_v58, %v1279_v27 }
 0x15f   : > { %v1280_v49 = vadd.f32 1.4214138, %v1226_v33  ;;  %5507 = vpow2.f32 %v1785_v1  ;;  %v1476_v62 = vmul.f32 %v6460_v57, %v1422_v36  ;;  %v1657_v52 = vmul.f32 %v1603_v63, %v6394_v54 }
 0x160   : > { %9823 = vst [vmem:[#allocation8_spill] sm:$0xff] %v6550_v24  ;;  %v6556_v30 = vand.u32 2147483647, %v6546_v41  ;;  %v6562_v43 = vmul.f32 %v6227_v3, %v6531_v59  ;;  %v1315_v9 = vadd.f32 1.4214138, %v1261_v32  ;;  %5509 = vpow2.f32 %v1719_v10 }
 0x161   : > { %v1334_v31 = vmul.f32 %v6525_v48, %v1280_v49  ;;  %v1528_v37 = vadd.f32 0.2548296, %v1474_v22  ;;  %v1475_v29 = vmul.f32 %v6434_v14, %v1421_v19  ;;  %v1693_v27 = vmul.f32 %v1639_v23, %v6404_v34  ;;  %v6589_v23 = vpop.f32.mrb[34].mxu0 }
 0x162   : > { %9825 = vst [vmem:[#allocation35_spill] sm:$0xff] %v6562_v43  ;;  %v939_v54 = vmul.f32 0.3275911, %v6556_v30  ;;  %v6572_v1 = vmul.f32 %v6386_v42, %v6531_v59  ;;  %v1387_v36 = vadd.f32 -0.28449672, %v1333_v28  ;;  %v1605_v32 = vsub.f32 0.0, %v6509_v25 }
 0x163   : > { %v6568_v5 = vpop.eup %5499  ;;  %v1388_v63 = vadd.f32 -0.28449672, %v1334_v31  ;;  %v6577_v33 = vmul.f32 %v6390_v47, %v6531_v59  ;;  %v1530_v10 = vadd.f32 0.2548296, %v1476_v62  ;;  %v1717_v22 = vmul.f32 1.442695, %v1657_v52 }
 0x164   : > { %9826 = vst [vmem:[#allocation36_spill] sm:$0xff] %v6572_v1  ;;  %v993_v19 = vadd.f32 1.0, %v939_v54  ;;  %v6579_v34 = vpop.eup %5501  ;;  %v1369_v49 = vmul.f32 %v6504_v6, %v1315_v9  ;;  %v1154_v28 = vmul.f32 1.0614054, %v6568_v5  ;;  %v1582_v31 = vmul.f32 %v6409_v44, %v1528_v37  ;;  %9828 = vst [vmem:[#allocation38_spill] sm:$0xff] %v6589_v23  ;;  %v5245_v44 = vpop.f32.mrb[35].mxu0 }
 0x165   : > { %9827 = vst [vmem:[#allocation37_spill] sm:$0xff] %v6577_v33  ;;  %v1442_v53 = vmul.f32 %v6525_v48, %v1388_v63  ;;  %v1529_v12 = vadd.f32 0.2548296, %v1475_v29  ;;  %v1789_v15 = vmul.f32 1.442695, %v1693_v27  ;;  %v1441_v62 = vmul.f32 %v6471_v58, %v1387_v36  ;;  %v6658_v21 = vpop.f32.mrb[36].mxu0 }
 0x166   : > { %v1119_v59 = vmul.f32 1.0614054, %v6579_v34  ;;  %v5504_v33 = vpop.eup %5503  ;;  %v1659_v54 = vmul.f32 %v1605_v32, %v6509_v25  ;;  %5511 = vrcp.f32 %v993_v19  ;;  %v1584_v63 = vmul.f32 %v6460_v57, %v1530_v10 }
 0x167   : > { %v1496_v52 = vadd.f32 0.2548296, %v1442_v53  ;;  %5513 = vpow2.f32 %v1717_v22  ;;  %v1423_v27 = vadd.f32 -0.28449672, %v1369_v49  ;;  %v1208_v36 = vadd.f32 -1.4531521, %v1154_v28 }
 0x168   : > { %v1173_v24 = vadd.f32 -1.4531521, %v1119_v59  ;;  %v5506_v37 = vpop.eup %5505  ;;  %v6595_v38 = vmul.f32 %v5504_v33, %v1582_v31  ;;  %v6598_v25 = vmul.f32 0.5, %v6148_v46  ;;  %v6601_v32 = vmul.f32 0.5, %v6156_v51 }
 0x169   : > { %v1550_v26 = vmul.f32 %v6525_v48, %v1496_v52  ;;  %v5508_v53 = vpop.eup %5507  ;;  %v6604_v57 = vmul.f32 0.5, %v6166_v4  ;;  %v1583_v10 = vmul.f32 %v6434_v14, %v1529_v12  ;;  %v1495_v22 = vadd.f32 0.2548296, %v1441_v62 }
 0x16a   : > { %v5510_v59 = vpop.eup %5509  ;;  %5515 = vpow2.f32 %v1789_v15  ;;  %v1721_v19 = vmul.f32 1.442695, %v1659_v54  ;;  %vm1960_vm13 = vcmp.lt.f32.partialorder %v6307_v13, 0.0  ;;  %v1854_v48 = vmul.f32 %v5506_v37, %v1584_v63  ;;  %v6619_v15 = vpop.f32.mrb[34].mxu1 }
 0x16b   : > { %v1820_v33 = vmul.f32 %v5510_v59, %v1550_v26  ;;  %v6609_v49 = vmul.f32 0.5, %v6173_v17  ;;  %v1227_v46 = vmul.f32 %v6579_v34, %v1173_v24  ;;  %vm1962_vm14 = vcmp.lt.f32.partialorder %v6362_v0, 0.0  ;;  %9829 = vst [vmem:[#allocation39_spill] sm:$0xff] %v6619_v15  ;;  %v9830_v24 = vld [vmem:[#allocation9_spill] sm:$0xff]  ;;  %v5317_v37 = vpop.f32.mrb[35].mxu1 }
 0x16c   : > { %v1477_v51 = vmul.f32 %v6504_v6, %v1423_v27  ;;  %v1262_v4 = vmul.f32 %v6568_v5, %v1208_v36  ;;  %v1640_v14 = vsub.f32 0.0, %v6502_v35  ;;  %v6617_v12 = vmul.f32 0.5, %v9816_v11  ;;  %v9831_v11 = vld [vmem:[#allocation10_spill] sm:$0xff] }
 0x16d   : > { %v1906_v26 = vsub.f32 1.0, %v6595_v38  ;;  %v1281_v28 = vadd.f32 1.4214138, %v1227_v46  ;;  %v6623_v17 = vmul.f32 0.5, %v9822_v20  ;;  %v6626_v31 = vmul.f32 0.70710677, %v9830_v24 }
 0x16e   : > { %v6628_v62 = vmul.f32 %v5508_v53, %v1583_v10  ;;  %v1549_v52 = vmul.f32 %v6471_v58, %v1495_v22  ;;  %vm1928_vm15 = vcmp.lt.f32.partialorder %v6407_v55, 0.0  ;;  %5517 = vpow2.f32 %v1721_v19 }
 0x16f   : > { %v6633_v54 = vmul.f32 0.70710677, %v9831_v11  ;;  %v1908_v63 = vsub.f32 1.0, %v1854_v48  ;;  %v1874_v44 = vsub.f32 1.0, %v1820_v33  ;;  %v1335_v38 = vmul.f32 %v6579_v34, %v1281_v28 }
 0x170   : > { %v6637_v20 = vand.u32 2147483647, %v6626_v31  ;;  %v6639_v27 = vpop.eup %5511  ;;  %vm1961_vm0 = vcmp.lt.f32.partialorder %v6310_v61, 0.0  ;;  %v1531_v36 = vadd.f32 0.2548296, %v1477_v51  ;;  %v1694_v53 = vmul.f32 %v1640_v14, %v6502_v35 }
 0x171   : > { %9832 = vst [vmem:[#allocation9_spill] sm:$0xff] %v6633_v54  ;;  %v1316_v58 = vadd.f32 1.4214138, %v1262_v4  ;;  %v6644_v59 = vand.u32 2147483647, %v6633_v54  ;;  %v5514_v10 = vpop.eup %5513  ;;  %v2014_v22 = vsub.f32 0.0, %v1906_v26 }
 0x172   : > { %v1389_v19 = vadd.f32 -0.28449672, %v1335_v38  ;;  %v1155_v48 = vmul.f32 1.0614054, %v6639_v27  ;;  %v1641_v33 = vsub.f32 0.0, %v6556_v30  ;;  %v1907_v46 = vsub.f32 1.0, %v6628_v62 }
 0x173   : > { %v6649_v28 = vmul.f32 %v5514_v10, %v1549_v52  ;;  %v904_v37 = vmul.f32 0.3275911, %v6637_v20  ;;  %v940_v51 = vmul.f32 0.3275911, %v6644_v59  ;;  %v2016_v4 = vsub.f32 0.0, %v1908_v63 }
 0x174   : > { %v1982_v35 = vsub.f32 0.0, %v1874_v44  ;;  %v1443_v14 = vmul.f32 %v6579_v34, %v1389_v19  ;;  %v1209_v9 = vadd.f32 -1.4531521, %v1155_v48  ;;  %v5516_v29 = vpop.eup %5515  ;;  %v1585_v38 = vmul.f32 %v6504_v6, %v1531_v36  ;;  %v5248_v6 = vpop.f32.mrb[37].mxu0 }
 0x175   : > { %v1370_v43 = vmul.f32 %v6568_v5, %v1316_v58  ;;  %v958_v1 = vadd.f32 1.0, %v904_v37  ;;  %v994_v15 = vadd.f32 1.0, %v940_v51  ;;  %v1791_v23 = vmul.f32 1.442695, %v1694_v53  ;;  %v6669_v53 = vpop.f32.mrb[38].mxu0 }
 0x176   : > { %v1497_v62 = vadd.f32 0.2548296, %v1443_v14  ;;  %v1263_v52 = vmul.f32 %v6639_v27, %v1209_v9  ;;  %v1695_v10 = vmul.f32 %v1641_v33, %v6556_v30  ;;  %v2068_v54 = vsel %vm1960_vm13, %v2014_v22, %v1906_v26  ;;  %v5249_v0 = vpop.f32.mrb[39].mxu0 }
 0x177   : > { %v2015_v19 = vsub.f32 0.0, %v1907_v46  ;;  %v1873_v48 = vsub.f32 1.0, %v6649_v28  ;;  %vm1929_vm2 = vcmp.lt.f32.partialorder %v6489_v8, 0.0  ;;  %5519 = vrcp.f32 %v958_v1 }
 0x178   : > { %v2070_v36 = vsel %vm1962_vm14, %v2016_v4, %v1908_v63  ;;  %v2036_v9 = vsel %vm1928_vm15, %v1982_v35, %v1874_v44  ;;  %v1551_v30 = vmul.f32 %v6579_v34, %v1497_v62  ;;  %v1317_v58 = vadd.f32 1.4214138, %v1263_v52  ;;  %v5518_v13 = vpop.eup %5517 }
 0x179   : > { %vm1927_vm3 = vcmp.lt.f32.partialorder %v6383_v40, 0.0  ;;  %v6672_v26 = vmul.f32 %v5516_v29, %v1585_v38  ;;  %v1424_v22 = vadd.f32 -0.28449672, %v1370_v43  ;;  %5521 = vrcp.f32 %v994_v15 }
 0x17a   : > { %v6675_v1 = vmul.f32 0.70710677, %v6229_v50  ;;  %v1821_v63 = vmul.f32 %v5518_v13, %v1551_v30  ;;  %v1371_v55 = vmul.f32 %v6639_v27, %v1317_v58  ;;  %v1793_v44 = vmul.f32 1.442695, %v1695_v10 }
 0x17b   : > { %v6679_v34 = vmul.f32 0.70710677, %v6233_v18  ;;  %v2122_v33 = vadd.f32 1.0, %v2068_v54  ;;  %v2090_v28 = vadd.f32 1.0, %v2036_v9  ;;  %5523 = vpow2.f32 %v1791_v23 }
 0x17c   : > { %v6682_v37 = vand.u32 2147483647, %v6675_v1  ;;  %v2069_v43 = vsel %vm1961_vm0, %v2015_v19, %v1907_v46  ;;  %v1875_v29 = vsub.f32 1.0, %v1821_v63  ;;  %v1425_v15 = vadd.f32 -0.28449672, %v1371_v55 }
 0x17d   : > { %v6687_v51 = vand.u32 2147483647, %v6679_v34  ;;  %v2124_v4 = vadd.f32 1.0, %v2070_v36  ;;  %v1981_v35 = vsub.f32 0.0, %v1873_v48  ;;  %vm1963_vm6 = vcmp.lt.f32.partialorder %v6397_v45, 0.0 }
 0x17e   : > { %v1478_v14 = vmul.f32 %v6568_v5, %v1424_v22  ;;  %v905_v54 = vmul.f32 0.3275911, %v6682_v37  ;;  %v1909_v23 = vsub.f32 1.0, %v6672_v26  ;;  %v1983_v38 = vsub.f32 0.0, %v1875_v29  ;;  %v6711_v26 = vpop.f32.mrb[40].mxu0 }
 0x17f   : > { %5525 = vpow2.f32 %v1793_v44  ;;  %v941_v61 = vmul.f32 0.3275911, %v6687_v51  ;;  %v6695_v46 = vmul.f32 %v2090_v28, %v6604_v57  ;;  %v1479_v62 = vmul.f32 %v6639_v27, %v1425_v15  ;;  %9836 = vst [vmem:[#allocation42_spill] sm:$0xff] %v6711_v26  ;;  %v5252_v0 = vpop.f32.mrb[41].mxu0 }
 0x180   : > { %v959_v52 = vadd.f32 1.0, %v905_v54  ;;  %v6699_v10 = vmul.f32 0.70710677, %v6237_v39  ;;  %v6702_v19 = vmul.f32 %v2122_v33, %v6476_v16  ;;  %v2123_v6 = vadd.f32 1.0, %v2069_v43  ;;  %v6728_v40 = vpop.f32.mrb[42].mxu0 }
 0x181   : > { %9833 = vst [vmem:[#allocation10_spill] sm:$0xff] %v6695_v46  ;;  %v2037_v36 = vsel %vm1929_vm2, %v1983_v38, %v1875_v29  ;;  %v995_v9 = vadd.f32 1.0, %v941_v61  ;;  %v6706_v30 = vpop.eup %5519  ;;  %v6709_v58 = vmul.f32 %v2124_v4, %v6538_v56  ;;  %v1532_v57 = vadd.f32 0.2548296, %v1478_v14  ;;  %9839 = vst [vmem:[#allocation45_spill] sm:$0xff] %v6728_v40  ;;  %v5253_v54 = vpop.f32.mrb[43].mxu0 }
 0x182   : > { %9834 = vst [vmem:[#allocation40_spill] sm:$0xff] %v6702_v19  ;;  %v2091_v13 = vadd.f32 1.0, %v2037_v36  ;;  %5527 = vrcp.f32 %v959_v52  ;;  %v2035_v22 = vsel %vm1927_vm3, %v1981_v35, %v1873_v48  ;;  %v1120_v16 = vmul.f32 1.0614054, %v6706_v30 }
 0x183   : > { %9835 = vst [vmem:[#allocation41_spill] sm:$0xff] %v6709_v58  ;;  %5529 = vrcp.f32 %v995_v9  ;;  %v6717_v8 = vand.u32 2147483647, %v6699_v10  ;;  %v6719_v63 = vpop.eup %5521  ;;  %v2017_v55 = vsub.f32 0.0, %v1909_v23  ;;  %v6726_v44 = vmul.f32 %v6386_v42, %v6695_v46 }
 0x184   : > { %v6722_v56 = vmul.f32 %v2091_v13, %v6617_v12  ;;  %v1533_v33 = vadd.f32 0.2548296, %v1479_v62  ;;  %v6731_v48 = vmul.f32 %v2123_v6, %v6534_v7  ;;  %v1174_v28 = vadd.f32 -1.4531521, %v1120_v16 }
 0x185   : > { %9838 = vst [vmem:[#allocation44_spill] sm:$0xff] %v6726_v44  ;;  %v1156_v43 = vmul.f32 1.0614054, %v6719_v63  ;;  %v906_v29 = vmul.f32 0.3275911, %v6717_v8  ;;  %v5524_v15 = vpop.eup %5523  ;;  %v6737_v12 = vmul.f32 %v6195_v60, %v6709_v58  ;;  %v2089_v4 = vadd.f32 1.0, %v2035_v22 }
 0x186   : > { %9837 = vst [vmem:[#allocation43_spill] sm:$0xff] %v6722_v56  ;;  %9840 = vst [vmem:[#allocation46_spill] sm:$0xff] %v6731_v48  ;;  %v1586_v35 = vmul.f32 %v6568_v5, %v1532_v57  ;;  %v2828_v14 = vmul.f32 %v6386_v42, %v6722_v56  ;;  %v6744_v7 = vmul.f32 %v6227_v3, %v6709_v58  ;;  %v9673_v5 = vrot.slane %v6726_v44, 1 }
 0x187   : > { %9841 = vst [vmem:[#allocation47_spill] sm:$0xff] %v6737_v12  ;;  %v6748_v38 = vmul.f32 %v6386_v42, %v6709_v58  ;;  %v1228_v61 = vmul.f32 %v6706_v30, %v1174_v28  ;;  %v1210_v62 = vadd.f32 -1.4531521, %v1156_v43  ;;  %v6753_v52 = vmul.f32 %v6390_v47, %v6709_v58 }
 0x188   : > { %9842 = vst [vmem:[#allocation48_spill] sm:$0xff] %v6744_v7  ;;  %v2927_v6 = vrot.slane %v2828_v14, 1  ;;  %v1587_v36 = vmul.f32 %v6639_v27, %v1533_v33  ;;  %v2071_v57 = vsel %vm1963_vm6, %v2017_v55, %v1909_v23  ;;  %v960_v16 = vadd.f32 1.0, %v906_v29 }
 0x189   : > { %9843 = vst [vmem:[#allocation49_spill] sm:$0xff] %v6748_v38  ;;  %9844 = vst [vmem:[#allocation50_spill] sm:$0xff] %v6753_v52  ;;  %v5526_v9 = vpop.eup %5525  ;;  %v1282_v13 = vadd.f32 1.4214138, %v1228_v61  ;;  %v1264_v22 = vmul.f32 %v6719_v63, %v1210_v62  ;;  %v6760_v0 = vmul.f32 %v5524_v15, %v1586_v35  ;;  %v1606_v43 = vsub.f32 0.0, %v6637_v20  ;;  %v9847_v35 = vld [vmem:[#allocation11_spill] sm:$0xff] }
 0x18a   : > { %v6765_v28 = vsel %vm2361_vm4, %v9673_v5, %v2927_v6  ;;  %v1642_v14 = vsub.f32 0.0, %v6644_v59  ;;  %v6771_v45 = vmul.f32 %v2089_v4, %v6598_v25  ;;  %v1607_v23 = vsub.f32 0.0, %v6682_v37 }
 0x18b   : > { %9845 = vst [vmem:[#allocation51_spill] sm:$0xff] %v6765_v28  ;;  %5531 = vrcp.f32 %v960_v16  ;;  %v1857_v15 = vmul.f32 %v5526_v9, %v1587_v36  ;;  %v6779_v54 = vmul.f32 0.70710677, %v9847_v35  ;;  %v2125_v62 = vadd.f32 1.0, %v2071_v57 }
 0x18c   : > { %9846 = vst [vmem:[#allocation52_spill] sm:$0xff] %v6771_v45  ;;  %v6774_v55 = vpop.eup %5527  ;;  %vm1964_vm7 = vcmp.lt.f32.partialorder %v6481_v2, 0.0  ;;  %v1336_v25 = vmul.f32 %v6706_v30, %v1282_v13  ;;  %v1318_v4 = vadd.f32 1.4214138, %v1264_v22  ;;  %v1910_v16 = vsub.f32 1.0, %v6760_v0  ;;  %v6796_v22 = vpop.f32.mrb[44].mxu0 }
 0x18d   : > { %v6781_v61 = vpop.eup %5529  ;;  %v1121_v6 = vmul.f32 1.0614054, %v6774_v55  ;;  %vm1965_vm8 = vcmp.lt.f32.partialorder %v6546_v41, 0.0  ;;  %v1660_v33 = vmul.f32 %v1606_v43, %v6637_v20  ;;  %v1696_v36 = vmul.f32 %v1642_v14, %v6644_v59  ;;  %9848 = vst [vmem:[#allocation11_spill] sm:$0xff] %v6796_v22  ;;  %v5256_v43 = vpop.f32.mrb[45].mxu0 }
 0x18e   : > { %v1157_v9 = vmul.f32 1.0614054, %v6781_v61  ;;  %v6792_v27 = vmul.f32 0.5, %v9830_v24  ;;  %v1661_v29 = vmul.f32 %v1607_v23, %v6682_v37  ;;  %v1643_v13 = vsub.f32 0.0, %v6687_v51  ;;  %v6812_v48 = vpop.f32.mrb[46].mxu0 }
 0x18f   : > { %v1175_v57 = vadd.f32 -1.4531521, %v1121_v6  ;;  %v1911_v5 = vsub.f32 1.0, %v1857_v15  ;;  %v6799_v0 = vmul.f32 0.5, %v9831_v11  ;;  %v1608_v20 = vsub.f32 0.0, %v6717_v8  ;;  %9850 = vst [vmem:[#allocation54_spill] sm:$0xff] %v6812_v48 }
 0x190   : > { %v6803_v59 = vand.u32 2147483647, %v6779_v54  ;;  %v1390_v14 = vadd.f32 -0.28449672, %v1336_v25  ;;  %v1372_v24 = vmul.f32 %v6719_v63, %v1318_v4  ;;  %v1211_v37 = vadd.f32 -1.4531521, %v1157_v9 }
 0x191   : > { %v1229_v6 = vmul.f32 %v6774_v55, %v1175_v57  ;;  %v6808_v23 = vmul.f32 %v2125_v62, %v6601_v32  ;;  %v2018_v7 = vsub.f32 0.0, %v1910_v16  ;;  %v1723_v15 = vmul.f32 1.442695, %v1660_v33  ;;  %v9851_v9 = vld [vmem:[#allocation12_spill] sm:$0xff] }
 0x192   : > { %v1795_v12 = vmul.f32 1.442695, %v1696_v36  ;;  %v1725_v38 = vmul.f32 1.442695, %v1661_v29  ;;  %v1265_v52 = vmul.f32 %v6781_v61, %v1211_v37  ;;  %v1697_v58 = vmul.f32 %v1643_v13, %v6687_v51 }
 0x193   : > { %9849 = vst [vmem:[#allocation53_spill] sm:$0xff] %v6808_v23  ;;  %v1283_v11 = vadd.f32 1.4214138, %v1229_v6  ;;  %v2019_v25 = vsub.f32 0.0, %v1911_v5  ;;  %v1662_v4 = vmul.f32 %v1608_v20, %v6717_v8  ;;  %v942_v57 = vmul.f32 0.3275911, %v6803_v59 }
 0x194   : > { %v6817_v43 = vmul.f32 0.70710677, %v9851_v9  ;;  %v1444_v33 = vmul.f32 %v6706_v30, %v1390_v14  ;;  %v1426_v62 = vadd.f32 -0.28449672, %v1372_v24  ;;  %v1319_v36 = vadd.f32 1.4214138, %v1265_v52 }
 0x195   : > { %v6819_v32 = vpop.eup %5531  ;;  %v1337_v29 = vmul.f32 %v6774_v55, %v1283_v11  ;;  %v5257_v6 = vpop.f32.mrb[47].mxu0  ;;  %5533 = vpow2.f32 %v1723_v15  ;;  %v996_v13 = vadd.f32 1.0, %v942_v57  ;;  %v1797_v23 = vmul.f32 1.442695, %v1697_v58 }
 0x196   : > { %v1122_v51 = vmul.f32 1.0614054, %v6819_v32  ;;  %v6825_v8 = vand.u32 2147483647, %v6817_v43  ;;  %5535 = vpow2.f32 %v1795_v12  ;;  %v1373_v37 = vmul.f32 %v6781_v61, %v1319_v36 }
 0x197   : > { %v1391_v20 = vadd.f32 -0.28449672, %v1337_v29  ;;  %v2072_v14 = vsel %vm1964_vm7, %v2018_v7, %v1910_v16  ;;  %5537 = vrcp.f32 %v996_v13  ;;  %v2073_v15 = vsel %vm1965_vm8, %v2019_v25, %v1911_v5 }
 0x198   : > { %v1176_v24 = vadd.f32 -1.4531521, %v1122_v51  ;;  %v907_v52 = vmul.f32 0.3275911, %v6825_v8  ;;  %v1498_v11 = vadd.f32 0.2548296, %v1444_v33  ;;  %5539 = vpow2.f32 %v1725_v38 }
 0x199   : > { %v1727_v57 = vmul.f32 1.442695, %v1662_v4  ;;  %v1480_v6 = vmul.f32 %v6719_v63, %v1426_v62  ;;  %v1427_v12 = vadd.f32 -0.28449672, %v1373_v37  ;;  %v2126_v58 = vadd.f32 1.0, %v2072_v14  ;;  %v9856_v37 = vld [vmem:[#allocation13_spill] sm:$0xff] }
 0x19a   : > { %v1230_v29 = vmul.f32 %v6819_v32, %v1176_v24  ;;  %v961_v36 = vadd.f32 1.0, %v907_v52  ;;  %v6836_v2 = vmul.f32 0.5, %v6229_v50  ;;  %v1445_v7 = vmul.f32 %v6774_v55, %v1391_v20 }
 0x19b   : > { %5541 = vpow2.f32 %v1797_v23  ;;  %v6841_v41 = vmul.f32 %v6195_v60, %v6722_v56  ;;  %v6845_v38 = vmul.f32 %v6227_v3, %v6722_v56  ;;  %v6849_v16 = vmul.f32 %v6390_v47, %v6722_v56  ;;  %v9863_v56 = vld [vmem:[#allocation9_spill] sm:$0xff] }
 0x19c   : > { %v1284_v5 = vadd.f32 1.4214138, %v1230_v29  ;;  %5543 = vrcp.f32 %v961_v36  ;;  %v2127_v25 = vadd.f32 1.0, %v2073_v15  ;;  %v1552_v50 = vmul.f32 %v6706_v30, %v1498_v11  ;;  %v9857_v15 = vld [vmem:[#allocation14_spill] sm:$0xff] }
 0x19d   : > { %9852 = vst [vmem:[#allocation12_spill] sm:$0xff] %v6841_v41  ;;  %9853 = vst [vmem:[#allocation55_spill] sm:$0xff] %v6845_v38  ;;  %5545 = vpow2.f32 %v1727_v57  ;;  %v1534_v4 = vadd.f32 0.2548296, %v1480_v6  ;;  %v6853_v23 = vmul.f32 0.5, %v6233_v18  ;;  %v1481_v33 = vmul.f32 %v6781_v61, %v1427_v12 }
 0x19e   : > { %9854 = vst [vmem:[#allocation56_spill] sm:$0xff] %v6849_v16  ;;  %v1338_v62 = vmul.f32 %v6819_v32, %v1284_v5  ;;  %v6858_v51 = vmul.f32 %v2126_v58, %v6609_v49  ;;  %v1499_v13 = vadd.f32 0.2548296, %v1445_v7  ;;  %v6861_v20 = vmul.f32 0.5, %v6237_v39 }
 0x19f   : > { %v6864_v14 = vmul.f32 0.70710677, %v9856_v37  ;;  %v5534_v30 = vpop.eup %5533  ;;  %v6869_v11 = vmul.f32 0.70710677, %v9857_v15  ;;  %v6873_v6 = vmul.f32 %v2127_v25, %v6623_v17  ;;  %v1588_v36 = vmul.f32 %v6719_v63, %v1534_v4  ;;  %v9859_v17 = vld [vmem:[#allocation5_spill] sm:$0xff] }
 0x1a0   : > { %9855 = vst [vmem:[#allocation57_spill] sm:$0xff] %v6858_v51  ;;  %v1392_v52 = vadd.f32 -0.28449672, %v1338_v62  ;;  %v5536_v57 = vpop.eup %5535  ;;  %v6875_v39 = vmul.f32 %v5534_v30, %v1552_v50  ;;  %v1535_v58 = vadd.f32 0.2548296, %v1481_v33  ;;  %v1553_v18 = vmul.f32 %v6774_v55, %v1499_v13 }
 0x1a1   : > { %9858 = vst [vmem:[#allocation13_spill] sm:$0xff] %v6873_v6  ;;  %v6878_v12 = vand.u32 2147483647, %v6864_v14  ;;  %v6880_v29 = vpop.eup %5537  ;;  %v6885_v5 = vand.u32 2147483647, %v6869_v11  ;;  %v3377_v25 = vsub.s32 7, %v9859_v17  ;;  %v6893_v24 = vmul.f32 %v6195_v60, %v6873_v6 }
 0x1a2   : > { %v1446_v7 = vmul.f32 %v6819_v32, %v1392_v52  ;;  %v5540_v62 = vpop.eup %5539  ;;  %v1158_v50 = vmul.f32 1.0614054, %v6880_v29  ;;  %v6897_v63 = vmul.f32 %v6227_v3, %v6873_v6  ;;  %v6900_v33 = vmul.f32 0.5, %v9847_v35 }
 0x1a3   : > { %v943_v30 = vmul.f32 0.3275911, %v6878_v12  ;;  %9860 = vst [vmem:[#allocation14_spill] sm:$0xff] %v6893_v24  ;;  %vm1930_vm9 = vcmp.lt.f32.partialorder %v6626_v31, 0.0  ;;  %v1644_v13 = vsub.f32 0.0, %v6803_v59  ;;  %v1876_v38 = vsub.f32 1.0, %v6875_v39 }
 0x1a4   : > { %9861 = vst [vmem:[#allocation5_spill] sm:$0xff] %v6897_v63  ;;  %v1500_v4 = vadd.f32 0.2548296, %v1446_v7  ;;  %v1212_v55 = vadd.f32 -1.4531521, %v1158_v50  ;;  %v6908_v41 = vmul.f32 %v5536_v57, %v1588_v36  ;;  %v1589_v7 = vmul.f32 %v6781_v61, %v1535_v58  ;;  %v6922_v61 = vld [vmem:[%s9631_s2] sm:$0xff] }
 0x1a5   : > { %v5542_v52 = vpop.eup %5541  ;;  %v997_v49 = vadd.f32 1.0, %v943_v30  ;;  %v908_v51 = vmul.f32 0.3275911, %v6885_v5  ;;  %v1823_v28 = vmul.f32 %v5540_v62, %v1553_v18  ;;  %v6916_v30 = vmul.f32 %v6386_v42, %v6873_v6 }
 0x1a6   : > { %v6905_v19 = vpop.eup %5543  ;;  %v1554_v35 = vmul.f32 %v6819_v32, %v1500_v4  ;;  %v1266_v44 = vmul.f32 %v6880_v29, %v1212_v55  ;;  %vm1966_vm10 = vcmp.lt.f32.partialorder %v9863_v56, 0.0  ;;  %v6925_v32 = vrot.slane %v6922_v61, %v3377_v25  ;;  %v9865_v55 = vld [vmem:[#allocation15_spill] sm:$0xff] }
 0x1a7   : > { %v5546_v16 = vpop.eup %5545  ;;  %v1123_v50 = vmul.f32 1.0614054, %v6905_v19  ;;  %5547 = vrcp.f32 %v997_v49  ;;  %9862 = vst [vmem:[#allocation58_spill] sm:$0xff] %v6916_v30  ;;  %v6928_v18 = vmul.f32 0.5, %v9851_v9  ;;  %v6933_v49 = vmul.f32 %v6390_v47, %v6873_v6 }
 0x1a8   : > { %v1824_v39 = vmul.f32 %v5546_v16, %v1554_v35  ;;  %v1320_v36 = vadd.f32 1.4214138, %v1266_v44  ;;  %v962_v58 = vadd.f32 1.0, %v908_v51  ;;  %v1984_v62 = vsub.f32 0.0, %v1876_v38  ;;  %v6944_v51 = vpop.f32.mrb[48].mxu0 }
 0x1a9   : > { %9864 = vst [vmem:[#allocation9_spill] sm:$0xff] %v6933_v49  ;;  %vm1931_vm11 = vcmp.lt.f32.partialorder %v6675_v1, 0.0  ;;  %v1859_v4 = vmul.f32 %v5542_v52, %v1589_v7  ;;  %v6938_v25 = vmul.f32 0.70710677, %v9865_v55  ;;  %v1912_v9 = vsub.f32 1.0, %v6908_v41  ;;  %9866 = vst [vmem:[#allocation15_spill] sm:$0xff] %v6944_v51 }
 0x1aa   : > { %v1877_v35 = vsub.f32 1.0, %v1823_v28  ;;  %vm1967_vm12 = vcmp.lt.f32.partialorder %v6679_v34, 0.0  ;;  %vm1932_vm13 = vcmp.lt.f32.partialorder %v6699_v10, 0.0  ;;  %v1698_v57 = vmul.f32 %v1644_v13, %v6803_v59  ;;  %v9867_v7 = vld [vmem:[#allocation17_spill] sm:$0xff]  ;;  %v5260_v59 = vpop.f32.mrb[49].mxu0 }
 0x1ab   : > { %v1177_v44 = vadd.f32 -1.4531521, %v1123_v50  ;;  %v1878_v16 = vsub.f32 1.0, %v1824_v39  ;;  %v1374_v63 = vmul.f32 %v6880_v29, %v1320_v36  ;;  %v6948_v52 = vand.u32 2147483647, %v6938_v25  ;;  %v6962_v6 = vpop.f32.mrb[50].mxu0 }
 0x1ac   : > { %v6951_v24 = vmul.f32 0.70710677, %v9867_v7  ;;  %v1609_v41 = vsub.f32 0.0, %v6825_v8  ;;  %v1645_v49 = vsub.f32 0.0, %v6878_v12  ;;  %5549 = vrcp.f32 %v962_v58  ;;  %9868 = vst [vmem:[#allocation17_spill] sm:$0xff] %v6962_v6  ;;  %v5261_v51 = vpop.f32.mrb[51].mxu0 }
 0x1ad   : > { %v2038_v13 = vsel %vm1930_vm9, %v1984_v62, %v1876_v38  ;;  %v1913_v50 = vsub.f32 1.0, %v1859_v4  ;;  %v944_v39 = vmul.f32 0.3275911, %v6948_v52  ;;  %v2020_v46 = vsub.f32 0.0, %v1912_v9 }
 0x1ae   : > { %v6960_v36 = vand.u32 2147483647, %v6951_v24  ;;  %v1985_v45 = vsub.f32 0.0, %v1877_v35  ;;  %v1799_v28 = vmul.f32 1.442695, %v1698_v57  ;;  %v1231_v30 = vmul.f32 %v6905_v19, %v1177_v44 }
 0x1af   : > { %v1986_v48 = vsub.f32 0.0, %v1878_v16  ;;  %v1428_v58 = vadd.f32 -0.28449672, %v1374_v63  ;;  %v998_v59 = vadd.f32 1.0, %v944_v39  ;;  %v2092_v62 = vadd.f32 1.0, %v2038_v13  ;;  %v9869_v39 = vld [vmem:[#allocation18_spill] sm:$0xff] }
 0x1b0   : > { %v909_v31 = vmul.f32 0.3275911, %v6960_v36  ;;  %v6969_v4 = vmul.f32 0.5, %v9856_v37  ;;  %v1699_v22 = vmul.f32 %v1645_v49, %v6878_v12  ;;  %v1610_v6 = vsub.f32 0.0, %v6885_v5 }
 0x1b1   : > { %v6966_v38 = vpop.eup %5547  ;;  %v2021_v40 = vsub.f32 0.0, %v1913_v50  ;;  %v1663_v57 = vmul.f32 %v1609_v41, %v6825_v8  ;;  %5551 = vrcp.f32 %v998_v59  ;;  %v2074_v63 = vsel %vm1966_vm10, %v2020_v46, %v1912_v9 }
 0x1b2   : > { %v1159_v44 = vmul.f32 1.0614054, %v6966_v38  ;;  %v2039_v51 = vsel %vm1931_vm11, %v1985_v45, %v1877_v35  ;;  %5553 = vpow2.f32 %v1799_v28  ;;  %v1285_v13 = vadd.f32 1.4214138, %v1231_v30  ;;  %v6998_v28 = vpop.f32.mrb[52].mxu0 }
 0x1b3   : > { %v2040_v37 = vsel %vm1932_vm13, %v1986_v48, %v1878_v16  ;;  %v1482_v12 = vmul.f32 %v6880_v29, %v1428_v58  ;;  %v963_v49 = vadd.f32 1.0, %v909_v31  ;;  %v6983_v26 = vmul.f32 0.70710677, %v9869_v39  ;;  %9871 = vst [vmem:[#allocation59_spill] sm:$0xff] %v6998_v28 }
 0x1b4   : > { %v6986_v8 = vmul.f32 %v2092_v62, %v6792_v27  ;;  %v1213_v41 = vadd.f32 -1.4531521, %v1159_v44  ;;  %v1801_v56 = vmul.f32 1.442695, %v1699_v22  ;;  %v1664_v46 = vmul.f32 %v1610_v6, %v6885_v5 }
 0x1b5   : > { %v2128_v1 = vadd.f32 1.0, %v2074_v63  ;;  %v2075_v45 = vsel %vm1967_vm12, %v2021_v40, %v1913_v50  ;;  %v1729_v30 = vmul.f32 1.442695, %v1663_v57  ;;  %v6992_v10 = vmul.f32 0.5, %v9857_v15  ;;  %v5264_v40 = vpop.f32.mrb[53].mxu0 }
 0x1b6   : > { %9870 = vst [vmem:[#allocation18_spill] sm:$0xff] %v6986_v8  ;;  %v6994_v48 = vpop.eup %5549  ;;  %v2093_v16 = vadd.f32 1.0, %v2039_v51  ;;  %v2094_v9 = vadd.f32 1.0, %v2040_v37  ;;  %v1267_v35 = vmul.f32 %v6966_v38, %v1213_v41  ;;  %v1646_v27 = vsub.f32 0.0, %v6948_v52  ;;  %v7006_v62 = vpop.f32.mrb[54].mxu0 }
 0x1b7   : > { %v1536_v22 = vadd.f32 0.2548296, %v1482_v12  ;;  %v1339_v6 = vmul.f32 %v6905_v19, %v1285_v13  ;;  %5555 = vrcp.f32 %v963_v49  ;;  %v891_v34 = vand.u32 2147483647, %v6983_v26  ;;  %9873 = vst [vmem:[#allocation61_spill] sm:$0xff] %v7006_v62  ;;  %v5265_v13 = vpop.f32.mrb[55].mxu0 }
 0x1b8   : > { %v2129_v5 = vadd.f32 1.0, %v2075_v45  ;;  %v1321_v15 = vadd.f32 1.4214138, %v1267_v35  ;;  %5557 = vpow2.f32 %v1801_v56  ;;  %v1731_v50 = vmul.f32 1.442695, %v1664_v46 }
 0x1b9   : > { %v7003_v58 = vmul.f32 %v2128_v1, %v6799_v0  ;;  %5559 = vpow2.f32 %v1729_v30  ;;  %v1124_v59 = vmul.f32 1.0614054, %v6994_v48  ;;  %v945_v31 = vmul.f32 0.3275911, %v891_v34 }
 0x1ba   : > { %v7009_v57 = vmul.f32 %v2094_v9, %v6861_v20  ;;  %v1375_v44 = vmul.f32 %v6966_v38, %v1321_v15  ;;  %v7013_v63 = vmul.f32 0.5, %v9865_v55  ;;  %v1700_v51 = vmul.f32 %v1646_v27, %v6948_v52  ;;  %v9880_v15 = vld [vmem:[#allocation20_spill] sm:$0xff] }
 0x1bb   : > { %9872 = vst [vmem:[#allocation60_spill] sm:$0xff] %v7003_v58  ;;  %v7016_v37 = vpop.eup %5551  ;;  %v7019_v0 = vmul.f32 %v2093_v16, %v6836_v2  ;;  %v1590_v12 = vmul.f32 %v6880_v29, %v1536_v22  ;;  %v1393_v49 = vadd.f32 -0.28449672, %v1339_v6  ;;  %v999_v41 = vadd.f32 1.0, %v945_v31  ;;  %v7035_v16 = vpop.f32.mrb[56].mxu0 }
 0x1bc   : > { %v5554_v56 = vpop.eup %5553  ;;  %v7023_v20 = vmul.f32 %v2129_v5, %v6853_v23  ;;  %v1429_v46 = vadd.f32 -0.28449672, %v1375_v44  ;;  %5561 = vpow2.f32 %v1731_v50  ;;  %v1611_v55 = vsub.f32 0.0, %v6960_v36  ;;  %9877 = vst [vmem:[#allocation65_spill] sm:$0xff] %v7035_v16 }
 0x1bd   : > { %9874 = vst [vmem:[#allocation62_spill] sm:$0xff] %v7019_v0  ;;  %v1178_v1 = vadd.f32 -1.4531521, %v1124_v59  ;;  %v1160_v52 = vmul.f32 1.0614054, %v7016_v37  ;;  %v7028_v45 = vmul.f32 0.5, %v9867_v7  ;;  %5563 = vrcp.f32 %v999_v41 }
 0x1be   : > { %9875 = vst [vmem:[#allocation63_spill] sm:$0xff] %v7023_v20  ;;  %v7032_v2 = vmul.f32 %v6195_v60, %v7009_v57  ;;  %v1483_v29 = vmul.f32 %v6966_v38, %v1429_v46  ;;  %v1803_v30 = vmul.f32 1.442695, %v1700_v51  ;;  %v1647_v23 = vsub.f32 0.0, %v891_v34  ;;  %v5268_v7 = vpop.f32.mrb[57].mxu0  ;;  %v5443_v46 = vld [vmem:[%s9632_s3] sm:$0xff]  }
 0x1bf   : > { %v7037_v9 = vmul.f32 %v5554_v56, %v1590_v12  ;;  %v1447_v35 = vmul.f32 %v6905_v19, %v1393_v49  ;;  %v1214_v27 = vadd.f32 -1.4531521, %v1160_v52  ;;  %v7041_v22 = vmul.f32 0.5, %v9869_v39  ;;  %v7056_v59 = vpop.f32.mrb[58].mxu0  ;;  %5318 = vmatprep.subr.bf16.mxu1 %v5443_v46 }
 0x1c0   : > { %9876 = vst [vmem:[#allocation64_spill] sm:$0xff] %v7032_v2  ;;  %v7045_v6 = vmul.f32 %v6227_v3, %v7009_v57  ;;  %v7049_v40 = vmul.f32 %v6386_v42, %v7009_v57  ;;  %vm1969_vm14 = vcmp.lt.f32.partialorder %v6864_v14, 0.0  ;;  %v1665_v5 = vmul.f32 %v1611_v55, %v6960_v36  ;;  %9881 = vst [vmem:[#allocation20_spill] sm:$0xff] %v7056_v59  ;;  %v5269_v12 = vpop.f32.mrb[59].mxu0 }
 0x1c1   : > { %v7054_v50 = vmul.f32 0.70710677, %v9880_v15  ;;  %v7058_v39 = vpop.eup %5555  ;;  %v7062_v31 = vmul.f32 %v6390_v47, %v7009_v57  ;;  %v1537_v44 = vadd.f32 0.2548296, %v1483_v29  ;;  %v1232_v51 = vmul.f32 %v6994_v48, %v1178_v1  ;;  %5319 = vmatpush3.bf16.msra.mxu1 %v5443_v46  ;;  %v7095_v0 = vpop.f32.mrb[60].mxu0 }
 0x1c2   : > { %9878 = vst [vmem:[#allocation66_spill] sm:$0xff] %v7045_v6  ;;  %9879 = vst [vmem:[#allocation67_spill] sm:$0xff] %v7049_v40  ;;  %v1268_v13 = vmul.f32 %v7016_v37, %v1214_v27  ;;  %v5558_v49 = vpop.eup %5557  ;;  %5565 = vpow2.f32 %v1803_v30  ;;  %v1125_v41 = vmul.f32 1.0614054, %v7058_v39  ;;  %v1701_v56 = vmul.f32 %v1647_v23, %v891_v34  ;;  %v7083_v34 = vld [vmem:[%s9631_s2 + $0x8] ss:$0 sm:$0xff] }
 0x1c3   : > { %9882 = vst [vmem:[#allocation68_spill] sm:$0xff] %v7062_v31  ;;  %v5560_v55 = vpop.eup %5559  ;;  %v1501_v29 = vadd.f32 0.2548296, %v1447_v35  ;;  %v1591_v1 = vmul.f32 %v6966_v38, %v1537_v44  ;;  %v7075_v27 = vmul.f32 %v6925_v32, %v7009_v57  ;;  %v1733_v30 = vmul.f32 1.442695, %v1665_v5  ;;  %9884 = vst [vmem:[#allocation70_spill] sm:$0xff] %v7083_v34 }
 0x1c4   : > { %v1322_v7 = vadd.f32 1.4214138, %v1268_v13  ;;  %v1179_v12 = vadd.f32 -1.4531521, %v1125_v41  ;;  %v7078_v36 = vand.u32 2147483647, %v7054_v50 }
 0x1c5   : > { %9883 = vst [vmem:[#allocation69_spill] sm:$0xff] %v7075_v27  ;;  %vm1968_vm15 = vcmp.lt.f32.partialorder %v6779_v54, 0.0  ;;  %v1861_v23 = vmul.f32 %v5558_v49, %v1591_v1  ;;  %v1286_v38 = vadd.f32 1.4214138, %v1232_v51  ;;  %v9885_v44 = vld [vmem:[#allocation24_spill] sm:$0xff]  ;;  %v7101_v51 = vmul.f32 %v7083_v34, %v7009_v57  ;;  %v5444_v54 = vld [vmem:[%s9632_s3 + $0x8] sm:$0xff]  }
 0x1c6   : > { %v1376_v35 = vmul.f32 %v7016_v37, %v1322_v7  ;;  %v7088_v13 = vmul.f32 0.70710677, %v9885_v44  ;;  %v7090_v5 = vpop.eup %5561  ;;  %v1233_v52 = vmul.f32 %v7058_v39, %v1179_v12  ;;  %v1805_v2 = vmul.f32 1.442695, %v1701_v56  ;;  %9886 = vst [vmem:[#allocation24_spill] sm:$0xff] %v7095_v0  ;;  %v5272_v7 = vpop.f32.mrb[61].mxu0  ;;  %5320 = vmatprep.subr.bf16.mxu1 %v5444_v54 }
 0x1c7   : > { %v910_v31 = vmul.f32 0.3275911, %v7078_v36  ;;  %v7097_v8 = vpop.eup %5563  ;;  %9887 = vst [vmem:[#allocation71_spill] sm:$0xff] %v7101_v51  ;;  %v1915_v49 = vsub.f32 1.0, %v1861_v23  ;;  %v1555_v41 = vmul.f32 %v6905_v19, %v1501_v29  ;;  %v7108_v59 = vpop.f32.mrb[62].mxu0  ;;  %v9889_v0 = vsub.f32 1.0, %v7037_v9  ;;  %5321 = vmatpush3.bf16.msra.mxu1 %v5444_v54 }
 0x1c8   : > { %v1430_v1 = vadd.f32 -0.28449672, %v1376_v35  ;;  %v7104_v46 = vand.u32 2147483647, %v7088_v13  ;;  %v1287_v12 = vadd.f32 1.4214138, %v1233_v52  ;;  %v1340_v28 = vmul.f32 %v6994_v48, %v1286_v38 }
 0x1c9   : > { %v1161_v56 = vmul.f32 1.0614054, %v7097_v8  ;;  %v964_v6 = vadd.f32 1.0, %v910_v31  ;;  %9888 = vst [vmem:[#allocation72_spill] sm:$0xff] %v7108_v59  ;;  %v2022_v16 = vsub.f32 0.0, %v9889_v0  ;;  %v2023_v62 = vsub.f32 0.0, %v1915_v49 }
 0x1ca   : > { %v1484_v57 = vmul.f32 %v7016_v37, %v1430_v1  ;;  %v946_v23 = vmul.f32 0.3275911, %v7104_v46  ;;  %v5273_v35 = vpop.f32.mrb[63].mxu0  ;;  %vm1970_vm0 = vcmp.lt.f32.partialorder %v6938_v25, 0.0  ;;  %v1341_v19 = vmul.f32 %v7058_v39, %v1287_v12 }
 0x1cb   : > { %v1215_v52 = vadd.f32 -1.4531521, %v1161_v56  ;;  %5567 = vrcp.f32 %v964_v6  ;;  %v2077_v31 = vsel %vm1969_vm14, %v2023_v62, %v1915_v49  ;;  %v2310_v0 = vmul.f32 %v6195_v60, %v7003_v58 }
 0x1cc   : > { %v1538_v29 = vadd.f32 0.2548296, %v1484_v57  ;;  %v1000_v7 = vadd.f32 1.0, %v946_v23  ;;  %v5566_v1 = vpop.eup %5565  ;;  %v1395_v59 = vadd.f32 -0.28449672, %v1341_v19  ;;  %5569 = vpow2.f32 %v1805_v2  ;;  %v9890_v57 = vld [vmem:[#allocation6_spill] sm:$0xff] }
 0x1cd   : > { %v1269_v35 = vmul.f32 %v7097_v8, %v1215_v52  ;;  %v7124_v38 = vmul.f32 %v6195_v60, %v7023_v20  ;;  %v7129_v62 = vmul.f32 %v5560_v55, %v1555_v41  ;;  %v2131_v49 = vadd.f32 1.0, %v2077_v31 }
 0x1ce   : > { %v1592_v14 = vmul.f32 %v7016_v37, %v1538_v29  ;;  %5571 = vrcp.f32 %v1000_v7  ;;  %v2227_v23 = vmul.f32 %v9890_v57, %v7003_v58  ;;  %v1449_v2 = vmul.f32 %v7058_v39, %v1395_v59 }
 0x1cf   : > { %v1323_v56 = vadd.f32 1.4214138, %v1269_v35  ;;  %5573 = vpow2.f32 %v1733_v30  ;;  %v2437_v52 = vrot.slane %v2310_v0, 1  ;;  %v9891_v34 = vsub.f32 1.0, %v7037_v9 }
 0x1d0   : > { %v1862_v19 = vmul.f32 %v5566_v1, %v1592_v14  ;;  %v1394_v6 = vadd.f32 -0.28449672, %v1340_v28  ;;  %v9716_v55 = vrot.slane %v7124_v38, 1  ;;  %v1648_v31 = vsub.f32 0.0, %v7104_v46 }
 0x1d1   : > { %v2076_v12 = vsel %vm1968_vm15, %v2022_v16, %v9891_v34  ;;  %v1377_v37 = vmul.f32 %v7097_v8, %v1323_v56  ;;  %v2555_v29 = vmul.f32 %v6227_v3, %v7003_v58  ;;  %v7145_v59 = vmul.f32 %v6227_v3, %v7023_v20 }
 0x1d2   : > { %v1916_v41 = vsub.f32 1.0, %v1862_v19  ;;  %v9717_v28 = vsub.f32 1.0, %v7129_v62  ;;  %v7152_v16 = vmul.f32 %v2131_v49, %v6969_v4  ;;  %v2439_v30 = vsel %vm2361_vm4, %v2437_v52, %v9716_v55  ;;  %v9893_v52 = vld [vmem:[#allocation19_spill] sm:$0xff] }
 0x1d3   : > { %v1431_v9 = vadd.f32 -0.28449672, %v1377_v37  ;;  %v1503_v7 = vadd.f32 0.2548296, %v1449_v2  ;;  %v2504_v0 = vadd.f32 %v2439_v30, %v2227_v23  ;;  %v2682_v1 = vrot.slane %v2555_v29, 2 }
 0x1d4   : > { %9892 = vst [vmem:[#allocation73_spill] sm:$0xff] %v7152_v16  ;;  %v2024_v34 = vsub.f32 0.0, %v1916_v41  ;;  %v2130_v14 = vadd.f32 1.0, %v2076_v12  ;;  %v1448_v56 = vmul.f32 %v6994_v48, %v1394_v6  ;;  %v9715_v4 = vrot.slane %v7145_v59, 2  ;;  %v5445_v12 = vld [vmem:[%s9632_s3 + $0x10] sm:$0xff]  }
 0x1d5   : > { %v7157_v35 = vpop.eup %5567  ;;  %v1485_v19 = vmul.f32 %v7097_v8, %v1431_v9  ;;  %vm1971_vm2 = vcmp.lt.f32.partialorder %v6983_v26, 0.0  ;;  %v1702_v23 = vmul.f32 %v1648_v31, %v7104_v46  ;;  %v2785_v37 = vmul.f32 %v9893_v52, %v7152_v16  ;;  %5322 = vmatprep.subr.bf16.mxu1 %v5445_v12 }
 0x1d6   : > { %v2078_v49 = vsel %vm1970_vm0, %v2024_v34, %v1916_v41  ;;  %v1126_v2 = vmul.f32 1.0614054, %v7157_v35  ;;  %v5570_v6 = vpop.eup %5569  ;;  %v2684_v25 = vsel %vm2606_vm5, %v2682_v1, %v9715_v4  ;;  %v2868_v41 = vmul.f32 %v6386_v42, %v7152_v16  ;;  %5323 = vmatpush3.bf16.msra.mxu1 %v5445_v12 }
 0x1d7   : > { %v2132_v29 = vadd.f32 1.0, %v2078_v49  ;;  %v1539_v9 = vadd.f32 0.2548296, %v1485_v19  ;;  %v1987_v46 = vsub.f32 0.0, %v9717_v28  ;;  %v1557_v31 = vmul.f32 %v7058_v39, %v1503_v7 }
 0x1d8   : > { %v7177_v54 = vpop.eup %5571  ;;  %v1180_v30 = vadd.f32 -1.4531521, %v1126_v2  ;;  %v2749_v34 = vadd.f32 %v2684_v25, %v2504_v0  ;;  %v7183_v49 = vmul.f32 %v2130_v14, %v6900_v33  ;;  %vm1933_vm3 = vcmp.lt.f32.partialorder %v6817_v43, 0.0  ;;  %v7193_v0 = vpop.f32.mrb[64].mxu0 }
 0x1d9   : > { %v7187_v1 = vmul.f32 %v2132_v29, %v7013_v63  ;;  %v1593_v19 = vmul.f32 %v7097_v8, %v1539_v9  ;;  %v1162_v4 = vmul.f32 1.0614054, %v7177_v54  ;;  %v5574_v55 = vpop.eup %5573  ;;  %v1502_v28 = vadd.f32 0.2548296, %v1448_v56  ;;  %v5276_v8 = vpop.f32.mrb[65].mxu0 }
 0x1da   : > { %9894 = vst [vmem:[#allocation74_spill] sm:$0xff] %v7183_v49  ;;  %v1807_v58 = vmul.f32 1.442695, %v1702_v23  ;;  %v2817_v39 = vadd.f32 %v2785_v37, %v2749_v34  ;;  %v3112_v7 = vmul.f32 %v6390_v47, %v7152_v16  ;;  %v2994_v2 = vrot.slane %v2868_v41, 1 }
 0x1db   : > { %9895 = vst [vmem:[#allocation75_spill] sm:$0xff] %v7187_v1  ;;  %v1863_v33 = vmul.f32 %v5570_v6, %v1593_v19  ;;  %v1216_v14 = vadd.f32 -1.4531521, %v1162_v4  ;;  %v7197_v63 = vmul.f32 %v6386_v42, %v7187_v1  ;;  %v1827_v29 = vmul.f32 %v5574_v55, %v1557_v31  ;;  %v9896_v6 = vld [vmem:[#allocation31_spill] sm:$0xff] }
 0x1dc   : > { %v1234_v12 = vmul.f32 %v7157_v35, %v1180_v30  ;;  %v1612_v56 = vsub.f32 0.0, %v7078_v36  ;;  %v7203_v23 = vmul.f32 %v6390_v47, %v7187_v1  ;;  %v7208_v25 = vmul.f32 0.70710677, %v9896_v6 }
 0x1dd   : > { %v1917_v37 = vsub.f32 1.0, %v1863_v33  ;;  %v1270_v9 = vmul.f32 %v7177_v54, %v1216_v14  ;;  %v9720_v4 = vrot.slane %v7197_v63, 1  ;;  %v1556_v41 = vmul.f32 %v6994_v48, %v1502_v28 }
 0x1de   : > { %5575 = vpow2.f32 %v1807_v58  ;;  %v3238_v55 = vrot.slane %v3112_v7, 2  ;;  %vm1935_vm6 = vcmp.lt.f32.partialorder %v6951_v24, 0.0  ;;  %v7217_v33 = vand.u32 2147483647, %v7208_v25 }
 0x1df   : > { %v2025_v30 = vsub.f32 0.0, %v1917_v37  ;;  %v1324_v34 = vadd.f32 1.4214138, %v1270_v9  ;;  %v2996_v19 = vsel %vm2361_vm4, %v2994_v2, %v9720_v4  ;;  %v1881_v8 = vsub.f32 1.0, %v1827_v29 }
 0x1e0   : > { %v7221_v48 = vmul.f32 0.5, %v9880_v15  ;;  %v1288_v58 = vadd.f32 1.4214138, %v1234_v12  ;;  %v2312_v28 = vmul.f32 %v6195_v60, %v7183_v49  ;;  %v3061_v31 = vadd.f32 %v2996_v19, %v2817_v39 }
 0x1e1   : > { %v2079_v7 = vsel %vm1971_vm2, %v2025_v30, %v1917_v37  ;;  %v1378_v9 = vmul.f32 %v7177_v54, %v1324_v34  ;;  %v2557_v2 = vmul.f32 %v6227_v3, %v7183_v49  ;;  %v9897_v4 = vsub.f32 1.0, %v7129_v62 }
 0x1e2   : > { %v1826_v15 = vmul.f32 %v7090_v5, %v1556_v41  ;;  %v2133_v12 = vadd.f32 1.0, %v2079_v7  ;;  %v1666_v14 = vmul.f32 %v1612_v56, %v7078_v36  ;;  %v9898_v26 = vrot.slane %v7203_v23, 2  ;;  %v9899_v56 = vld [vmem:[#allocation34_spill] sm:$0xff]  ;;  %v7251_v41 = vpop.f32.mrb[66].mxu0 }
 0x1e3   : > { %v2041_v29 = vsel %vm1933_vm3, %v1987_v46, %v9897_v4  ;;  %v1432_v16 = vadd.f32 -0.28449672, %v1378_v9  ;;  %v911_v39 = vmul.f32 0.3275911, %v7217_v33  ;;  %v1989_v30 = vsub.f32 0.0, %v1881_v8 }
 0x1e4   : > { %v3240_v37 = vsel %vm2606_vm5, %v3238_v55, %v9898_v26  ;;  %v7241_v34 = vmul.f32 %v2133_v12, %v7041_v22  ;;  %v1342_v62 = vmul.f32 %v7157_v35, %v1288_v58  ;;  %v2440_v46 = vrot.slane %v2312_v28, 1  ;;  %v5277_v58 = vpop.f32.mrb[67].mxu0 }
 0x1e5   : > { %v7244_v43 = vadd.f32 %v3240_v37, %v3061_v31  ;;  %vm1934_vm7 = vcmp.lt.f32.partialorder %v6869_v11, 0.0  ;;  %v1486_v36 = vmul.f32 %v7177_v54, %v1432_v16  ;;  %v965_v5 = vadd.f32 1.0, %v911_v39  ;;  %v5446_v37 = vld [vmem:[%s9632_s3 + $0x18] sm:$0xff]  }
 0x1e6   : > { %v7249_v4 = vmul.f32 0.70710677, %v9899_v56  ;;  %v2685_v55 = vrot.slane %v2557_v2, 2  ;;  %v1880_v19 = vsub.f32 1.0, %v1826_v15  ;;  %v2870_v22 = vmul.f32 %v6386_v42, %v7241_v34  ;;  %5324 = vmatprep.subr.bf16.mxu1 %v5446_v37 }
 0x1e7   : > { %v3114_v31 = vmul.f32 %v6390_v47, %v7241_v34  ;;  %v1735_v28 = vmul.f32 1.442695, %v1666_v14  ;;  %v7258_v7 = vmul.f32 0.5, %v9885_v44  ;;  %v1540_v16 = vadd.f32 0.2548296, %v1486_v36  ;;  %5325 = vmatpush3.bf16.msra.mxu1 %v5446_v37 }
 0x1e8   : > { %5577 = vrcp.f32 %v965_v5  ;;  %v5576_v9 = vpop.eup %5575  ;;  %v7262_v12 = vmul.f32 %v6386_v42, %v7183_v49  ;;  %v2043_v2 = vsel %vm1935_vm6, %v1989_v30, %v1881_v8  ;;  %v2997_v15 = vrot.slane %v2870_v22, 1 }
 0x1e9   : > { %v1396_v26 = vadd.f32 -0.28449672, %v1342_v62  ;;  %v2095_v14 = vadd.f32 1.0, %v2041_v29  ;;  %v3241_v39 = vrot.slane %v3114_v31, 2  ;;  %v1594_v44 = vmul.f32 %v7177_v54, %v1540_v16 }
 0x1ea   : > { %9900 = vst [vmem:[#allocation31_spill] sm:$0xff] %v7262_v12  ;;  %v7271_v36 = vand.u32 2147483647, %v7249_v4  ;;  %v1988_v5 = vsub.f32 0.0, %v1880_v19  ;;  %v2228_v58 = vmul.f32 %v9890_v57, %v7023_v20  ;;  %v9901_v24 = vrot.slane %v7124_v38, 1 }
 0x1eb   : > { %v9902_v30 = vrot.slane %v7145_v59, 2  ;;  %v2097_v29 = vadd.f32 1.0, %v2043_v2  ;;  %5579 = vpow2.f32 %v1735_v28  ;;  %v1864_v22 = vmul.f32 %v5576_v9, %v1594_v44  ;;  %v5447_v59 = vld [vmem:[%s9632_s3 + $0x20] sm:$0xff]   ;;  %v9905_v44 = vld [vmem:[#allocation38_spill] sm:$0xff] }
 0x1ec   : > { %v2441_v8 = vsel %vm2361_vm4, %v9901_v24, %v2440_v46  ;;  %v947_v54 = vmul.f32 0.3275911, %v7271_v36  ;;  %v1450_v31 = vmul.f32 %v7157_v35, %v1396_v26  ;;  %v2786_v20 = vmul.f32 %v9893_v52, %v7187_v1  ;;  %5326 = vmatprep.subr.bf16.mxu1 %v5447_v59 }
 0x1ed   : > { %v2686_v62 = vsel %vm2606_vm5, %v9902_v30, %v2685_v55  ;;  %v2505_v16 = vadd.f32 %v2441_v8, %v2228_v58  ;;  %v9903_v38 = vrot.slane %v7197_v63, 1  ;;  %v1918_v55 = vsub.f32 1.0, %v1864_v22  ;;  %5327 = vmatpush3.bf16.msra.mxu1 %v5447_v59 }
 0x1ee   : > { %vm1972_vm8 = vcmp.lt.f32.partialorder %v7088_v13, 0.0  ;;  %v1001_v28 = vadd.f32 1.0, %v947_v54  ;;  %v9904_v9 = vrot.slane %v7203_v23, 2  ;;  %v2042_v26 = vsel %vm1934_vm7, %v1988_v5, %v1880_v19  ;;  %v7312_v5 = vpop.f32.mrb[68].mxu0 }
 0x1ef   : > { %v2998_v46 = vsel %vm2361_vm4, %v9903_v38, %v2997_v15  ;;  %v3309_v37 = vsub.s32 6, %v9859_v17  ;;  %v2750_v63 = vadd.f32 %v2686_v62, %v2505_v16  ;;  %v7299_v15 = vmul.f32 0.70710677, %v9905_v44  ;;  %9908 = vst [vmem:[#allocation76_spill] sm:$0xff] %v7312_v5  ;;  %v5280_v54 = vpop.f32.mrb[69].mxu0 }
 0x1f0   : > { %v3242_v2 = vsel %vm2606_vm5, %v9904_v9, %v3241_v39  ;;  %v7303_v58 = vmul.f32 %v6390_v47, %v7183_v49  ;;  %v7306_v24 = vmul.f32 %v2097_v29, %v7028_v45  ;;  %v2026_v23 = vsub.f32 0.0, %v1918_v55  ;;  %v9910_v29 = vld [vmem:[#allocation39_spill] sm:$0xff]  ;;  %v7329_v59 = vpop.f32.mrb[70].mxu0  ;;  %v9923_v49 = vld [vmem:[#allocation70_spill] sm:$0xff] }
 0x1f1   : > { %5581 = vrcp.f32 %v1001_v28  ;;  %v1504_v19 = vadd.f32 0.2548296, %v1450_v31  ;;  %v2818_v39 = vadd.f32 %v2786_v20, %v2750_v63  ;;  %v7310_v17 = vand.u32 2147483647, %v7299_v15  ;;  %9911 = vst [vmem:[#allocation39_spill] sm:$0xff] %v7329_v59  ;;  %v5281_v28 = vpop.f32.mrb[71].mxu0 }
 0x1f2   : > { %9906 = vst [vmem:[#allocation34_spill] sm:$0xff] %v7303_v58  ;;  %9907 = vst [vmem:[#allocation38_spill] sm:$0xff] %v7306_v24  ;;  %v7314_v8 = vpop.eup %5577  ;;  %v7317_v30 = vmul.f32 %v2095_v14, %v6928_v18  ;;  %v2096_v62 = vadd.f32 1.0, %v2042_v26  ;;  %v2080_v45 = vsel %vm1972_vm8, %v2026_v23, %v1918_v55  ;;  %v7322_v22 = vmul.f32 0.70710677, %v9910_v29  ;;  %v5448_v63 = vld [vmem:[%s9632_s3 + $0x28] sm:$0xff]  }
 0x1f3   : > { %v2134_v31 = vadd.f32 1.0, %v2080_v45  ;;  %v7325_v20 = vrot.slane %v6922_v61, %v3309_v37  ;;  %v1127_v16 = vmul.f32 1.0614054, %v7314_v8  ;;  %v1649_v38 = vsub.f32 0.0, %v7271_v36  ;;  %5328 = vmatprep.subr.bf16.mxu1 %v5448_v63  ;;  %v9922_v58 = vld [vmem:[#allocation42_spill] sm:$0xff] }
 0x1f4   : > { %9909 = vst [vmem:[#allocation77_spill] sm:$0xff] %v7317_v30  ;;  %v7333_v18 = vmul.f32 %v6195_v60, %v7306_v24  ;;  %v3062_v13 = vadd.f32 %v2998_v46, %v2818_v39  ;;  %v912_v14 = vmul.f32 0.3275911, %v7310_v17  ;;  %v894_v55 = vand.u32 2147483647, %v7322_v22  ;;  %5329 = vmatpush3.bf16.msra.mxu1 %v5448_v63 }
 0x1f5   : > { %v7339_v61 = vmul.f32 %v6227_v3, %v7306_v24  ;;  %v1558_v9 = vmul.f32 %v7157_v35, %v1504_v19  ;;  %v7343_v26 = vmul.f32 %v2134_v31, %v7258_v7  ;;  %v1181_v37 = vadd.f32 -1.4531521, %v1127_v16  ;;  %v5580_v46 = vpop.eup %5579 }
 0x1f6   : > { %9912 = vst [vmem:[#allocation78_spill] sm:$0xff] %v7333_v18  ;;  %v7348_v23 = vadd.f32 %v3242_v2, %v3062_v13  ;;  %v966_v39 = vadd.f32 1.0, %v912_v14  ;;  %v948_v45 = vmul.f32 0.3275911, %v894_v55  ;;  %v7351_v54 = vmul.f32 0.70710677, %v6658_v21 }
 0x1f7   : > { %9913 = vst [vmem:[#allocation79_spill] sm:$0xff] %v7339_v61  ;;  %v7354_v28 = vmul.f32 %v2096_v62, %v6992_v10  ;;  %v7358_v35 = vmul.f32 %v6386_v42, %v7306_v24  ;;  %v3341_v7 = vmul.f32 %v7325_v20, %v7343_v26  ;;  %v1703_v19 = vmul.f32 %v1649_v38, %v7271_v36 }
 0x1f8   : > { %v7364_v2 = vmul.f32 0.5, %v9896_v6  ;;  %v1235_v31 = vmul.f32 %v7314_v8, %v1181_v37  ;;  %5583 = vrcp.f32 %v966_v39  ;;  %v1002_v16 = vadd.f32 1.0, %v948_v45  ;;  %v9919_v39 = vld [vmem:[#allocation16_spill] sm:$0xff] }
 0x1f9   : > { %9914 = vst [vmem:[#allocation80_spill] sm:$0xff] %v7354_v28  ;;  %9915 = vst [vmem:[#allocation81_spill] sm:$0xff] %v7358_v35  ;;  %v7370_v62 = vmul.f32 %v6390_v47, %v7306_v24  ;;  %v7373_v13 = vadd.f32 %v3341_v7, %v7244_v43  ;;  %v7376_v36 = vmul.f32 0.5, %v9899_v56  ;;  %v1828_v14 = vmul.f32 %v5580_v46, %v1558_v9 }
 0x1fa   : > { %v1613_v37 = vsub.f32 0.0, %v7217_v33  ;;  %v859_v63 = vand.u32 2147483647, %v7351_v54  ;;  %v1809_v11 = vmul.f32 1.442695, %v1703_v19  ;;  %5585 = vrcp.f32 %v1002_v16 }
 0x1fb   : > { %9916 = vst [vmem:[#allocation82_spill] sm:$0xff] %v7370_v62  ;;  %9917 = vst [vmem:[#allocation83_spill] sm:$0xff] %v7373_v13  ;;  %v7378_v38 = vpop.eup %5581  ;;  %v7387_v43 = vmul.f32 %v6925_v32, %v7241_v34  ;;  %v1289_v56 = vadd.f32 1.4214138, %v1235_v31  ;;  %v1614_v7 = vsub.f32 0.0, %v7310_v17  ;;  %vm1936_vm9 = vcmp.lt.f32.partialorder %v7054_v50, 0.0 }
 0x1fc   : > { %v1163_v45 = vmul.f32 1.0614054, %v7378_v38  ;;  %v913_v10 = vmul.f32 0.3275911, %v859_v63  ;;  %v1650_v46 = vsub.f32 0.0, %v894_v55  ;;  %v9920_v13 = vld [vmem:[#allocation7_spill] sm:$0xff]  ;;  %v1667_v16 = vmul.f32 %v1613_v37, %v7217_v33 }
 0x1fd   : > { %9918 = vst [vmem:[#allocation84_spill] sm:$0xff] %v7387_v43  ;;  %v7392_v6 = vmul.f32 0.70710677, %v6669_v53  ;;  %v7396_v12 = vadd.f32 %v9920_v13, %v9919_v39  ;;  %v1882_v19 = vsub.f32 1.0, %v1828_v14  ;;  %v7400_v31 = vmul.f32 0.70710677, %v9922_v58 }
 0x1fe   : > { %v1217_v9 = vadd.f32 -1.4531521, %v1163_v45  ;;  %v967_v1 = vadd.f32 1.0, %v913_v10  ;;  %v7404_v61 = vmul.f32 %v9923_v49, %v7241_v34  ;;  %5587 = vpow2.f32 %v1809_v11  ;;  %v9925_v34 = vld [vmem:[#allocation22_spill] sm:$0xff] }
 0x1ff   : > { %9921 = vst [vmem:[#allocation16_spill] sm:$0xff] %v7396_v12  ;;  %v7408_v18 = vand.u32 2147483647, %v7392_v6  ;;  %v1343_v13 = vmul.f32 %v7314_v8, %v1289_v56  ;;  %v1668_v14 = vmul.f32 %v1614_v7, %v7310_v17  ;;  %v7413_v33 = vand.u32 2147483647, %v7400_v31  ;;  %v9927_v62 = vld [vmem:[#allocation30_spill] sm:$0xff] }
 0x200   : > { %9924 = vst [vmem:[#allocation7_spill] sm:$0xff] %v7404_v61  ;;  %v1271_v45 = vmul.f32 %v7378_v38, %v1217_v9  ;;  %5589 = vrcp.f32 %v967_v1  ;;  %v1704_v37 = vmul.f32 %v1650_v46, %v894_v55  ;;  %v9926_v35 = vrot.slane %v9925_v34, 1 }
 0x201   : > { %v914_v39 = vmul.f32 0.3275911, %v7408_v18  ;;  %v9928_v9 = vrot.slane %v9927_v62, 1  ;;  %v1990_v17 = vsub.f32 0.0, %v1882_v19  ;;  %v1737_v1 = vmul.f32 1.442695, %v1667_v16 }
 0x202   : > { %v1325_v10 = vadd.f32 1.4214138, %v1271_v45  ;;  %v7423_v24 = vpop.eup %5583  ;;  %v915_v7 = vmul.f32 0.3275911, %v7413_v33  ;;  %v1615_v46 = vsub.f32 0.0, %v859_v63  ;;  %vm1973_vm10 = vcmp.lt.f32.partialorder %v7249_v4, 0.0 }
 0x203   : > { %v7421_v11 = vsel %vm2361_vm4, %v9928_v9, %v9926_v35  ;;  %v1128_v55 = vmul.f32 1.0614054, %v7423_v24  ;;  %v968_v28 = vadd.f32 1.0, %v914_v39  ;;  %v1397_v62 = vadd.f32 -0.28449672, %v1343_v13 }
 0x204   : > { %9929 = vst [vmem:[#allocation42_spill] sm:$0xff] %v7421_v11  ;;  %v1379_v45 = vmul.f32 %v7378_v38, %v1325_v10  ;;  %v1739_v30 = vmul.f32 1.442695, %v1668_v14  ;;  %v969_v35 = vadd.f32 1.0, %v915_v7  ;;  %v7430_v9 = vpop.eup %5585  ;;  %v1811_v56 = vmul.f32 1.442695, %v1704_v37 }
 0x205   : > { %v1182_v57 = vadd.f32 -1.4531521, %v1128_v55  ;;  %5591 = vrcp.f32 %v968_v28  ;;  %v2044_v16 = vsel %vm1936_vm9, %v1990_v17, %v1882_v19  ;;  %v7435_v10 = vmul.f32 0.5, %v9905_v44  ;;  %v9930_v7 = vld [vmem:[#allocation45_spill] sm:$0xff]  ;;  %v9931_v28 = vld [vmem:[#allocation11_spill] sm:$0xff] }
 0x206   : > { %v1433_v40 = vadd.f32 -0.28449672, %v1379_v45  ;;  %v1164_v43 = vmul.f32 1.0614054, %v7430_v9  ;;  %5593 = vrcp.f32 %v969_v35  ;;  %v1669_v14 = vmul.f32 %v1615_v46, %v859_v63 }
 0x207   : > { %v1236_v13 = vmul.f32 %v7423_v24, %v1182_v57  ;;  %v7441_v34 = vmul.f32 0.70710677, %v9930_v7  ;;  %v1451_v37 = vmul.f32 %v7314_v8, %v1397_v62  ;;  %5595 = vpow2.f32 %v1739_v30 }
 0x208   : > { %v1487_v39 = vmul.f32 %v7378_v38, %v1433_v40  ;;  %v1218_v50 = vadd.f32 -1.4531521, %v1164_v43  ;;  %v7446_v44 = vmul.f32 0.70710677, %v9931_v28  ;;  %v5588_v19 = vpop.eup %5587  ;;  %v2098_v17 = vadd.f32 1.0, %v2044_v16 }
 0x209   : > { %v1290_v55 = vadd.f32 1.4214138, %v1236_v13  ;;  %5597 = vpow2.f32 %v1811_v56  ;;  %v1616_v63 = vsub.f32 0.0, %v7408_v18  ;;  %v7453_v46 = vand.u32 2147483647, %v7441_v34 }
 0x20a   : > { %v1541_v45 = vadd.f32 0.2548296, %v1487_v39  ;;  %v7448_v40 = vpop.eup %5589  ;;  %v1272_v57 = vmul.f32 %v7430_v9, %v1218_v50  ;;  %v7456_v30 = vand.u32 2147483647, %v7446_v44  ;;  %v1741_v16 = vmul.f32 1.442695, %v1669_v14 }
 0x20b   : > { %v1344_v62 = vmul.f32 %v7423_v24, %v1290_v55  ;;  %v1129_v35 = vmul.f32 1.0614054, %v7448_v40  ;;  %v1505_v56 = vadd.f32 0.2548296, %v1451_v37  ;;  %5599 = vpow2.f32 %v1737_v1 }
 0x20c   : > { %v1595_v43 = vmul.f32 %v7378_v38, %v1541_v45  ;;  %v1326_v39 = vadd.f32 1.4214138, %v1272_v57  ;;  %v916_v13 = vmul.f32 0.3275911, %v7453_v46  ;;  %v917_v27 = vmul.f32 0.3275911, %v7456_v30 }
 0x20d   : > { %v1398_v61 = vadd.f32 -0.28449672, %v1344_v62  ;;  %v1183_v51 = vadd.f32 -1.4531521, %v1129_v35  ;;  %v1670_v11 = vmul.f32 %v1616_v63, %v7408_v18  ;;  %v1617_v38 = vsub.f32 0.0, %v7413_v33 }
 0x20e   : > { %v1865_v50 = vmul.f32 %v5588_v19, %v1595_v43  ;;  %v1380_v52 = vmul.f32 %v7430_v9, %v1326_v39  ;;  %v970_v45 = vadd.f32 1.0, %v916_v13  ;;  %v971_v57 = vadd.f32 1.0, %v917_v27 }
 0x20f   : > { %v7466_v55 = vpop.eup %5591  ;;  %v1452_v1 = vmul.f32 %v7423_v24, %v1398_v61  ;;  %v1237_v37 = vmul.f32 %v7448_v40, %v1183_v51  ;;  %v1559_v43 = vmul.f32 %v7314_v8, %v1505_v56  ;;  %v1671_v27 = vmul.f32 %v1617_v38, %v7413_v33 }
 0x210   : > { %v1919_v14 = vsub.f32 1.0, %v1865_v50  ;;  %v7470_v19 = vpop.eup %5593  ;;  %v1434_v62 = vadd.f32 -0.28449672, %v1380_v52  ;;  %v1130_v35 = vmul.f32 1.0614054, %v7466_v55  ;;  %5601 = vrcp.f32 %v970_v45 }
 0x211   : > { %v1506_v63 = vadd.f32 0.2548296, %v1452_v1  ;;  %v1291_v39 = vadd.f32 1.4214138, %v1237_v37  ;;  %5603 = vrcp.f32 %v971_v57  ;;  %v5596_v13 = vpop.eup %5595  ;;  %v1131_v61 = vmul.f32 1.0614054, %v7470_v19 }
 0x212   : > { %v2027_v18 = vsub.f32 0.0, %v1919_v14  ;;  %v1488_v50 = vmul.f32 %v7430_v9, %v1434_v62  ;;  %v1184_v12 = vadd.f32 -1.4531521, %v1130_v35  ;;  %v1743_v45 = vmul.f32 1.442695, %v1670_v11 }
 0x213   : > { %v5598_v51 = vpop.eup %5597  ;;  %v1560_v52 = vmul.f32 %v7423_v24, %v1506_v63  ;;  %v1345_v56 = vmul.f32 %v7448_v40, %v1291_v39  ;;  %v1185_v59 = vadd.f32 -1.4531521, %v1131_v61  ;;  %v786_v35 = vmul.f32 0.5, %v9910_v29 }
 0x214   : > { %v2081_v8 = vsel %vm1973_vm10, %v2027_v18, %v1919_v14  ;;  %v1542_v37 = vadd.f32 0.2548296, %v1488_v50  ;;  %v1238_v57 = vmul.f32 %v7466_v55, %v1184_v12  ;;  %v7484_v5 = vmul.f32 0.5, %v6658_v21 }
 0x215   : > { %v2135_v1 = vadd.f32 1.0, %v2081_v8  ;;  %v1830_v62 = vmul.f32 %v5596_v13, %v1560_v52  ;;  %v1399_v33 = vadd.f32 -0.28449672, %v1345_v56  ;;  %v5600_v38 = vpop.eup %5599  ;;  %v1239_v11 = vmul.f32 %v7470_v19, %v1185_v59 }
 0x216   : > { %v1596_v24 = vmul.f32 %v7430_v9, %v1542_v37  ;;  %v1292_v14 = vadd.f32 1.4214138, %v1238_v57  ;;  %v7490_v18 = vmul.f32 %v2098_v17, %v7221_v48  ;;  %5605 = vpow2.f32 %v1741_v16 }
 0x217   : > { %v2189_v4 = vmul.f32 %v2135_v1, %v7376_v36  ;;  %v1453_v12 = vmul.f32 %v7448_v40, %v1399_v33  ;;  %v1745_v63 = vmul.f32 1.442695, %v1671_v27  ;;  %v7493_v29 = vmul.f32 %v5600_v38, %v1559_v43 }
 0x218   : > { %9932 = vst [vmem:[#allocation70_spill] sm:$0xff] %v7490_v18  ;;  %v1866_v39 = vmul.f32 %v5598_v51, %v1596_v24  ;;  %5607 = vpow2.f32 %v1743_v45  ;;  %vm1938_vm11 = vcmp.lt.f32.partialorder %v7299_v15, 0.0  ;;  %vm1974_vm12 = vcmp.lt.f32.partialorder %v7322_v22, 0.0 }
 0x219   : > { %v3342_v21 = vmul.f32 %v7325_v20, %v2189_v4  ;;  %v1346_v36 = vmul.f32 %v7466_v55, %v1292_v14  ;;  %v1293_v59 = vadd.f32 1.4214138, %v1239_v11  ;;  %v1618_v48 = vsub.f32 0.0, %v7453_v46 }
 0x21a   : > { %v7500_v9 = vpop.eup %5601  ;;  %v1884_v16 = vsub.f32 1.0, %v1830_v62  ;;  %v1920_v43 = vsub.f32 1.0, %v1866_v39  ;;  %v1507_v13 = vadd.f32 0.2548296, %v1453_v12  ;;  %v7507_v61 = vmul.f32 %v6925_v32, %v7343_v26 }
 0x21b   : > { %v3374_v17 = vadd.f32 %v3342_v21, %v7348_v23  ;;  %v7503_v50 = vpop.eup %5603  ;;  %v1400_v27 = vadd.f32 -0.28449672, %v1346_v36  ;;  %v1347_v51 = vmul.f32 %v7470_v19, %v1293_v59  ;;  %5609 = vpow2.f32 %v1745_v63 }
 0x21c   : > { %9933 = vst [vmem:[#allocation22_spill] sm:$0xff] %v7507_v61  ;;  %v1883_v8 = vsub.f32 1.0, %v7493_v29  ;;  %v2028_v52 = vsub.f32 0.0, %v1920_v43  ;;  %v1132_v56 = vmul.f32 1.0614054, %v7500_v9  ;;  %v1672_v37 = vmul.f32 %v1618_v48, %v7453_v46 }
 0x21d   : > { %v1133_v23 = vmul.f32 1.0614054, %v7503_v50  ;;  %v1454_v45 = vmul.f32 %v7466_v55, %v1400_v27  ;;  %v1401_v1 = vadd.f32 -0.28449672, %v1347_v51  ;;  %v1619_v57 = vsub.f32 0.0, %v7456_v30 }
 0x21e   : > { %v1992_v62 = vsub.f32 0.0, %v1884_v16  ;;  %v2082_v33 = vsel %vm1974_vm12, %v2028_v52, %v1920_v43  ;;  %v1561_v38 = vmul.f32 %v7448_v40, %v1507_v13  ;;  %v1186_v24 = vadd.f32 -1.4531521, %v1132_v56 }
 0x21f   : > { %v7520_v14 = vmul.f32 %v6925_v32, %v2189_v4  ;;  %v2136_v11 = vadd.f32 1.0, %v2082_v33  ;;  %v1508_v12 = vadd.f32 0.2548296, %v1454_v45  ;;  %v1455_v63 = vmul.f32 %v7470_v19, %v1401_v1  ;;  %v9937_v33 = vld [vmem:[#allocation54_spill] sm:$0xff] }
 0x220   : > { %v7525_v29 = vmul.f32 %v9923_v49, %v7343_v26  ;;  %vm1937_vm13 = vcmp.lt.f32.partialorder %v7208_v25, 0.0  ;;  %v1991_v46 = vsub.f32 0.0, %v1883_v8  ;;  %v7529_v22 = vmul.f32 %v9923_v49, %v2189_v4  ;;  %v5606_v40 = vpop.eup %5605 }
 0x221   : > { %9934 = vst [vmem:[#allocation30_spill] sm:$0xff] %v7520_v14  ;;  %v1187_v21 = vadd.f32 -1.4531521, %v1133_v23  ;;  %v2190_v39 = vmul.f32 %v2136_v11, %v786_v35  ;;  %v1562_v36 = vmul.f32 %v7466_v55, %v1508_v12  ;;  %v1509_v59 = vadd.f32 0.2548296, %v1455_v63 }
 0x222   : > { %9935 = vst [vmem:[#allocation45_spill] sm:$0xff] %v7525_v29  ;;  %9936 = vst [vmem:[#allocation11_spill] sm:$0xff] %v7529_v22  ;;  %v1747_v48 = vmul.f32 1.442695, %v1672_v37  ;;  %v5608_v43 = vpop.eup %5607  ;;  %v2046_v13 = vsel %vm1938_vm11, %v1992_v62, %v1884_v16  ;;  %v1831_v27 = vmul.f32 %v5606_v40, %v1561_v38  ;;  %v1240_v26 = vmul.f32 %v7500_v9, %v1186_v24 }
 0x223   : > { %v1673_v51 = vmul.f32 %v1619_v57, %v7456_v30  ;;  %v9747_v52 = vrot.slane %v7520_v14, 1  ;;  %v3426_v4 = vmul.f32 %v6925_v32, %v2190_v39  ;;  %v3670_v56 = vmul.f32 %v9923_v49, %v2190_v39 }
 0x224   : > { %v1832_v35 = vmul.f32 %v5608_v43, %v1562_v36  ;;  %v9746_v55 = vrot.slane %v7529_v22, 2  ;;  %v1563_v23 = vmul.f32 %v7470_v19, %v1509_v59  ;;  %v1294_v45 = vadd.f32 1.4214138, %v1240_v26 }
 0x225   : > { %v1241_v15 = vmul.f32 %v7503_v50, %v1187_v21  ;;  %v5610_v16 = vpop.eup %5609  ;;  %v2100_v1 = vadd.f32 1.0, %v2046_v13  ;;  %v3553_v37 = vrot.slane %v3426_v4, 1  ;;  %v3797_v62 = vrot.slane %v3670_v56, 2 }
 0x226   : > { %v7543_v30 = vmul.f32 0.70710677, %v9937_v33  ;;  %v1885_v57 = vsub.f32 1.0, %v1831_v27  ;;  %vm1939_vm14 = vcmp.lt.f32.partialorder %v7351_v54, 0.0  ;;  %v1833_v38 = vmul.f32 %v5610_v16, %v1563_v23 }
 0x227   : > { %v1348_v49 = vmul.f32 %v7500_v9, %v1294_v45  ;;  %v1295_v24 = vadd.f32 1.4214138, %v1241_v15  ;;  %v3554_v19 = vsel %vm2361_vm4, %v9747_v52, %v3553_v37  ;;  %v7553_v11 = vsel %vm2606_vm5, %v9746_v55, %v3797_v62  ;;  %v9941_v45 = vld [vmem:[#allocation15_spill] sm:$0xff]  ;;  %v5450_v55 = vld [vmem:[%s9632_s3 + $0x38] sm:$0xff]  }
 0x228   : > { %9938 = vst [vmem:[#allocation54_spill] sm:$0xff] %v7553_v11  ;;  %v1886_v12 = vsub.f32 1.0, %v1832_v35  ;;  %v864_v63 = vand.u32 2147483647, %v7543_v30  ;;  %v7556_v21 = vadd.f32 %v3554_v19, %v3374_v17  ;;  %v1887_v40 = vsub.f32 1.0, %v1833_v38 }
 0x229   : > { %v1402_v39 = vadd.f32 -0.28449672, %v1348_v49  ;;  %v1349_v36 = vmul.f32 %v7503_v50, %v1295_v24  ;;  %v2045_v59 = vsel %vm1937_vm13, %v1991_v46, %v1883_v8  ;;  %v752_v43 = vmul.f32 0.5, %v6669_v53 }
 0x22a   : > { %9939 = vst [vmem:[#allocation85_spill] sm:$0xff] %v7556_v21  ;;  %5611 = vpow2.f32 %v1747_v48  ;;  %v918_v13 = vmul.f32 0.3275911, %v864_v63  ;;  %v1995_v27 = vsub.f32 0.0, %v1887_v40  ;;  %v1749_v56 = vmul.f32 1.442695, %v1673_v51 }
 0x22b   : > { %v1456_v26 = vmul.f32 %v7500_v9, %v1402_v39  ;;  %v1403_v4 = vadd.f32 -0.28449672, %v1349_v36  ;;  %v7564_v35 = vmul.f32 %v2100_v1, %v7435_v10  ;;  %v1993_v17 = vsub.f32 0.0, %v1885_v57 }
 0x22c   : > { %v972_v23 = vadd.f32 1.0, %v918_v13  ;;  %v7567_v15 = vmul.f32 0.70710677, %v9941_v45  ;;  %v1994_v16 = vsub.f32 0.0, %v1886_v12  ;;  %v753_v25 = vmul.f32 0.5, %v9922_v58 }
 0x22d   : > { %9940 = vst [vmem:[#allocation86_spill] sm:$0xff] %v7564_v35  ;;  %v1510_v8 = vadd.f32 0.2548296, %v1456_v26  ;;  %v1620_v53 = vsub.f32 0.0, %v864_v63  ;;  %v2099_v46 = vadd.f32 1.0, %v2045_v59  ;;  %vm1941_vm15 = vcmp.lt.f32.partialorder %v7400_v31, 0.0 }
 0x22e   : > { %5613 = vrcp.f32 %v972_v23  ;;  %v865_v48 = vand.u32 2147483647, %v7567_v15  ;;  %vm1940_vm0 = vcmp.lt.f32.partialorder %v7392_v6, 0.0  ;;  %v2049_v10 = vsel %vm1941_vm15, %v1995_v27, %v1887_v40  ;;  %v9943_v6 = vld [vmem:[#allocation17_spill] sm:$0xff]  ;;  %v9949_v23 = vld [vmem:[#allocation59_spill] sm:$0xff] }
 0x22f   : > { %v7574_v51 = vmul.f32 0.5, %v9930_v7  ;;  %v1457_v1 = vmul.f32 %v7503_v50, %v1403_v4  ;;  %v7579_v37 = vmul.f32 %v6195_v60, %v7564_v35  ;;  %v2047_v58 = vsel %vm1939_vm14, %v1993_v17, %v1885_v57  ;;  %v9958_v4 = vld [vmem:[#allocation20_spill] sm:$0xff] }
 0x230   : > { %5615 = vpow2.f32 %v1749_v56  ;;  %v919_v31 = vmul.f32 0.3275911, %v865_v48  ;;  %v2048_v62 = vsel %vm1940_vm0, %v1994_v16, %v1886_v12  ;;  %v1564_v38 = vmul.f32 %v7500_v9, %v1510_v8 }
 0x231   : > { %9942 = vst [vmem:[#allocation15_spill] sm:$0xff] %v7579_v37  ;;  %v1674_v49 = vmul.f32 %v1620_v53, %v864_v63  ;;  %v7585_v24 = vmul.f32 0.70710677, %v9943_v6  ;;  %v7588_v7 = vmul.f32 %v2099_v46, %v7364_v2  ;;  %v7592_v19 = vmul.f32 %v6227_v3, %v7564_v35 }
 0x232   : > { %v2103_v40 = vadd.f32 1.0, %v2049_v10  ;;  %v7595_v54 = vmul.f32 0.5, %v9931_v28  ;;  %v7599_v57 = vmul.f32 %v6386_v42, %v7564_v35  ;;  %v2101_v9 = vadd.f32 1.0, %v2047_v58 }
 0x233   : > { %9944 = vst [vmem:[#allocation17_spill] sm:$0xff] %v7588_v7  ;;  %9945 = vst [vmem:[#allocation87_spill] sm:$0xff] %v7592_v19  ;;  %v1511_v12 = vadd.f32 0.2548296, %v1457_v1  ;;  %v973_v63 = vadd.f32 1.0, %v919_v31  ;;  %v7603_v2 = vmul.f32 %v6390_v47, %v7564_v35  ;;  %v2102_v36 = vadd.f32 1.0, %v2048_v62 }
 0x234   : > { %9946 = vst [vmem:[#allocation88_spill] sm:$0xff] %v7599_v57  ;;  %v5612_v39 = vpop.eup %5611  ;;  %v7606_v59 = vmul.f32 0.5, %v9937_v33  ;;  %v7609_v13 = vand.u32 2147483647, %v7585_v24  ;;  %v1751_v26 = vmul.f32 1.442695, %v1674_v49  ;;  %v7613_v56 = vmul.f32 %v2103_v40, %v753_v25 }
 0x235   : > { %9947 = vst [vmem:[#allocation89_spill] sm:$0xff] %v7603_v2  ;;  %v1834_v27 = vmul.f32 %v5612_v39, %v1564_v38  ;;  %5617 = vrcp.f32 %v973_v63  ;;  %v7617_v16 = vmul.f32 0.70710677, %v9949_v23  ;;  %v7621_v8 = vmul.f32 %v2101_v9, %v7484_v5  ;;  %v9952_v5 = vld [vmem:[#allocation61_spill] sm:$0xff]  ;;  %v9959_v19 = vld [vmem:[#allocation24_spill] sm:$0xff] }
 0x236   : > { %9948 = vst [vmem:[#allocation90_spill] sm:$0xff] %v7613_v56  ;;  %v920_v17 = vmul.f32 0.3275911, %v7609_v13  ;;  %v1565_v53 = vmul.f32 %v7503_v50, %v1511_v12  ;;  %v7625_v46 = vmul.f32 0.5, %v9941_v45  ;;  %v7629_v1 = vmul.f32 %v2102_v36, %v752_v43 }
 0x237   : > { %9950 = vst [vmem:[#allocation59_spill] sm:$0xff] %v7621_v8  ;;  %vm1942_vm2 = vcmp.lt.f32.partialorder %v7441_v34, 0.0  ;;  %v1621_v25 = vsub.f32 0.0, %v865_v48  ;;  %v867_v31 = vand.u32 2147483647, %v7617_v16  ;;  %v1888_v62 = vsub.f32 1.0, %v1834_v27 }
 0x238   : > { %v7627_v10 = vpop.eup %5613  ;;  %9951 = vst [vmem:[#allocation91_spill] sm:$0xff] %v7629_v1  ;;  %v974_v58 = vadd.f32 1.0, %v920_v17  ;;  %5619 = vpow2.f32 %v1751_v26  ;;  %v7635_v49 = vmul.f32 0.70710677, %v9952_v5  ;;  %v7639_v45 = vmul.f32 %v6195_v60, %v7613_v56 }
 0x239   : > { %v1134_v38 = vmul.f32 1.0614054, %v7627_v10  ;;  %v7642_v43 = vmul.f32 0.5, %v9943_v6  ;;  %v7645_v40 = vmul.f32 0.5, %v9949_v23  ;;  %v7649_v9 = vmul.f32 %v6227_v3, %v7613_v56 }
 0x23a   : > { %v5616_v50 = vpop.eup %5615  ;;  %9953 = vst [vmem:[#allocation61_spill] sm:$0xff] %v7639_v45  ;;  %5621 = vrcp.f32 %v974_v58  ;;  %v921_v39 = vmul.f32 0.3275911, %v867_v31  ;;  %v7655_v36 = vmul.f32 %v6386_v42, %v7613_v56  ;;  %v7659_v6 = vmul.f32 %v6390_v47, %v7613_v56 }
 0x23b   : > { %9954 = vst [vmem:[#allocation92_spill] sm:$0xff] %v7649_v9  ;;  %v7651_v12 = vmul.f32 %v5616_v50, %v1565_v53  ;;  %v1188_v63 = vadd.f32 -1.4531521, %v1134_v38  ;;  %v1675_v27 = vmul.f32 %v1621_v25, %v865_v48  ;;  %v7662_v26 = vand.u32 2147483647, %v7635_v49  ;;  %v9957_v53 = vld [vmem:[#allocation65_spill] sm:$0xff] }
 0x23c   : > { %9955 = vst [vmem:[#allocation93_spill] sm:$0xff] %v7655_v36  ;;  %9956 = vst [vmem:[#allocation94_spill] sm:$0xff] %v7659_v6  ;;  %v1996_v17 = vsub.f32 0.0, %v1888_v62  ;;  %v975_v58 = vadd.f32 1.0, %v921_v39  ;;  %v7666_v50 = vmul.f32 0.70710677, %v9957_v53 }
 0x23d   : > { %v1242_v23 = vmul.f32 %v7627_v10, %v1188_v63  ;;  %v5449_v38 = vld [vmem:[%s9632_s3 + $0x30] sm:$0xff]   ;;  %v1622_v25 = vsub.f32 0.0, %v7609_v13  ;;  %v922_v52 = vmul.f32 0.3275911, %v7662_v26  ;;  %v7678_v63 = vmul.f32 0.70710677, %v9958_v4 }
 0x23e   : > { %v1889_v28 = vsub.f32 1.0, %v7651_v12  ;;  %vm1943_vm3 = vcmp.lt.f32.partialorder %v7446_v44, 0.0  ;;  %5623 = vrcp.f32 %v975_v58  ;;  %v7685_v11 = vand.u32 2147483647, %v7666_v50  ;;  %5330 = vmatprep.subr.bf16.mxu1 %v5449_v38 }
 0x23f   : > { %v7680_v39 = vpop.eup %5617  ;;  %v1296_v33 = vadd.f32 1.4214138, %v1242_v23  ;;  %v976_v14 = vadd.f32 1.0, %v922_v52  ;;  %5331 = vmatpush3.bf16.msra.mxu1 %v5449_v38  ;;  %v2050_v29 = vsel %vm1942_vm2, %v1996_v17, %v1888_v62  ;;  %v1623_v61 = vsub.f32 0.0, %v867_v31 }
 0x240   : > { %v1135_v22 = vmul.f32 1.0614054, %v7680_v39  ;;  %v923_v23 = vmul.f32 0.3275911, %v7685_v11  ;;  %5332 = vmatprep.subr.bf16.mxu1 %v5450_v55  ;;  %v1676_v45 = vmul.f32 %v1622_v25, %v7609_v13  ;;  %v7696_v48 = vand.u32 2147483647, %v7678_v63 }
 0x241   : > { %v1350_v12 = vmul.f32 %v7627_v10, %v1296_v33  ;;  %5625 = vrcp.f32 %v976_v14  ;;  %v1997_v9 = vsub.f32 0.0, %v1889_v28  ;;  %v1753_v38 = vmul.f32 1.442695, %v1675_v27 }
 0x242   : > { %v1189_v58 = vadd.f32 -1.4531521, %v1135_v22  ;;  %v5620_v21 = vpop.eup %5619  ;;  %v977_v36 = vadd.f32 1.0, %v923_v23  ;;  %v2104_v62 = vadd.f32 1.0, %v2050_v29  ;;  %v7702_v17 = vmul.f32 0.5, %v9952_v5 }
 0x243   : > { %v1404_v52 = vadd.f32 -0.28449672, %v1350_v12  ;;  %v924_v22 = vmul.f32 0.3275911, %v7696_v48  ;;  %5333 = vmatpush3.bf16.msra.mxu1 %v5450_v55  ;;  %v1677_v25 = vmul.f32 %v1623_v61, %v867_v31  ;;  %v1755_v27 = vmul.f32 1.442695, %v1676_v45 }
 0x244   : > { %v7698_v34 = vpop.eup %5621  ;;  %v1243_v33 = vmul.f32 %v7680_v39, %v1189_v58  ;;  %5627 = vrcp.f32 %v977_v36  ;;  %v1624_v23 = vsub.f32 0.0, %v7662_v26  ;;  %v7709_v5 = vmul.f32 0.70710677, %v9959_v19 }
 0x245   : > { %v1458_v14 = vmul.f32 %v7627_v10, %v1404_v52  ;;  %v1136_v13 = vmul.f32 1.0614054, %v7698_v34  ;;  %v978_v6 = vadd.f32 1.0, %v924_v22  ;;  %5629 = vpow2.f32 %v1753_v38 }
 0x246   : > { %v1297_v12 = vadd.f32 1.4214138, %v1243_v33  ;;  %v7712_v37 = vmul.f32 %v2104_v62, %v7574_v51  ;;  %v2051_v55 = vsel %vm1943_vm3, %v1997_v9, %v1889_v28  ;;  %v1757_v52 = vmul.f32 1.442695, %v1677_v25  ;;  %v9961_v62 = vld [vmem:[#allocation72_spill] sm:$0xff] }
 0x247   : > { %v1512_v29 = vadd.f32 0.2548296, %v1458_v14  ;;  %v1190_v58 = vadd.f32 -1.4531521, %v1136_v13  ;;  %5631 = vrcp.f32 %v978_v6  ;;  %v871_v38 = vand.u32 2147483647, %v7709_v5 }
 0x248   : > { %9960 = vst [vmem:[#allocation65_spill] sm:$0xff] %v7712_v37  ;;  %v1351_v61 = vmul.f32 %v7680_v39, %v1297_v12  ;;  %v7717_v31 = vpop.eup %5623  ;;  %v1678_v51 = vmul.f32 %v1624_v23, %v7662_v26  ;;  %v7725_v44 = vmul.f32 0.70710677, %v9961_v62  ;;  %5633 = vpow2.f32 %v1755_v27 }
 0x249   : > { %v1566_v45 = vmul.f32 %v7627_v10, %v1512_v29  ;;  %v1244_v36 = vmul.f32 %v7698_v34, %v1190_v58  ;;  %v1137_v22 = vmul.f32 1.0614054, %v7717_v31  ;;  %v925_v6 = vmul.f32 0.3275911, %v871_v38 }
 0x24a   : > { %v1405_v33 = vadd.f32 -0.28449672, %v1351_v61  ;;  %v1625_v25 = vsub.f32 0.0, %v7685_v11  ;;  %v7732_v12 = vand.u32 2147483647, %v7725_v44  ;;  %vm1944_vm6 = vcmp.lt.f32.partialorder %v7543_v30, 0.0 }
 0x24b   : > { %v1836_v28 = vmul.f32 %v5620_v21, %v1566_v45  ;;  %v1298_v9 = vadd.f32 1.4214138, %v1244_v36  ;;  %v7727_v14 = vpop.eup %5625  ;;  %v1191_v13 = vadd.f32 -1.4531521, %v1137_v22  ;;  %5635 = vpow2.f32 %v1757_v52 }
 0x24c   : > { %v1459_v10 = vmul.f32 %v7680_v39, %v1405_v33  ;;  %v1138_v21 = vmul.f32 1.0614054, %v7727_v14  ;;  %v979_v23 = vadd.f32 1.0, %v925_v6  ;;  %v1759_v58 = vmul.f32 1.442695, %v1678_v51 }
 0x24d   : > { %v1352_v26 = vmul.f32 %v7698_v34, %v1298_v9  ;;  %v1890_v27 = vsub.f32 1.0, %v1836_v28  ;;  %v1245_v29 = vmul.f32 %v7717_v31, %v1191_v13  ;;  %v926_v61 = vmul.f32 0.3275911, %v7732_v12 }
 0x24e   : > { %v7739_v45 = vpop.eup %5627  ;;  %v1513_v36 = vadd.f32 0.2548296, %v1459_v10  ;;  %v1192_v22 = vadd.f32 -1.4531521, %v1138_v21  ;;  %5637 = vrcp.f32 %v979_v23  ;;  %v1679_v52 = vmul.f32 %v1625_v25, %v7685_v11 }
 0x24f   : > { %v1406_v33 = vadd.f32 -0.28449672, %v1352_v26  ;;  %v1299_v37 = vadd.f32 1.4214138, %v1245_v29  ;;  %v1139_v56 = vmul.f32 1.0614054, %v7739_v45  ;;  %v5630_v6 = vpop.eup %5629  ;;  %5639 = vpow2.f32 %v1759_v58 }
 0x250   : > { %v1626_v9 = vsub.f32 0.0, %v7696_v48  ;;  %v1246_v51 = vmul.f32 %v7727_v14, %v1192_v22  ;;  %v1627_v13 = vsub.f32 0.0, %v871_v38  ;;  %v980_v1 = vadd.f32 1.0, %v926_v61 }
 0x251   : > { %v1460_v28 = vmul.f32 %v7698_v34, %v1406_v33  ;;  %v7746_v57 = vpop.eup %5631  ;;  %v1998_v10 = vsub.f32 0.0, %v1890_v27  ;;  %v1353_v26 = vmul.f32 %v7717_v31, %v1299_v37  ;;  %v1193_v21 = vadd.f32 -1.4531521, %v1139_v56 }
 0x252   : > { %v1567_v23 = vmul.f32 %v7680_v39, %v1513_v36  ;;  %v1300_v11 = vadd.f32 1.4214138, %v1246_v51  ;;  %v1140_v25 = vmul.f32 1.0614054, %v7746_v57  ;;  %v1761_v2 = vmul.f32 1.442695, %v1679_v52  ;;  %v5634_v61 = vpop.eup %5633 }
 0x253   : > { %v1514_v29 = vadd.f32 0.2548296, %v1460_v28  ;;  %v1407_v8 = vadd.f32 -0.28449672, %v1353_v26  ;;  %v1247_v33 = vmul.f32 %v7739_v45, %v1193_v21  ;;  %v1680_v22 = vmul.f32 %v1626_v9, %v7696_v48 }
 0x254   : > { %v2105_v35 = vadd.f32 1.0, %v2051_v55  ;;  %v1354_v7 = vmul.f32 %v7727_v14, %v1300_v11  ;;  %v1681_v18 = vmul.f32 %v1627_v13, %v871_v38  ;;  %5641 = vrcp.f32 %v980_v1 }
 0x255   : > { %v2052_v37 = vsel %vm1944_vm6, %v1998_v10, %v1890_v27  ;;  %v7757_v56 = vmul.f32 0.5, %v9957_v53  ;;  %v7760_v39 = vmul.f32 0.5, %v9958_v4  ;;  %v1194_v58 = vadd.f32 -1.4531521, %v1140_v25  ;;  %v5636_v36 = vpop.eup %5635 }
 0x256   : > { %v7762_v52 = vmul.f32 %v5630_v6, %v1567_v23  ;;  %v1568_v48 = vmul.f32 %v7698_v34, %v1514_v29  ;;  %v1461_v55 = vmul.f32 %v7717_v31, %v1407_v8  ;;  %v1408_v9 = vadd.f32 -0.28449672, %v1354_v7 }
 0x257   : > { %v1301_v38 = vadd.f32 1.4214138, %v1247_v33  ;;  %5643 = vpow2.f32 %v1761_v2  ;;  %v1763_v1 = vmul.f32 1.442695, %v1680_v22  ;;  %v7767_v30 = vmul.f32 0.5, %v9959_v19 }
 0x258   : > { %v7769_v53 = vpop.eup %5637  ;;  %v1515_v27 = vadd.f32 0.2548296, %v1461_v55  ;;  %v1462_v4 = vmul.f32 %v7727_v14, %v1408_v9  ;;  %v1765_v28 = vmul.f32 1.442695, %v1681_v18  ;;  %v7773_v6 = vmul.f32 0.5, %v9961_v62 }
 0x259   : > { %v2106_v51 = vadd.f32 1.0, %v2052_v37  ;;  %vm1947_vm7 = vcmp.lt.f32.partialorder %v7617_v16, 0.0  ;;  %v1355_v7 = vmul.f32 %v7739_v45, %v1301_v38  ;;  %v1248_v2 = vmul.f32 %v7746_v57, %v1194_v58  ;;  %v5640_v18 = vpop.eup %5639 }
 0x25a   : > { %v1141_v8 = vmul.f32 1.0614054, %v7769_v53  ;;  %v1891_v19 = vsub.f32 1.0, %v7762_v52  ;;  %v7780_v34 = vmul.f32 %v5634_v61, %v1568_v48  ;;  %v1569_v13 = vmul.f32 %v7717_v31, %v1515_v27 }
 0x25b   : > { %v1516_v10 = vadd.f32 0.2548296, %v1462_v4  ;;  %v7784_v62 = vmul.f32 %v2105_v35, %v7595_v54  ;;  %vm1945_vm8 = vcmp.lt.f32.partialorder %v7567_v15, 0.0  ;;  %v1409_v26 = vadd.f32 -0.28449672, %v1355_v7 }
 0x25c   : > { %v1302_v21 = vadd.f32 1.4214138, %v1248_v2  ;;  %v1195_v23 = vadd.f32 -1.4531521, %v1141_v8  ;;  %v1839_v29 = vmul.f32 %v5636_v36, %v1569_v13  ;;  %5645 = vpow2.f32 %v1763_v1 }
 0x25d   : > { %v1570_v11 = vmul.f32 %v7727_v14, %v1516_v10  ;;  %v1628_v25 = vsub.f32 0.0, %v7732_v12  ;;  %v7790_v33 = vmul.f32 %v2106_v51, %v7606_v59  ;;  %v1463_v31 = vmul.f32 %v7739_v45, %v1409_v26 }
 0x25e   : > { %v1356_v22 = vmul.f32 %v7746_v57, %v1302_v21  ;;  %v1249_v35 = vmul.f32 %v7769_v53, %v1195_v23  ;;  %v7795_v54 = vpop.eup %5641  ;;  %v1999_v61 = vsub.f32 0.0, %v1891_v19  ;;  %v1892_v37 = vsub.f32 1.0, %v7780_v34 }
 0x25f   : > { %v1893_v58 = vsub.f32 1.0, %v1839_v29  ;;  %v1840_v36 = vmul.f32 %v5640_v18, %v1570_v11  ;;  %vm1946_vm9 = vcmp.lt.f32.partialorder %v7585_v24, 0.0  ;;  %v1517_v14 = vadd.f32 0.2548296, %v1463_v31 }
 0x260   : > { %v1410_v52 = vadd.f32 -0.28449672, %v1356_v22  ;;  %v1303_v48 = vadd.f32 1.4214138, %v1249_v35  ;;  %5647 = vpow2.f32 %v1765_v28  ;;  %vm1948_vm10 = vcmp.lt.f32.partialorder %v7635_v49, 0.0 }
 0x261   : > { %v2001_v59 = vsub.f32 0.0, %v1893_v58  ;;  %v1894_v55 = vsub.f32 1.0, %v1840_v36  ;;  %v1142_v9 = vmul.f32 1.0614054, %v7795_v54  ;;  %v1682_v38 = vmul.f32 %v1628_v25, %v7732_v12  ;;  %v5644_v1 = vpop.eup %5643 }
 0x262   : > { %v1571_v27 = vmul.f32 %v7739_v45, %v1517_v14  ;;  %v1464_v4 = vmul.f32 %v7746_v57, %v1410_v52  ;;  %v1357_v51 = vmul.f32 %v7769_v53, %v1303_v48  ;;  %v7806_v7 = vmul.f32 0.70710677, %v7193_v0 }
 0x263   : > { %v7810_v28 = vmul.f32 %v6195_v60, %v7790_v33  ;;  %v7814_v2 = vmul.f32 %v6227_v3, %v7790_v33  ;;  %v2055_v12 = vsel %vm1947_vm7, %v2001_v59, %v1893_v58  ;;  %v1196_v8 = vadd.f32 -1.4531521, %v1142_v9 }
 0x264   : > { %v7820_v45 = vmul.f32 %v6386_v42, %v7790_v33  ;;  %v1841_v34 = vmul.f32 %v5644_v1, %v1571_v27  ;;  %v1518_v13 = vadd.f32 0.2548296, %v1464_v4  ;;  %v1411_v10 = vadd.f32 -0.28449672, %v1357_v51 }
 0x265   : > { %9962 = vst [vmem:[#allocation20_spill] sm:$0xff] %v7810_v28  ;;  %9963 = vst [vmem:[#allocation24_spill] sm:$0xff] %v7814_v2  ;;  %v2053_v18 = vsel %vm1945_vm8, %v1999_v61, %v1891_v19  ;;  %v2000_v26 = vsub.f32 0.0, %v1892_v37  ;;  %v1250_v21 = vmul.f32 %v7795_v54, %v1196_v8  ;;  %v873_v23 = vand.u32 2147483647, %v7806_v7 }
 0x266   : > { %9964 = vst [vmem:[#allocation72_spill] sm:$0xff] %v7820_v45  ;;  %v2109_v29 = vadd.f32 1.0, %v2055_v12  ;;  %v2002_v11 = vsub.f32 0.0, %v1894_v55  ;;  %v1572_v16 = vmul.f32 %v7746_v57, %v1518_v13  ;;  %vm1950_vm11 = vcmp.lt.f32.partialorder %v7678_v63, 0.0  ;;  %v5646_v31 = vpop.eup %5645 }
 0x267   : > { %v1767_v25 = vmul.f32 1.442695, %v1682_v38  ;;  %v7830_v22 = vmul.f32 %v6390_v47, %v7790_v33  ;;  %vm1949_vm12 = vcmp.lt.f32.partialorder %v7666_v50, 0.0  ;;  %v1465_v15 = vmul.f32 %v7769_v53, %v1411_v10 }
 0x268   : > { %v1304_v19 = vadd.f32 1.4214138, %v1250_v21  ;;  %v927_v35 = vmul.f32 0.3275911, %v873_v23  ;;  %v2107_v36 = vadd.f32 1.0, %v2053_v18  ;;  %v1895_v57 = vsub.f32 1.0, %v1841_v34 }
 0x269   : > { %v2054_v52 = vsel %vm1946_vm9, %v2000_v26, %v1892_v37  ;;  %v1842_v48 = vmul.f32 %v5646_v31, %v1572_v16  ;;  %v1519_v59 = vadd.f32 0.2548296, %v1465_v15  ;;  %v7840_v38 = vmul.f32 %v2109_v29, %v7645_v40 }
 0x26a   : > { %v5648_v9 = vpop.eup %5647  ;;  %v2056_v1 = vsel %vm1948_vm10, %v2002_v11, %v1894_v55  ;;  %v1358_v27 = vmul.f32 %v7795_v54, %v1304_v19  ;;  %5649 = vpow2.f32 %v1767_v25  ;;  %v981_v12 = vadd.f32 1.0, %v927_v35  ;;  %v9968_v11 = vld [vmem:[#allocation76_spill] sm:$0xff] }
 0x26b   : > { %9965 = vst [vmem:[#allocation95_spill] sm:$0xff] %v7840_v38  ;;  %v1896_v4 = vsub.f32 1.0, %v1842_v48  ;;  %v1573_v51 = vmul.f32 %v7769_v53, %v1519_v59  ;;  %v1629_v8 = vsub.f32 0.0, %v873_v23  ;;  %v7847_v24 = vmul.f32 %v2107_v36, %v7625_v46 }
 0x26c   : > { %v2003_v37 = vsub.f32 0.0, %v1895_v57  ;;  %v1412_v34 = vadd.f32 -0.28449672, %v1358_v27  ;;  %v7850_v13 = vmul.f32 0.70710677, %v7251_v41  ;;  %v2108_v40 = vadd.f32 1.0, %v2054_v52 }
 0x26d   : > { %9966 = vst [vmem:[#allocation96_spill] sm:$0xff] %v7847_v24  ;;  %v2004_v10 = vsub.f32 0.0, %v1896_v4  ;;  %v1843_v49 = vmul.f32 %v5648_v9, %v1573_v51  ;;  %5651 = vrcp.f32 %v981_v12  ;;  %v2110_v55 = vadd.f32 1.0, %v2056_v1 }
 0x26e   : > { %v1466_v18 = vmul.f32 %v7795_v54, %v1412_v34  ;;  %v7854_v26 = vmul.f32 0.5, %v7193_v0  ;;  %v874_v53 = vand.u32 2147483647, %v7850_v13  ;;  %v7859_v46 = vmul.f32 %v6195_v60, %v7840_v38 }
 0x26f   : > { %v2058_v21 = vsel %vm1950_vm11, %v2004_v10, %v1896_v4  ;;  %v1683_v29 = vmul.f32 %v1629_v8, %v873_v23  ;;  %v7864_v16 = vmul.f32 0.70710677, %v9968_v11  ;;  %v7868_v25 = vmul.f32 %v6227_v3, %v7840_v38 }
 0x270   : > { %9967 = vst [vmem:[#allocation97_spill] sm:$0xff] %v7859_v46  ;;  %v2057_v0 = vsel %vm1949_vm12, %v2003_v37, %v1895_v57  ;;  %vm1951_vm13 = vcmp.lt.f32.partialorder %v7709_v5, 0.0  ;;  %v1520_v31 = vadd.f32 0.2548296, %v1466_v18  ;;  %v928_v15 = vmul.f32 0.3275911, %v874_v53 }
 0x271   : > { %9969 = vst [vmem:[#allocation76_spill] sm:$0xff] %v7868_v25  ;;  %v7875_v19 = vmul.f32 %v6386_v42, %v7840_v38  ;;  %v1897_v63 = vsub.f32 1.0, %v1843_v49  ;;  %v1630_v23 = vsub.f32 0.0, %v874_v53  ;;  %v875_v35 = vand.u32 2147483647, %v7864_v16 }
 0x272   : > { %v7879_v36 = vmul.f32 %v2108_v40, %v7642_v43  ;;  %v2112_v52 = vadd.f32 1.0, %v2058_v21  ;;  %v1574_v48 = vmul.f32 %v7795_v54, %v1520_v31  ;;  %v982_v50 = vadd.f32 1.0, %v928_v15  ;;  %v9975_v21 = vld [vmem:[#allocation39_spill] sm:$0xff] }
 0x273   : > { %9970 = vst [vmem:[#allocation98_spill] sm:$0xff] %v7875_v19  ;;  %v2111_v57 = vadd.f32 1.0, %v2057_v0  ;;  %v1769_v59 = vmul.f32 1.442695, %v1683_v29  ;;  %v1684_v9 = vmul.f32 %v1630_v23, %v874_v53  ;;  %v929_v1 = vmul.f32 0.3275911, %v875_v35 }
 0x274   : > { %9971 = vst [vmem:[#allocation99_spill] sm:$0xff] %v7879_v36  ;;  %v5650_v27 = vpop.eup %5649  ;;  %v7885_v51 = vmul.f32 %v6390_v47, %v7840_v38  ;;  %v7888_v12 = vmul.f32 %v2110_v55, %v7702_v17  ;;  %v7891_v43 = vmul.f32 0.5, %v7251_v41  ;;  %v2005_v37 = vsub.f32 0.0, %v1897_v63  ;;  %v9976_v29 = vld [vmem:[#allocation16_spill] sm:$0xff]  ;;  %v9977_v0 = vld [vmem:[#allocation42_spill] sm:$0xff] }
 0x275   : > { %5653 = vrcp.f32 %v982_v50  ;;  %v7896_v34 = vmul.f32 %v2112_v52, %v7760_v39  ;;  %v7898_v40 = vmul.f32 %v5650_v27, %v1574_v48  ;;  %v7901_v10 = vmul.f32 0.5, %v9968_v11  ;;  %v9979_v52 = vld [vmem:[#allocation26_spill] sm:$0xff]  ;;  %v9980_v48 = vld [vmem:[#allocation25_spill] sm:$0xff] }
 0x276   : > { %9972 = vst [vmem:[#allocation100_spill] sm:$0xff] %v7885_v51  ;;  %9973 = vst [vmem:[#allocation101_spill] sm:$0xff] %v7888_v12  ;;  %v983_v49 = vadd.f32 1.0, %v929_v1  ;;  %v7906_v41 = vmul.f32 %v2111_v57, %v7757_v56  ;;  %5655 = vpow2.f32 %v1769_v59  ;;  %v1771_v55 = vmul.f32 1.442695, %v1684_v9  ;;  %v9978_v56 = vld [vmem:[#allocation32_spill] sm:$0xff] }
 0x277   : > { %v7903_v17 = vpop.eup %5651  ;;  %v1631_v18 = vsub.f32 0.0, %v875_v35  ;;  %v7910_v39 = vmul.f32 0.70710677, %v9975_v21  ;;  %v3031_v31 = vadd.f32 %v9977_v0, %v9976_v29  ;;  %v7916_v11 = vsel %vm1951_vm13, %v2005_v37, %v1897_v63  ;;  %v9983_v63 = vld [vmem:[#allocation23_spill] sm:$0xff]  ;;  %v9986_v29 = vld [vmem:[#allocation10_spill] sm:$0xff] }
 0x278   : > { %9974 = vst [vmem:[#allocation102_spill] sm:$0xff] %v7906_v41  ;;  %v1143_v53 = vmul.f32 1.0614054, %v7903_v17  ;;  %5657 = vrcp.f32 %v983_v49  ;;  %v7919_v15 = vmul.f32 0.5, %v9975_v21  ;;  %v3163_v23 = vrot.slane %v9978_v56, 2  ;;  %v9985_v49 = vld [vmem:[#allocation52_spill] sm:$0xff] }
 0x279   : > { %v3276_v50 = vadd.f32 %v9980_v48, %v9979_v52  ;;  %v7926_v57 = vmul.f32 %v6195_v60, %v7896_v34  ;;  %v9767_v59 = vsub.f32 1.0, %v7898_v40  ;;  %v876_v1 = vand.u32 2147483647, %v7910_v39 }
 0x27a   : > { %v1197_v9 = vadd.f32 -1.4531521, %v1143_v53  ;;  %v7932_v5 = vmul.f32 %v6227_v3, %v7896_v34  ;;  %v9984_v27 = vrot.slane %v9983_v63, 2  ;;  %v3311_v21 = vmul.f32 %v7325_v20, %v9985_v49 }
 0x27b   : > { %9981 = vst [vmem:[#allocation39_spill] sm:$0xff] %v7926_v57  ;;  %v3312_v0 = vmul.f32 %v7325_v20, %v9986_v29  ;;  %5659 = vpow2.f32 %v1771_v55  ;;  %v1685_v53 = vmul.f32 %v1631_v18, %v875_v35  ;;  %v930_v52 = vmul.f32 0.3275911, %v876_v1  ;;  %v9987_v55 = vld [vmem:[#allocation43_spill] sm:$0xff] }
 0x27c   : > { %9982 = vst [vmem:[#allocation16_spill] sm:$0xff] %v7932_v5  ;;  %v3165_v37 = vsel %vm2606_vm5, %v3163_v23, %v9984_v27  ;;  %v1251_v56 = vmul.f32 %v7903_v17, %v1197_v9  ;;  %v3379_v4 = vmul.f32 %v6925_v32, %v9985_v49  ;;  %v3380_v63 = vmul.f32 %v6925_v32, %v9986_v29 }
 0x27d   : > { %v3275_v48 = vadd.f32 %v3165_v37, %v3031_v31  ;;  %v3344_v54 = vadd.f32 %v3312_v0, %v3276_v50  ;;  %v2006_v23 = vsub.f32 0.0, %v9767_v59  ;;  %v984_v8 = vadd.f32 1.0, %v930_v52 }
 0x27e   : > { %v1305_v27 = vadd.f32 1.4214138, %v1251_v56  ;;  %v1632_v58 = vsub.f32 0.0, %v876_v1  ;;  %v3381_v35 = vmul.f32 %v6925_v32, %v9987_v55  ;;  %v3475_v18 = vrot.slane %v3379_v4, 1 }
 0x27f   : > { %v7948_v61 = vpop.eup %5653  ;;  %v3343_v9 = vadd.f32 %v3311_v21, %v3275_v48  ;;  %v3476_v31 = vrot.slane %v3380_v63, 1  ;;  %vm1952_vm14 = vcmp.lt.f32.partialorder %v7725_v44, 0.0  ;;  %v1773_v0 = vmul.f32 1.442695, %v1685_v53  ;;  %v7959_v21 = vld [vmem:[%s9631_s2 + $0x8] ss:$0 sm:$0xff] }
 0x280   : > { %v1359_v50 = vmul.f32 %v7903_v17, %v1305_v27  ;;  %v1144_v37 = vmul.f32 1.0614054, %v7948_v61  ;;  %5661 = vrcp.f32 %v984_v8  ;;  %v5656_v14 = vpop.eup %5655  ;;  %v3478_v52 = vrot.slane %v3381_v35, 1 }
 0x281   : > { %v3477_v56 = vsel %vm2361_vm4, %v3475_v18, %v3476_v31  ;;  %v3623_v4 = vmul.f32 %v7959_v21, %v9985_v49  ;;  %v3624_v48 = vmul.f32 %v7959_v21, %v9986_v29  ;;  %v1686_v8 = vmul.f32 %v1632_v58, %v876_v1 }
 0x282   : > { %v7965_v63 = vpop.eup %5657  ;;  %v1413_v27 = vadd.f32 -0.28449672, %v1359_v50  ;;  %v1198_v53 = vadd.f32 -1.4531521, %v1144_v37  ;;  %v3587_v59 = vadd.f32 %v3477_v56, %v3343_v9  ;;  %v3479_v35 = vsel %vm2361_vm4, %v3476_v31, %v3478_v52  ;;  %v9988_v50 = vld [vmem:[#allocation19_spill] sm:$0xff] }
 0x283   : > { %v1145_v18 = vmul.f32 1.0614054, %v7965_v63  ;;  %v3625_v25 = vmul.f32 %v7959_v21, %v9987_v55  ;;  %v3719_v46 = vrot.slane %v3623_v4, 2  ;;  %v3588_v12 = vadd.f32 %v3479_v35, %v3344_v54  ;;  %v9989_v4 = vld [vmem:[#allocation21_spill] sm:$0xff] }
 0x284   : > { %v1467_v41 = vmul.f32 %v7903_v17, %v1413_v27  ;;  %v1252_v19 = vmul.f32 %v7948_v61, %v1198_v53  ;;  %v3720_v51 = vrot.slane %v3624_v48, 2  ;;  %v2757_v58 = vmul.f32 %v9988_v50, %v9985_v49 }
 0x285   : > { %v1199_v2 = vadd.f32 -1.4531521, %v1145_v18  ;;  %v3722_v28 = vrot.slane %v3625_v25, 2  ;;  %v2758_v1 = vmul.f32 %v9988_v50, %v9986_v29  ;;  %v5660_v9 = vpop.eup %5659  ;;  %v2826_v56 = vmul.f32 %v6386_v42, %v9985_v49 }
 0x286   : > { %v1521_v31 = vadd.f32 0.2548296, %v1467_v41  ;;  %v1306_v37 = vadd.f32 1.4214138, %v1252_v19  ;;  %v3721_v55 = vsel %vm2606_vm5, %v3719_v46, %v3720_v51  ;;  %vm1953_vm15 = vcmp.lt.f32.partialorder %v7806_v7, 0.0  ;;  %v9990_v46 = vld [vmem:[#allocation27_spill] sm:$0xff] }
 0x287   : > { %v1253_v54 = vmul.f32 %v7965_v63, %v1199_v2  ;;  %v3723_v25 = vsel %vm2606_vm5, %v3720_v51, %v3722_v28  ;;  %v7983_v52 = vadd.f32 %v3721_v55, %v3587_v59  ;;  %v2789_v48 = vadd.f32 %v2757_v58, %v9989_v4 }
 0x288   : > { %v1575_v27 = vmul.f32 %v7903_v17, %v1521_v31  ;;  %v1360_v41 = vmul.f32 %v7948_v61, %v1306_v37  ;;  %v7988_v19 = vadd.f32 %v3723_v25, %v3588_v12  ;;  %v2790_v53 = vadd.f32 %v2758_v1, %v9990_v46 }
 0x289   : > { %v7993_v18 = vmul.f32 %v6386_v42, %v7896_v34  ;;  %v9992_v2 = vsub.f32 1.0, %v7898_v40  ;;  %v1307_v51 = vadd.f32 1.4214138, %v1253_v54  ;;  %v8000_v59 = vmul.f32 0.70710677, %v7983_v52 }
 0x28a   : > { %v8002_v17 = vpop.eup %5661  ;;  %v1845_v35 = vmul.f32 %v5656_v14, %v1575_v27  ;;  %v1414_v12 = vadd.f32 -0.28449672, %v1360_v41  ;;  %5663 = vpow2.f32 %v1773_v0  ;;  %v8005_v58 = vmul.f32 0.70710677, %v7988_v19  ;;  %v9993_v0 = vld [vmem:[#allocation44_spill] sm:$0xff] }
 0x28b   : > { %9991 = vst [vmem:[#allocation42_spill] sm:$0xff] %v7993_v18  ;;  %v2060_v28 = vsel %vm1952_vm14, %v2006_v23, %v9992_v2  ;;  %v1361_v1 = vmul.f32 %v7965_v63, %v1307_v51  ;;  %v1146_v31 = vmul.f32 1.0614054, %v8002_v17  ;;  %v3927_v40 = vand.u32 2147483647, %v8000_v59 }
 0x28c   : > { %v2924_v44 = vrot.slane %v2826_v56, 1  ;;  %v1899_v23 = vsub.f32 1.0, %v1845_v35  ;;  %v1468_v37 = vmul.f32 %v7948_v61, %v1414_v12  ;;  %v1775_v55 = vmul.f32 1.442695, %v1686_v8 }
 0x28d   : > { %v3928_v54 = vand.u32 2147483647, %v8005_v58  ;;  %v1415_v25 = vadd.f32 -0.28449672, %v1361_v1  ;;  %v1200_v14 = vadd.f32 -1.4531521, %v1146_v31 }
 0x28e   : > { %v3959_v4 = vmul.f32 0.3275911, %v3927_v40  ;;  %v9994_v27 = vrot.slane %v9993_v0, 1  ;;  %v2007_v46 = vsub.f32 0.0, %v1899_v23  ;;  %v1522_v2 = vadd.f32 0.2548296, %v1468_v37 }
 0x28f   : > { %v3960_v51 = vmul.f32 0.3275911, %v3928_v54  ;;  %v4375_v38 = vsub.f32 0.0, %v3927_v40  ;;  %v1469_v45 = vmul.f32 %v7965_v63, %v1415_v25  ;;  %v1254_v56 = vmul.f32 %v8002_v17, %v1200_v14 }
 0x290   : > { %v2926_v41 = vsel %vm2361_vm4, %v2924_v44, %v9994_v27  ;;  %v3991_v35 = vadd.f32 1.0, %v3959_v4  ;;  %v4376_v12 = vsub.f32 0.0, %v3928_v54  ;;  %v2061_v8 = vsel %vm1953_vm15, %v2007_v46, %v1899_v23 }
 0x291   : > { %v1576_v1 = vmul.f32 %v7948_v61, %v1522_v2  ;;  %vm1954_vm0 = vcmp.lt.f32.partialorder %v7850_v13, 0.0  ;;  %v3992_v31 = vadd.f32 1.0, %v3960_v51  ;;  %v4407_v0 = vmul.f32 %v4375_v38, %v3927_v40  ;;  %v9995_v38 = vld [vmem:[#allocation51_spill] sm:$0xff] }
 0x292   : > { %v2115_v44 = vadd.f32 1.0, %v2061_v8  ;;  %v1523_v27 = vadd.f32 0.2548296, %v1469_v45  ;;  %v1308_v37 = vadd.f32 1.4214138, %v1254_v56  ;;  %5665 = vrcp.f32 %v3991_v35 }
 0x293   : > { %v2113_v36 = vadd.f32 1.0, %v7916_v11  ;;  %v2114_v25 = vadd.f32 1.0, %v2060_v28  ;;  %v1846_v24 = vmul.f32 %v5660_v9, %v1576_v1  ;;  %5667 = vrcp.f32 %v3992_v31 }
 0x294   : > { %v1577_v14 = vmul.f32 %v7965_v63, %v1523_v27  ;;  %v1362_v7 = vmul.f32 %v8002_v17, %v1308_v37  ;;  %5669 = vpow2.f32 %v1775_v55  ;;  %v3033_v23 = vadd.f32 %v2926_v41, %v2789_v48  ;;  %v5664_v61 = vpop.eup %5663  ;;  %v9999_v37 = vld [vmem:[#allocation62_spill] sm:$0xff] }
 0x295   : > { %v1900_v4 = vsub.f32 1.0, %v1846_v24  ;;  %v4408_v46 = vmul.f32 %v4376_v12, %v3928_v54  ;;  %v4439_v2 = vmul.f32 1.442695, %v4407_v0  ;;  %v3034_v40 = vadd.f32 %v9995_v38, %v2790_v53 }
 0x296   : > { %v8029_v11 = vmul.f32 %v6390_v47, %v7896_v34  ;;  %v8032_v63 = vmul.f32 %v2115_v44, %v7854_v26  ;;  %v1847_v28 = vmul.f32 %v5664_v61, %v1577_v14  ;;  %v1416_v24 = vadd.f32 -0.28449672, %v1362_v7  ;;  %v9998_v44 = vld [vmem:[#allocation18_spill] sm:$0xff] }
 0x297   : > { %v2008_v48 = vsub.f32 0.0, %v1900_v4  ;;  %v8036_v55 = vmul.f32 %v2113_v36, %v7767_v30  ;;  %v8039_v53 = vmul.f32 %v2114_v25, %v7773_v6  ;;  %v8042_v54 = vmul.f32 0.5, %v7983_v52 }
 0x298   : > { %v3070_v41 = vmul.f32 %v6390_v47, %v9985_v49  ;;  %v1470_v26 = vmul.f32 %v8002_v17, %v1416_v24  ;;  %5671 = vpow2.f32 %v4439_v2  ;;  %v4441_v56 = vmul.f32 1.442695, %v4408_v46 }
 0x299   : > { %9996 = vst [vmem:[#allocation32_spill] sm:$0xff] %v8036_v55  ;;  %9997 = vst [vmem:[#allocation26_spill] sm:$0xff] %v8039_v53  ;;  %v3071_v35 = vmul.f32 %v6390_v47, %v9986_v29  ;;  %v8051_v30 = vmul.f32 %v6195_v60, %v8032_v63  ;;  %v8055_v6 = vmul.f32 %v6227_v3, %v8032_v63  ;;  %vm1955_vm2 = vcmp.lt.f32.partialorder %v7864_v16, 0.0 }
 0x29a   : > { %v8059_v36 = vmul.f32 %v6386_v42, %v8032_v63  ;;  %v2062_v52 = vsel %vm1954_vm0, %v2008_v48, %v1900_v4  ;;  %v1901_v12 = vsub.f32 1.0, %v1847_v28  ;;  %v1524_v8 = vadd.f32 0.2548296, %v1470_v26  ;;  %v10000_v28 = vld [vmem:[#allocation56_spill] sm:$0xff] }
 0x29b   : > { %v3168_v1 = vrot.slane %v3070_v41, 2  ;;  %v3169_v31 = vrot.slane %v3071_v35, 2  ;;  %v3313_v27 = vmul.f32 %v7325_v20, %v9998_v44  ;;  %v3314_v25 = vmul.f32 %v7325_v20, %v9999_v37 }
 0x29c   : > { %v8064_v0 = vpop.eup %5665  ;;  %v3382_v14 = vmul.f32 %v6925_v32, %v9998_v44  ;;  %v3383_v13 = vmul.f32 %v6925_v32, %v9999_v37  ;;  %v1578_v61 = vmul.f32 %v8002_v17, %v1524_v8  ;;  %v3626_v2 = vmul.f32 %v7959_v21, %v9998_v44 }
 0x29d   : > { %v8074_v7 = vpop.eup %5667  ;;  %v4087_v4 = vmul.f32 1.0614054, %v8064_v0  ;;  %v3170_v46 = vsel %vm2606_vm5, %v3168_v1, %v3169_v31  ;;  %v10001_v24 = vrot.slane %v10000_v28, 2  ;;  %v3627_v35 = vmul.f32 %v7959_v21, %v9999_v37 }
 0x29e   : > { %v5670_v38 = vpop.eup %5669  ;;  %v4088_v48 = vmul.f32 1.0614054, %v8074_v7  ;;  %v3277_v26 = vadd.f32 %v3170_v46, %v3033_v23  ;;  %v2009_v51 = vsub.f32 0.0, %v1901_v12  ;;  %vm1956_vm3 = vcmp.lt.f32.partialorder %v7910_v39, 0.0  ;;  %v10002_v46 = vld [vmem:[#allocation69_spill] sm:$0xff] }
 0x29f   : > { %v3172_v41 = vsel %vm2606_vm5, %v3169_v31, %v10001_v24  ;;  %v1848_v17 = vmul.f32 %v5670_v38, %v1578_v61  ;;  %v4119_v8 = vadd.f32 -1.4531521, %v4087_v4  ;;  %v3480_v5 = vrot.slane %v3382_v14, 1 }
 0x2a0   : > { %v3278_v45 = vadd.f32 %v3172_v41, %v3034_v40  ;;  %v4120_v1 = vadd.f32 -1.4531521, %v4088_v48  ;;  %v3345_v9 = vadd.f32 %v3313_v27, %v3277_v26  ;;  %v3481_v57 = vrot.slane %v3383_v13, 1 }
 0x2a1   : > { %v1902_v18 = vsub.f32 1.0, %v1848_v17  ;;  %v4151_v53 = vmul.f32 %v8064_v0, %v4119_v8  ;;  %v3724_v55 = vrot.slane %v3626_v2, 2  ;;  %v10003_v24 = vrot.slane %v10002_v46, 1 }
 0x2a2   : > { %v3346_v28 = vadd.f32 %v3314_v25, %v3278_v45  ;;  %v4152_v23 = vmul.f32 %v8074_v7, %v4120_v1  ;;  %v3482_v31 = vsel %vm2361_vm4, %v3480_v5, %v3481_v57  ;;  %v3725_v40 = vrot.slane %v3627_v35, 2  ;;  %v5672_v4 = vpop.eup %5671  ;;  %v10004_v25 = vld [vmem:[#allocation71_spill] sm:$0xff] }
 0x2a3   : > { %v3484_v61 = vsel %vm2361_vm4, %v3481_v57, %v10003_v24  ;;  %v2063_v27 = vsel %vm1955_vm2, %v2009_v51, %v1901_v12  ;;  %v4183_v14 = vadd.f32 1.4214138, %v4151_v53  ;;  %v3589_v13 = vadd.f32 %v3482_v31, %v3345_v9  ;;  %v10007_v9 = vld [vmem:[#allocation12_spill] sm:$0xff] }
 0x2a4   : > { %v3590_v38 = vadd.f32 %v3484_v61, %v3346_v28  ;;  %v2116_v48 = vadd.f32 1.0, %v2062_v52  ;;  %v4184_v41 = vadd.f32 1.4214138, %v4152_v23  ;;  %v3726_v45 = vsel %vm2606_vm5, %v3724_v55, %v3725_v40  ;;  %v10006_v61 = vld [vmem:[#allocation6_spill] sm:$0xff] }
 0x2a5   : > { %v10005_v2 = vrot.slane %v10004_v25, 2  ;;  %v2010_v26 = vsub.f32 0.0, %v1902_v18  ;;  %v4215_v17 = vmul.f32 %v8064_v0, %v4183_v14  ;;  %v3833_v57 = vadd.f32 %v3726_v45, %v3589_v13 }
 0x2a6   : > { %v2117_v8 = vadd.f32 1.0, %v2063_v27  ;;  %v8104_v16 = vmul.f32 0.5, %v7988_v19  ;;  %v4216_v51 = vmul.f32 %v8074_v7, %v4184_v41  ;;  %5673 = vpow2.f32 %v4441_v56 }
 0x2a7   : > { %v3728_v5 = vsel %vm2606_vm5, %v3725_v40, %v10005_v2  ;;  %v8110_v55 = vmul.f32 %v6390_v47, %v8032_v63  ;;  %v4247_v53 = vadd.f32 -0.28449672, %v4215_v17  ;;  %v8112_v52 = vmul.f32 0.70710677, %v3833_v57 }
 0x2a8   : > { %v8101_v35 = vadd.f32 %v3728_v5, %v3590_v38  ;;  %v4248_v28 = vadd.f32 -0.28449672, %v4216_v51  ;;  %v8120_v23 = vmul.f32 %v2116_v48, %v7891_v43  ;;  %v2064_v56 = vsel %vm1956_vm3, %v2010_v26, %v1902_v18 }
 0x2a9   : > { %v4279_v31 = vmul.f32 %v8064_v0, %v4247_v53  ;;  %v3929_v46 = vand.u32 2147483647, %v8112_v52  ;;  %v8127_v24 = vmul.f32 %v2117_v8, %v7901_v10  ;;  %v2201_v40 = vmul.f32 %v10006_v61, %v9985_v49 }
 0x2aa   : > { %v8117_v19 = vmul.f32 0.70710677, %v8101_v35  ;;  %v2271_v27 = vmul.f32 %v6195_v60, %v9985_v49  ;;  %v2272_v43 = vmul.f32 %v6195_v60, %v9986_v29  ;;  %v4280_v14 = vmul.f32 %v8074_v7, %v4248_v28 }
 0x2ab   : > { %v4311_v39 = vadd.f32 0.2548296, %v4279_v31  ;;  %v3961_v13 = vmul.f32 0.3275911, %v3929_v46  ;;  %v8137_v38 = vadd.f32 1.0, %v2064_v56  ;;  %vm4567_vm6 = vcmp.lt.f32.partialorder %v8000_v59, 0.0 }
 0x2ac   : > { %v3930_v18 = vand.u32 2147483647, %v8117_v19  ;;  %v8140_v10 = vmul.f32 0.5, %v3833_v57  ;;  %v4377_v48 = vsub.f32 0.0, %v3929_v46  ;;  %v2202_v41 = vmul.f32 %v10006_v61, %v9986_v29 }
 0x2ad   : > { %v4312_v45 = vadd.f32 0.2548296, %v4280_v14  ;;  %v4343_v25 = vmul.f32 %v8064_v0, %v4311_v39  ;;  %v3993_v5 = vadd.f32 1.0, %v3961_v13  ;;  %vm4568_vm7 = vcmp.lt.f32.partialorder %v8005_v58, 0.0 }
 0x2ae   : > { %v3962_v2 = vmul.f32 0.3275911, %v3930_v18  ;;  %v4378_v26 = vsub.f32 0.0, %v3930_v18  ;;  %v4409_v17 = vmul.f32 %v4377_v48, %v3929_v46  ;;  %v2372_v8 = vrot.slane %v2271_v27, 1 }
 0x2af   : > { %v2373_v51 = vrot.slane %v2272_v43, 1  ;;  %v4344_v53 = vmul.f32 %v8074_v7, %v4312_v45  ;;  %v4503_v28 = vmul.f32 %v5672_v4, %v4343_v25  ;;  %5675 = vrcp.f32 %v3993_v5 }
 0x2b0   : > { %v3994_v57 = vadd.f32 1.0, %v3962_v2  ;;  %v5674_v56 = vpop.eup %5673  ;;  %v4410_v31 = vmul.f32 %v4378_v26, %v3930_v18  ;;  %v4443_v12 = vmul.f32 1.442695, %v4409_v17  ;;  %v10008_v0 = vrot.slane %v10007_v9, 1 }
 0x2b1   : > { %v2374_v14 = vsel %vm2361_vm4, %v2372_v8, %v2373_v51  ;;  %v4504_v13 = vmul.f32 %v5674_v56, %v4344_v53  ;;  %v4535_v1 = vsub.f32 1.0, %v4503_v28  ;;  %v2516_v7 = vmul.f32 %v6227_v3, %v9985_v49  ;;  %v10009_v53 = vld [vmem:[#allocation55_spill] sm:$0xff] }
 0x2b2   : > { %v2376_v39 = vsel %vm2361_vm4, %v2373_v51, %v10008_v0  ;;  %5677 = vrcp.f32 %v3994_v57  ;;  %v2478_v46 = vadd.f32 %v2374_v14, %v2201_v40  ;;  %v4445_v27 = vmul.f32 1.442695, %v4410_v31 }
 0x2b3   : > { %5679 = vpow2.f32 %v4443_v12  ;;  %v2479_v43 = vadd.f32 %v2376_v39, %v2202_v41  ;;  %v4536_v4 = vsub.f32 1.0, %v4504_v13  ;;  %v4599_v48 = vsub.f32 0.0, %v4535_v1  ;;  %v10011_v13 = vld [vmem:[#allocation67_spill] sm:$0xff] }
 0x2b4   : > { %v2517_v18 = vmul.f32 %v6227_v3, %v9986_v29  ;;  %v2759_v9 = vmul.f32 %v9988_v50, %v9998_v44  ;;  %5681 = vpow2.f32 %v4445_v27  ;;  %v2617_v45 = vrot.slane %v2516_v7, 2 }
 0x2b5   : > { %v2760_v25 = vmul.f32 %v9988_v50, %v9999_v37  ;;  %v2829_v12 = vmul.f32 %v6386_v42, %v9998_v44  ;;  %v4600_v40 = vsub.f32 0.0, %v4536_v4  ;;  %v4631_v49 = vsel %vm4567_vm6, %v4599_v48, %v4535_v1 }
 0x2b6   : > { %v2618_v41 = vrot.slane %v2517_v18, 2  ;;  %v2830_v2 = vmul.f32 %v6386_v42, %v9999_v37  ;;  %v4663_v29 = vadd.f32 1.0, %v4631_v49  ;;  %v3073_v26 = vmul.f32 %v6390_v47, %v9998_v44  ;;  %v10014_v49 = vld [vmem:[#allocation77_spill] sm:$0xff] }
 0x2b7   : > { %v2929_v5 = vrot.slane %v2829_v12, 1  ;;  %v3074_v17 = vmul.f32 %v6390_v47, %v9999_v37  ;;  %v4632_v8 = vsel %vm4568_vm7, %v4600_v40, %v4536_v4  ;;  %v10010_v59 = vrot.slane %v10009_v53, 2 }
 0x2b8   : > { %v2619_v51 = vsel %vm2606_vm5, %v2617_v45, %v2618_v41  ;;  %v2930_v28 = vrot.slane %v2830_v2, 1  ;;  %v4664_v57 = vadd.f32 1.0, %v4632_v8  ;;  %v4695_v56 = vmul.f32 %v4663_v29, %v8042_v54  ;;  %v10015_v2 = vld [vmem:[#allocation80_spill] sm:$0xff] }
 0x2b9   : > { %v2621_v1 = vsel %vm2606_vm5, %v2618_v41, %v10010_v59  ;;  %v2723_v31 = vadd.f32 %v2619_v51, %v2478_v46  ;;  %v8176_v0 = vpop.eup %5675  ;;  %v10012_v27 = vrot.slane %v10011_v13, 1  ;;  %v3173_v7 = vrot.slane %v3073_v26, 2  ;;  %v10013_v46 = vld [vmem:[#allocation68_spill] sm:$0xff] }
 0x2ba   : > { %v2724_v14 = vadd.f32 %v2621_v1, %v2479_v43  ;;  %v2931_v39 = vsel %vm2361_vm4, %v2929_v5, %v2930_v28  ;;  %v3174_v4 = vrot.slane %v3074_v17, 2  ;;  %v4696_v48 = vmul.f32 %v4664_v57, %v8104_v16 }
 0x2bb   : > { %v2933_v58 = vsel %vm2361_vm4, %v2930_v28, %v10012_v27  ;;  %v4089_v18 = vmul.f32 1.0614054, %v8176_v0  ;;  %v2791_v45 = vadd.f32 %v2759_v9, %v2723_v31  ;;  %v3176_v43 = vrot.slane %v10013_v46, 2 }
 0x2bc   : > { %v2792_v12 = vadd.f32 %v2760_v25, %v2724_v14  ;;  %v8184_v40 = vpop.eup %5677  ;;  %v3175_v54 = vsel %vm2606_vm5, %v3173_v7, %v3174_v4  ;;  %v3315_v41 = vmul.f32 %v7325_v20, %v10014_v49  ;;  %v3316_v29 = vmul.f32 %v7325_v20, %v10015_v2 }
 0x2bd   : > { %v8192_v5 = vpop.eup %5679  ;;  %v4727_v26 = vpack.c.bf16 %v4696_v48, %v4695_v56  ;;  %v4090_v16 = vmul.f32 1.0614054, %v8184_v40  ;;  %v4121_v17 = vadd.f32 -1.4531521, %v4089_v18  ;;  %v3035_v9 = vadd.f32 %v2931_v39, %v2791_v45  ;;  %v10016_v56 = vld [vmem:[#allocation38_spill] sm:$0xff] }
 0x2be   : > { %v3036_v25 = vadd.f32 %v2933_v58, %v2792_v12  ;;  %v3177_v8 = vsel %vm2606_vm5, %v3174_v4, %v3176_v43  ;;  %v3385_v51 = vmul.f32 %v6925_v32, %v10014_v49  ;;  %v3386_v53 = vmul.f32 %v6925_v32, %v10015_v2  ;;  %v8200_v59 = vpop.eup %5681 }
 0x2bf   : > { %5334 = vmatprep.mubr.bf16.mxu1 %v4727_v26  ;;  %v4122_v1 = vadd.f32 -1.4531521, %v4090_v16  ;;  %v4153_v28 = vmul.f32 %v8176_v0, %v4121_v17  ;;  %v3279_v57 = vadd.f32 %v3175_v54, %v3035_v9  ;;  %v3387_v31 = vmul.f32 %v6925_v32, %v10016_v56 }
 0x2c0   : > { %v3280_v14 = vadd.f32 %v3177_v8, %v3036_v25  ;;  %v3485_v39 = vrot.slane %v3385_v51, 1  ;;  %v3486_v13 = vrot.slane %v3386_v53, 1  ;;  %v3629_v27 = vmul.f32 %v7959_v21, %v10014_v49 }
 0x2c1   : > { %v4154_v58 = vmul.f32 %v8184_v40, %v4122_v1  ;;  %v4185_v7 = vadd.f32 1.4214138, %v4153_v28  ;;  %v3347_v4 = vadd.f32 %v3315_v41, %v3279_v57  ;;  %v3488_v48 = vrot.slane %v3387_v31, 1 }
 0x2c2   : > { %v3348_v18 = vadd.f32 %v3316_v29, %v3280_v14  ;;  %v3487_v45 = vsel %vm2361_vm4, %v3485_v39, %v3486_v13  ;;  %v3630_v12 = vmul.f32 %v7959_v21, %v10015_v2  ;;  %v3631_v54 = vmul.f32 %v7959_v21, %v10016_v56 }
 0x2c3   : > { %v4186_v46 = vadd.f32 1.4214138, %v4154_v58  ;;  %v4217_v43 = vmul.f32 %v8176_v0, %v4185_v7  ;;  %v3489_v26 = vsel %vm2361_vm4, %v3486_v13, %v3488_v48  ;;  %v3591_v16 = vadd.f32 %v3487_v45, %v3347_v4 }
 0x2c4   : > { %v3592_v17 = vadd.f32 %v3489_v26, %v3348_v18  ;;  %v3729_v9 = vrot.slane %v3629_v27, 2  ;;  %v3730_v25 = vrot.slane %v3630_v12, 2  ;;  %v3732_v41 = vrot.slane %v3631_v54, 2  ;;  %v10017_v54 = vld [vmem:[#allocation64_spill] sm:$0xff] }
 0x2c5   : > { %v8217_v29 = vmul.f32 %v8137_v38, %v7919_v15  ;;  %v8220_v8 = vmul.f32 0.5, %v8101_v35  ;;  %v4218_v51 = vmul.f32 %v8184_v40, %v4186_v46  ;;  %v4249_v53 = vadd.f32 -0.28449672, %v4217_v43 }
 0x2c6   : > { %v3731_v1 = vsel %vm2606_vm5, %v3729_v9, %v3730_v25  ;;  %v3733_v28 = vsel %vm2606_vm5, %v3730_v25, %v3732_v41  ;;  %v2274_v57 = vmul.f32 %v6195_v60, %v9998_v44  ;;  %v2275_v56 = vmul.f32 %v6195_v60, %v9999_v37 }
 0x2c7   : > { %v4250_v31 = vadd.f32 -0.28449672, %v4218_v51  ;;  %v4281_v15 = vmul.f32 %v8176_v0, %v4249_v53  ;;  %v3835_v38 = vadd.f32 %v3731_v1, %v3591_v16  ;;  %v8230_v14 = vadd.f32 %v3733_v28, %v3592_v17 }
 0x2c8   : > { %v2203_v35 = vmul.f32 %v10006_v61, %v9998_v44  ;;  %v2204_v39 = vmul.f32 %v10006_v61, %v9999_v37  ;;  %v2377_v13 = vrot.slane %v2274_v57, 1  ;;  %v2378_v27 = vrot.slane %v2275_v56, 1 }
 0x2c9   : > { %v4282_v58 = vmul.f32 %v8184_v40, %v4250_v31  ;;  %v4313_v7 = vadd.f32 0.2548296, %v4281_v15  ;;  %v2519_v4 = vmul.f32 %v6227_v3, %v9998_v44  ;;  %v2520_v48 = vmul.f32 %v6227_v3, %v9999_v37 }
 0x2ca   : > { %v8241_v18 = vmul.f32 0.70710677, %v3835_v38  ;;  %v8244_v45 = vmul.f32 0.70710677, %v8230_v14  ;;  %v2379_v12 = vsel %vm2361_vm4, %v2377_v13, %v2378_v27  ;;  %v10018_v46 = vrot.slane %v10017_v54, 1 }
 0x2cb   : > { %v4314_v26 = vadd.f32 0.2548296, %v4282_v58  ;;  %v4345_v16 = vmul.f32 %v8176_v0, %v4313_v7  ;;  %v2480_v17 = vadd.f32 %v2379_v12, %v2203_v35  ;;  %v8253_v44 = vmul.f32 %v6195_v60, %v8217_v29 }
 0x2cc   : > { %v2381_v43 = vsel %vm2361_vm4, %v2378_v27, %v10018_v46  ;;  %vm4569_vm8 = vcmp.lt.f32.partialorder %v8112_v52, 0.0  ;;  %v3931_v37 = vand.u32 2147483647, %v8241_v18  ;;  %v3932_v25 = vand.u32 2147483647, %v8244_v45 }
 0x2cd   : > { %v2481_v9 = vadd.f32 %v2381_v43, %v2204_v39  ;;  %v4346_v41 = vmul.f32 %v8184_v40, %v4314_v26  ;;  %v4505_v51 = vmul.f32 %v8192_v5, %v4345_v16  ;;  %v2622_v53 = vrot.slane %v2519_v4, 2  ;;  %v10019_v39 = vld [vmem:[#allocation66_spill] sm:$0xff] }
 0x2ce   : > { %v2623_v1 = vrot.slane %v2520_v48, 2  ;;  %v8262_v0 = vmul.f32 %v6227_v3, %v8217_v29  ;;  %v3963_v28 = vmul.f32 0.3275911, %v3931_v37  ;;  %v3964_v57 = vmul.f32 0.3275911, %v3932_v25 }
 0x2cf   : > { %v4379_v56 = vsub.f32 0.0, %v3931_v37  ;;  %v4506_v31 = vmul.f32 %v8200_v59, %v4346_v41  ;;  %v4537_v15 = vsub.f32 1.0, %v4505_v51  ;;  %v10020_v13 = vrot.slane %v10019_v39, 2 }
 0x2d0   : > { %v2624_v35 = vsel %vm2606_vm5, %v2622_v53, %v2623_v1  ;;  %v3995_v27 = vadd.f32 1.0, %v3963_v28  ;;  %v3996_v5 = vadd.f32 1.0, %v3964_v57  ;;  %v4380_v58 = vsub.f32 0.0, %v3932_v25 }
 0x2d1   : > { %v2626_v40 = vsel %vm2606_vm5, %v2623_v1, %v10020_v13  ;;  %v4411_v7 = vmul.f32 %v4379_v56, %v3931_v37  ;;  %v4538_v4 = vsub.f32 1.0, %v4506_v31  ;;  %v4601_v48 = vsub.f32 0.0, %v4537_v15  ;;  %v10021_v31 = vld [vmem:[#allocation82_spill] sm:$0xff] }
 0x2d2   : > { %v2725_v12 = vadd.f32 %v2624_v35, %v2480_v17  ;;  %v2726_v54 = vadd.f32 %v2626_v40, %v2481_v9  ;;  %vm4570_vm9 = vcmp.lt.f32.partialorder %v8117_v19, 0.0  ;;  %v8270_v46 = vmul.f32 0.5, %v3835_v38  ;;  %v10022_v35 = vld [vmem:[#allocation70_spill] sm:$0xff] }
 0x2d3   : > { %5683 = vrcp.f32 %v3995_v27  ;;  %v2761_v59 = vmul.f32 %v9988_v50, %v10014_v49  ;;  %v4602_v43 = vsub.f32 0.0, %v4538_v4  ;;  %v4633_v26 = vsel %vm4569_vm8, %v4601_v48, %v4537_v15  ;;  %v10023_v27 = vld [vmem:[#allocation17_spill] sm:$0xff] }
 0x2d4   : > { %5685 = vrcp.f32 %v3996_v5  ;;  %v2762_v16 = vmul.f32 %v9988_v50, %v10015_v2  ;;  %v4665_v37 = vadd.f32 1.0, %v4633_v26  ;;  %v4412_v41 = vmul.f32 %v4380_v58, %v3932_v25  ;;  %v10026_v26 = vld [vmem:[#allocation86_spill] sm:$0xff] }
 0x2d5   : > { %v2793_v17 = vadd.f32 %v2761_v59, %v2725_v12  ;;  %v2832_v19 = vmul.f32 %v6386_v42, %v10014_v49  ;;  %v4634_v38 = vsel %vm4570_vm9, %v4602_v43, %v4538_v4  ;;  %v4447_v9 = vmul.f32 1.442695, %v4411_v7  ;;  %v10024_v7 = vld [vmem:[#allocation81_spill] sm:$0xff] }
 0x2d6   : > { %v2794_v51 = vadd.f32 %v2762_v16, %v2726_v54  ;;  %v2833_v53 = vmul.f32 %v6386_v42, %v10015_v2  ;;  %v4666_v1 = vadd.f32 1.0, %v4634_v38  ;;  %v4697_v52 = vmul.f32 %v4665_v37, %v8140_v10 }
 0x2d7   : > { %v2934_v28 = vrot.slane %v2832_v19, 1  ;;  %v3076_v57 = vmul.f32 %v6390_v47, %v10014_v49  ;;  %v3077_v25 = vmul.f32 %v6390_v47, %v10015_v2  ;;  %v3181_v15 = vrot.slane %v10021_v31, 2 }
 0x2d8   : > { %v2935_v56 = vrot.slane %v2833_v53, 1  ;;  %v3317_v39 = vmul.f32 %v7325_v20, %v10022_v35  ;;  %v4698_v13 = vmul.f32 %v4666_v1, %v8220_v8  ;;  %v3318_v5 = vmul.f32 %v7325_v20, %v10023_v27 }
 0x2d9   : > { %v3178_v40 = vrot.slane %v3076_v57, 2  ;;  %v3388_v10 = vmul.f32 %v6925_v32, %v10022_v35  ;;  %v10025_v4 = vrot.slane %v10024_v7, 1  ;;  %v3179_v12 = vrot.slane %v3077_v25, 2 }
 0x2da   : > { %v2936_v58 = vsel %vm2361_vm4, %v2934_v28, %v2935_v56  ;;  %v3389_v54 = vmul.f32 %v6925_v32, %v10023_v27  ;;  %v4728_v59 = vpack.c.bf16 %v4698_v13, %v4697_v52  ;;  %v3390_v16 = vmul.f32 %v6925_v32, %v10026_v26 }
 0x2db   : > { %v2938_v48 = vsel %vm2361_vm4, %v2935_v56, %v10025_v4  ;;  %v3037_v43 = vadd.f32 %v2936_v58, %v2793_v17  ;;  %v3180_v37 = vsel %vm2606_vm5, %v3178_v40, %v3179_v12  ;;  %v3182_v19 = vsel %vm2606_vm5, %v3179_v12, %v3181_v15 }
 0x2dc   : > { %v3038_v8 = vadd.f32 %v2938_v48, %v2794_v51  ;;  %v3490_v38 = vrot.slane %v3388_v10, 1  ;;  %v3491_v53 = vrot.slane %v3389_v54, 1  ;;  %5335 = vmatmul.mubr.bf16.vlgmr.msra.gmra.mrb[36].mxu1 %v4728_v59  ;;  %v3493_v56 = vrot.slane %v3390_v16, 1 }
 0x2dd   : > { %v8305_v1 = vpop.eup %5683  ;;  %v3281_v28 = vadd.f32 %v3180_v37, %v3037_v43  ;;  %v3632_v52 = vmul.f32 %v7959_v21, %v10022_v35  ;;  %v3633_v31 = vmul.f32 %v7959_v21, %v10023_v27  ;;  %v3634_v15 = vmul.f32 %v7959_v21, %v10026_v26 }
 0x2de   : > { %v3282_v57 = vadd.f32 %v3182_v19, %v3038_v8  ;;  %v8309_v17 = vpop.eup %5685  ;;  %v4091_v51 = vmul.f32 1.0614054, %v8305_v1  ;;  %v3492_v25 = vsel %vm2361_vm4, %v3490_v38, %v3491_v53  ;;  %v3494_v58 = vsel %vm2361_vm4, %v3491_v53, %v3493_v56 }
 0x2df   : > { %v4092_v13 = vmul.f32 1.0614054, %v8309_v17  ;;  %v3349_v40 = vadd.f32 %v3317_v39, %v3281_v28  ;;  %v3734_v4 = vrot.slane %v3632_v52, 2  ;;  %v3735_v48 = vrot.slane %v3633_v31, 2 }
 0x2e0   : > { %v3350_v10 = vadd.f32 %v3318_v5, %v3282_v57  ;;  %v4123_v7 = vadd.f32 -1.4531521, %v4091_v51  ;;  %v3737_v12 = vrot.slane %v3634_v15, 2  ;;  %v4449_v59 = vmul.f32 1.442695, %v4412_v41 }
 0x2e1   : > { %v4124_v54 = vadd.f32 -1.4531521, %v4092_v13  ;;  %v3593_v43 = vadd.f32 %v3492_v25, %v3349_v40  ;;  %v8320_v16 = vmul.f32 0.5, %v8230_v14  ;;  %v3736_v26 = vsel %vm2606_vm5, %v3734_v4, %v3735_v48 }
 0x2e2   : > { %v3594_v8 = vadd.f32 %v3494_v58, %v3350_v10  ;;  %v4155_v37 = vmul.f32 %v8305_v1, %v4123_v7  ;;  %v3738_v39 = vsel %vm2606_vm5, %v3735_v48, %v3737_v12  ;;  %v2277_v41 = vmul.f32 %v6195_v60, %v10014_v49 }
 0x2e3   : > { %v4156_v5 = vmul.f32 %v8309_v17, %v4124_v54  ;;  %v8326_v19 = vadd.f32 %v3736_v26, %v3593_v43  ;;  %5687 = vpow2.f32 %v4447_v9  ;;  %v2278_v14 = vmul.f32 %v6195_v60, %v10015_v2 }
 0x2e4   : > { %v8328_v38 = vadd.f32 %v3738_v39, %v3594_v8  ;;  %v4187_v53 = vadd.f32 1.4214138, %v4155_v37  ;;  %v2522_v28 = vmul.f32 %v6227_v3, %v10014_v49  ;;  %5689 = vpow2.f32 %v4449_v59  ;;  %v10027_v59 = vld [vmem:[#allocation78_spill] sm:$0xff] }
 0x2e5   : > { %v4188_v57 = vadd.f32 1.4214138, %v4156_v5  ;;  %v8337_v56 = vmul.f32 0.70710677, %v8326_v19  ;;  %v2205_v52 = vmul.f32 %v10006_v61, %v10014_v49  ;;  %v2382_v9 = vrot.slane %v2277_v41, 1 }
 0x2e6   : > { %v4219_v51 = vmul.f32 %v8305_v1, %v4187_v53  ;;  %v8343_v25 = vmul.f32 0.70710677, %v8328_v38  ;;  %v2383_v31 = vrot.slane %v2278_v14, 1  ;;  %v2206_v40 = vmul.f32 %v10006_v61, %v10015_v2 }
 0x2e7   : > { %v4220_v15 = vmul.f32 %v8309_v17, %v4188_v57  ;;  %v3933_v13 = vand.u32 2147483647, %v8337_v56  ;;  %v2523_v10 = vmul.f32 %v6227_v3, %v10015_v2  ;;  %v2627_v4 = vrot.slane %v2522_v28, 2 }
 0x2e8   : > { %v4251_v58 = vadd.f32 -0.28449672, %v4219_v51  ;;  %v3934_v49 = vand.u32 2147483647, %v8343_v25  ;;  %v2384_v7 = vsel %vm2361_vm4, %v2382_v9, %v2383_v31  ;;  %v10028_v43 = vrot.slane %v10027_v59, 1 }
 0x2e9   : > { %v4252_v48 = vadd.f32 -0.28449672, %v4220_v15  ;;  %v3965_v12 = vmul.f32 0.3275911, %v3933_v13  ;;  %v4381_v54 = vsub.f32 0.0, %v3933_v13  ;;  %v2482_v5 = vadd.f32 %v2384_v7, %v2205_v52 }
 0x2ea   : > { %v2386_v8 = vsel %vm2361_vm4, %v2383_v31, %v10028_v43  ;;  %v4283_v37 = vmul.f32 %v8305_v1, %v4251_v58  ;;  %v3966_v26 = vmul.f32 0.3275911, %v3934_v49  ;;  %v4382_v39 = vsub.f32 0.0, %v3934_v49 }
 0x2eb   : > { %v4284_v2 = vmul.f32 %v8309_v17, %v4252_v48  ;;  %v3997_v41 = vadd.f32 1.0, %v3965_v12  ;;  %v4413_v53 = vmul.f32 %v4381_v54, %v3933_v13  ;;  %v2483_v14 = vadd.f32 %v2386_v8, %v2206_v40 }
 0x2ec   : > { %v4315_v57 = vadd.f32 0.2548296, %v4283_v37  ;;  %v3998_v51 = vadd.f32 1.0, %v3966_v26  ;;  %v4414_v28 = vmul.f32 %v4382_v39, %v3934_v49  ;;  %v2628_v9 = vrot.slane %v2523_v10, 2  ;;  %v10029_v10 = vld [vmem:[#allocation79_spill] sm:$0xff] }
 0x2ed   : > { %v4316_v15 = vadd.f32 0.2548296, %v4284_v2  ;;  %vm4571_vm10 = vcmp.lt.f32.partialorder %v8241_v18, 0.0  ;;  %5691 = vrcp.f32 %v3997_v41  ;;  %v2763_v31 = vmul.f32 %v9988_v50, %v10022_v35  ;;  %v5688_v58 = vpop.eup %5687 }
 0x2ee   : > { %v4347_v59 = vmul.f32 %v8305_v1, %v4315_v57  ;;  %vm4572_vm11 = vcmp.lt.f32.partialorder %v8244_v45, 0.0  ;;  %5693 = vrcp.f32 %v3998_v51  ;;  %v2629_v52 = vsel %vm2606_vm5, %v2627_v4, %v2628_v9  ;;  %v5690_v13 = vpop.eup %5689  ;;  %v10031_v51 = vld [vmem:[#allocation89_spill] sm:$0xff] }
 0x2ef   : > { %v4348_v40 = vmul.f32 %v8309_v17, %v4316_v15  ;;  %v8365_v49 = vmul.f32 1.442695, %v4413_v53  ;;  %v10030_v7 = vrot.slane %v10029_v10, 2  ;;  %v2727_v12 = vadd.f32 %v2629_v52, %v2482_v5 }
 0x2f0   : > { %v4507_v54 = vmul.f32 %v5688_v58, %v4347_v59  ;;  %v8370_v43 = vmul.f32 1.442695, %v4414_v28  ;;  %v2764_v1 = vmul.f32 %v9988_v50, %v10023_v27  ;;  %v2835_v4 = vmul.f32 %v6386_v42, %v10022_v35  ;;  %v10032_v58 = vld [vmem:[#allocation59_spill] sm:$0xff] }
 0x2f1   : > { %v2631_v48 = vsel %vm2606_vm5, %v2628_v9, %v10030_v7  ;;  %v4508_v37 = vmul.f32 %v5690_v13, %v4348_v40  ;;  %v2795_v26 = vadd.f32 %v2763_v31, %v2727_v12  ;;  %v2836_v17 = vmul.f32 %v6386_v42, %v10023_v27  ;;  %v10033_v40 = vld [vmem:[#allocation88_spill] sm:$0xff] }
 0x2f2   : > { %v2728_v8 = vadd.f32 %v2631_v48, %v2483_v14  ;;  %v4539_v39 = vsub.f32 1.0, %v4507_v54  ;;  %v3079_v5 = vmul.f32 %v6390_v47, %v10022_v35  ;;  %v3080_v41 = vmul.f32 %v6390_v47, %v10023_v27  ;;  %v10035_v48 = vld [vmem:[#allocation91_spill] sm:$0xff] }
 0x2f3   : > { %v4540_v53 = vsub.f32 1.0, %v4508_v37  ;;  %v2939_v14 = vrot.slane %v2835_v4, 1  ;;  %v2940_v57 = vrot.slane %v2836_v17, 1  ;;  %v3186_v28 = vrot.slane %v10031_v51, 2 }
 0x2f4   : > { %v2796_v2 = vadd.f32 %v2764_v1, %v2728_v8  ;;  %v4603_v9 = vsub.f32 0.0, %v4539_v39  ;;  %v3183_v15 = vrot.slane %v3079_v5, 2  ;;  %v3184_v31 = vrot.slane %v3080_v41, 2 }
 0x2f5   : > { %v3319_v59 = vmul.f32 %v7325_v20, %v10032_v58  ;;  %v4604_v52 = vsub.f32 0.0, %v4540_v53  ;;  %v2941_v13 = vsel %vm2361_vm4, %v2939_v14, %v2940_v57  ;;  %v10034_v10 = vrot.slane %v10033_v40, 1 }
 0x2f6   : > { %v3320_v12 = vmul.f32 %v7325_v20, %v10035_v48  ;;  %v4635_v54 = vsel %vm4571_vm10, %v4603_v9, %v4539_v39  ;;  %v3039_v8 = vadd.f32 %v2941_v13, %v2795_v26  ;;  %v3185_v37 = vsel %vm2606_vm5, %v3183_v15, %v3184_v31 }
 0x2f7   : > { %v2943_v7 = vsel %vm2361_vm4, %v2940_v57, %v10034_v10  ;;  %v8394_v4 = vpop.eup %5691  ;;  %v4636_v17 = vsel %vm4572_vm11, %v4604_v52, %v4540_v53  ;;  %v4667_v5 = vadd.f32 1.0, %v4635_v54  ;;  %v3187_v41 = vsel %vm2606_vm5, %v3184_v31, %v3186_v28  ;;  %v10036_v53 = vld [vmem:[#allocation90_spill] sm:$0xff] }
 0x2f8   : > { %v3040_v1 = vadd.f32 %v2943_v7, %v2796_v2  ;;  %v3391_v14 = vmul.f32 %v6925_v32, %v10032_v58  ;;  %v8401_v57 = vpop.eup %5693  ;;  %v4668_v51 = vadd.f32 1.0, %v4636_v17  ;;  %v4093_v18 = vmul.f32 1.0614054, %v8394_v4 }
 0x2f9   : > { %v3283_v26 = vadd.f32 %v3185_v37, %v3039_v8  ;;  %v4699_v2 = vmul.f32 %v4667_v5, %v8270_v46  ;;  %v4094_v9 = vmul.f32 1.0614054, %v8401_v57  ;;  %v3392_v45 = vmul.f32 %v6925_v32, %v10035_v48 }
 0x2fa   : > { %v3284_v39 = vadd.f32 %v3187_v41, %v3040_v1  ;;  %v3393_v28 = vmul.f32 %v6925_v32, %v10036_v53  ;;  %v4700_v15 = vmul.f32 %v4668_v51, %v8320_v16  ;;  %v4125_v31 = vadd.f32 -1.4531521, %v4093_v18 }
 0x2fb   : > { %v3351_v52 = vadd.f32 %v3319_v59, %v3283_v26  ;;  %v4126_v40 = vadd.f32 -1.4531521, %v4094_v9  ;;  %v3495_v10 = vrot.slane %v3391_v14, 1  ;;  %v3496_v7 = vrot.slane %v3392_v45, 1 }
 0x2fc   : > { %v3352_v13 = vadd.f32 %v3320_v12, %v3284_v39  ;;  %v3498_v54 = vrot.slane %v3393_v28, 1  ;;  %v4729_v8 = vpack.c.bf16 %v4700_v15, %v4699_v2  ;;  %v4157_v46 = vmul.f32 %v8394_v4, %v4125_v31  ;;  %v8422_v12 = vld [vmem:[%s9631_s2 + $0x8] ss:$0 sm:$0xff] }
 0x2fd   : > { %v3635_v1 = vmul.f32 %v7959_v21, %v10032_v58  ;;  %v3636_v37 = vmul.f32 %v7959_v21, %v10035_v48  ;;  %v4158_v17 = vmul.f32 %v8401_v57, %v4126_v40  ;;  %v3497_v16 = vsel %vm2361_vm4, %v3495_v10, %v3496_v7 }
 0x2fe   : > { %v3499_v59 = vsel %vm2361_vm4, %v3496_v7, %v3498_v54  ;;  %v3637_v5 = vmul.f32 %v8422_v12, %v10036_v53  ;;  %5338 = vmatprep.mubr.bf16.mxu1 %v4729_v8  ;;  %v4189_v41 = vadd.f32 1.4214138, %v4157_v46  ;;  %5695 = vpow2.f32 %v8365_v49 }
 0x2ff   : > { %v3595_v14 = vadd.f32 %v3497_v16, %v3351_v52  ;;  %v3596_v21 = vadd.f32 %v3499_v59, %v3352_v13  ;;  %v4190_v51 = vadd.f32 1.4214138, %v4158_v17  ;;  %v3739_v18 = vrot.slane %v3635_v1, 2  ;;  %v10037_v59 = vld [vmem:[#allocation15_spill] sm:$0xff] }
 0x300   : > { %v3740_v26 = vrot.slane %v3636_v37, 2  ;;  %v3742_v39 = vrot.slane %v3637_v5, 2  ;;  %v4221_v2 = vmul.f32 %v8394_v4, %v4189_v41  ;;  %5697 = vpow2.f32 %v8370_v43 }
 0x301   : > { %v2280_v9 = vmul.f32 %v6195_v60, %v10022_v35  ;;  %v2281_v45 = vmul.f32 %v6195_v60, %v10023_v27  ;;  %v8434_v53 = vmul.f32 0.5, %v8326_v19  ;;  %v4222_v49 = vmul.f32 %v8401_v57, %v4190_v51 }
 0x302   : > { %v3741_v28 = vsel %vm2606_vm5, %v3739_v18, %v3740_v26  ;;  %v3743_v15 = vsel %vm2606_vm5, %v3740_v26, %v3742_v39  ;;  %v4253_v31 = vadd.f32 -0.28449672, %v4221_v2  ;;  %v2207_v43 = vmul.f32 %v10006_v61, %v10022_v35 }
 0x303   : > { %v8439_v52 = vadd.f32 %v3741_v28, %v3595_v14  ;;  %v8441_v13 = vadd.f32 %v3743_v15, %v3596_v21  ;;  %v4254_v40 = vadd.f32 -0.28449672, %v4222_v49  ;;  %v2387_v10 = vrot.slane %v2280_v9, 1 }
 0x304   : > { %v2388_v7 = vrot.slane %v2281_v45, 1  ;;  %v2525_v19 = vmul.f32 %v6227_v3, %v10022_v35  ;;  %v4285_v54 = vmul.f32 %v8394_v4, %v4253_v31  ;;  %v2208_v46 = vmul.f32 %v10006_v61, %v10023_v27 }
 0x305   : > { %v8449_v8 = vmul.f32 0.70710677, %v8439_v52  ;;  %v2526_v1 = vmul.f32 %v6227_v3, %v10023_v27  ;;  %v4286_v37 = vmul.f32 %v8401_v57, %v4254_v40  ;;  %v8457_v17 = vmul.f32 0.70710677, %v8441_v13 }
 0x306   : > { %v2389_v16 = vsel %vm2361_vm4, %v2387_v10, %v2388_v7  ;;  %v10038_v35 = vrot.slane %v10037_v59, 1  ;;  %v3870_v41 = vmul.f32 0.5, %v8328_v38  ;;  %v4317_v14 = vadd.f32 0.2548296, %v4285_v54 }
 0x307   : > { %v3935_v21 = vand.u32 2147483647, %v8449_v8  ;;  %v2484_v51 = vadd.f32 %v2389_v16, %v2207_v43  ;;  %v4318_v18 = vadd.f32 0.2548296, %v4286_v37  ;;  %vm4573_vm12 = vcmp.lt.f32.partialorder %v8337_v56, 0.0 }
 0x308   : > { %v2391_v5 = vsel %vm2361_vm4, %v2388_v7, %v10038_v35  ;;  %v3936_v27 = vand.u32 2147483647, %v8457_v17  ;;  %v2632_v39 = vrot.slane %v2525_v19, 2  ;;  %v5696_v2 = vpop.eup %5695  ;;  %v4349_v9 = vmul.f32 %v8394_v4, %v4317_v14  ;;  %v10039_v4 = vld [vmem:[#allocation87_spill] sm:$0xff] }
 0x309   : > { %v2485_v26 = vadd.f32 %v2391_v5, %v2208_v46  ;;  %v3967_v45 = vmul.f32 0.3275911, %v3935_v21  ;;  %v4383_v49 = vsub.f32 0.0, %v3935_v21  ;;  %v2633_v28 = vrot.slane %v2526_v1, 2 }
 0x30a   : > { %v4350_v15 = vmul.f32 %v8401_v57, %v4318_v18  ;;  %v3968_v38 = vmul.f32 0.3275911, %v3936_v27  ;;  %v4384_v31 = vsub.f32 0.0, %v3936_v27  ;;  %v2765_v43 = vmul.f32 %v9988_v50, %v10032_v58  ;;  %v5698_v40 = vpop.eup %5697 }
 0x30b   : > { %v4509_v10 = vmul.f32 %v5696_v2, %v4349_v9  ;;  %v3999_v7 = vadd.f32 1.0, %v3967_v45  ;;  %v4415_v54 = vmul.f32 %v4383_v49, %v3935_v21  ;;  %v2634_v46 = vsel %vm2606_vm5, %v2632_v39, %v2633_v28 }
 0x30c   : > { %v4510_v19 = vmul.f32 %v5698_v40, %v4350_v15  ;;  %v4000_v37 = vadd.f32 1.0, %v3968_v38  ;;  %v4416_v16 = vmul.f32 %v4384_v31, %v3936_v27  ;;  %v10040_v59 = vrot.slane %v10039_v4, 2 }
 0x30d   : > { %v4541_v35 = vsub.f32 1.0, %v4509_v10  ;;  %5699 = vrcp.f32 %v3999_v7  ;;  %v4455_v57 = vmul.f32 1.442695, %v4415_v54  ;;  %v2729_v5 = vadd.f32 %v2634_v46, %v2484_v51  ;;  %v10041_v54 = vld [vmem:[#allocation94_spill] sm:$0xff] }
 0x30e   : > { %v2636_v1 = vsel %vm2606_vm5, %v2633_v28, %v10040_v59  ;;  %v4542_v14 = vsub.f32 1.0, %v4510_v19  ;;  %vm4574_vm13 = vcmp.lt.f32.partialorder %v8343_v25, 0.0  ;;  %5701 = vrcp.f32 %v4000_v37  ;;  %v10042_v37 = vld [vmem:[#allocation93_spill] sm:$0xff] }
 0x30f   : > { %v2730_v18 = vadd.f32 %v2636_v1, %v2485_v26  ;;  %v4605_v2 = vsub.f32 0.0, %v4541_v35  ;;  %v4457_v21 = vmul.f32 1.442695, %v4416_v16  ;;  %v2766_v39 = vmul.f32 %v9988_v50, %v10035_v48  ;;  %v10044_v59 = vld [vmem:[#allocation65_spill] sm:$0xff] }
 0x310   : > { %v2797_v9 = vadd.f32 %v2765_v43, %v2729_v5  ;;  %v4606_v27 = vsub.f32 0.0, %v4542_v14  ;;  %5703 = vpow2.f32 %v4455_v57  ;;  %v2838_v45 = vmul.f32 %v6386_v42, %v10032_v58 }
 0x311   : > { %v2839_v49 = vmul.f32 %v6386_v42, %v10035_v48  ;;  %v4637_v51 = vsel %vm4573_vm12, %v4605_v2, %v4541_v35  ;;  %v2798_v25 = vadd.f32 %v2766_v39, %v2730_v18  ;;  %v3082_v26 = vmul.f32 %v6390_v47, %v10032_v58 }
 0x312   : > { %v3083_v28 = vmul.f32 %v6390_v47, %v10035_v48  ;;  %v4638_v15 = vsel %vm4574_vm13, %v4606_v27, %v4542_v14  ;;  %v4669_v38 = vadd.f32 1.0, %v4637_v51  ;;  %v2944_v31 = vrot.slane %v2838_v45, 1 }
 0x313   : > { %v2945_v43 = vrot.slane %v2839_v49, 1  ;;  %v4670_v40 = vadd.f32 1.0, %v4638_v15  ;;  %v3188_v10 = vrot.slane %v3082_v26, 2  ;;  %v3191_v46 = vrot.slane %v10041_v54, 2 }
 0x314   : > { %v3189_v7 = vrot.slane %v3083_v28, 2  ;;  %v4701_v19 = vmul.f32 %v4669_v38, %v8434_v53  ;;  %v10043_v16 = vrot.slane %v10042_v37, 1  ;;  %v3321_v1 = vmul.f32 %v7325_v20, %v10044_v59 }
 0x315   : > { %v2946_v56 = vsel %vm2361_vm4, %v2944_v31, %v2945_v43  ;;  %v4702_v35 = vmul.f32 %v4670_v40, %v3870_v41  ;;  %v3322_v2 = vmul.f32 %v7325_v20, %v7784_v62  ;;  %v3394_v53 = vmul.f32 %v6925_v32, %v10044_v59 }
 0x316   : > { %v2948_v4 = vsel %vm2361_vm4, %v2945_v43, %v10043_v16  ;;  %v3041_v57 = vadd.f32 %v2946_v56, %v2797_v9  ;;  %v3190_v14 = vsel %vm2606_vm5, %v3188_v10, %v3189_v7  ;;  %v3192_v18 = vsel %vm2606_vm5, %v3189_v7, %v3191_v46 }
 0x317   : > { %v3042_v5 = vadd.f32 %v2948_v4, %v2798_v25  ;;  %v3395_v39 = vmul.f32 %v6925_v32, %v7784_v62  ;;  %v8504_v27 = vpop.eup %5699  ;;  %v4730_v45 = vpack.c.bf16 %v4702_v35, %v4701_v19  ;;  %v3396_v9 = vmul.f32 %v6925_v32, %v7790_v33 }
 0x318   : > { %v3285_v49 = vadd.f32 %v3190_v14, %v3041_v57  ;;  %v8508_v51 = vpop.eup %5701  ;;  %v4095_v25 = vmul.f32 1.0614054, %v8504_v27  ;;  %v3500_v26 = vrot.slane %v3394_v53, 1  ;;  %v3638_v15 = vmul.f32 %v8422_v12, %v10044_v59 }
 0x319   : > { %v3286_v41 = vadd.f32 %v3192_v18, %v3042_v5  ;;  %v3501_v28 = vrot.slane %v3395_v39, 1  ;;  %5339 = vmatmul.mubr.bf16.gmra.mrb[40].mxu1 %v4730_v45  ;;  %v4096_v38 = vmul.f32 1.0614054, %v8508_v51  ;;  %v3503_v40 = vrot.slane %v3396_v9, 1 }
 0x31a   : > { %v3353_v31 = vadd.f32 %v3321_v1, %v3285_v49  ;;  %v8514_v10 = vpop.eup %5703  ;;  %v4127_v7 = vadd.f32 -1.4531521, %v4095_v25  ;;  %v3639_v46 = vmul.f32 %v8422_v12, %v7784_v62  ;;  %v3640_v19 = vmul.f32 %v8422_v12, %v7790_v33 }
 0x31b   : > { %v3354_v43 = vadd.f32 %v3322_v2, %v3286_v41  ;;  %v3502_v54 = vsel %vm2361_vm4, %v3500_v26, %v3501_v28  ;;  %v4128_v56 = vadd.f32 -1.4531521, %v4096_v38  ;;  %v3504_v37 = vsel %vm2361_vm4, %v3501_v28, %v3503_v40 }
 0x31c   : > { %v3597_v16 = vadd.f32 %v3502_v54, %v3353_v31  ;;  %v3744_v4 = vrot.slane %v3638_v15, 2  ;;  %v4159_v1 = vmul.f32 %v8504_v27, %v4127_v7  ;;  %v3745_v57 = vrot.slane %v3639_v46, 2 }
 0x31d   : > { %v3598_v35 = vadd.f32 %v3504_v37, %v3354_v43  ;;  %v3747_v5 = vrot.slane %v3640_v19, 2  ;;  %v8525_v14 = vmul.f32 %v6386_v42, %v8217_v29  ;;  %v4160_v18 = vmul.f32 %v8508_v51, %v4128_v56  ;;  %v10045_v19 = vld [vmem:[#allocation61_spill] sm:$0xff] }
 0x31e   : > { %5705 = vpow2.f32 %v4457_v21  ;;  %v2283_v33 = vmul.f32 %v6195_v60, %v10032_v58  ;;  %v4191_v2 = vadd.f32 1.4214138, %v4159_v1  ;;  %v3746_v53 = vsel %vm2606_vm5, %v3744_v4, %v3745_v57 }
 0x31f   : > { %v3748_v39 = vsel %vm2606_vm5, %v3745_v57, %v3747_v5  ;;  %v2284_v45 = vmul.f32 %v6195_v60, %v10035_v48  ;;  %v4192_v49 = vadd.f32 1.4214138, %v4160_v18  ;;  %v8534_v41 = vadd.f32 %v3746_v53, %v3597_v16 }
 0x320   : > { %v8536_v9 = vadd.f32 %v3748_v39, %v3598_v35  ;;  %v2209_v25 = vmul.f32 %v10006_v61, %v10032_v58  ;;  %v4223_v21 = vmul.f32 %v8504_v27, %v4191_v2  ;;  %v2210_v26 = vmul.f32 %v10006_v61, %v10035_v48 }
 0x321   : > { %v2392_v28 = vrot.slane %v2283_v33, 1  ;;  %v2393_v15 = vrot.slane %v2284_v45, 1  ;;  %v4224_v38 = vmul.f32 %v8508_v51, %v4192_v49  ;;  %v8545_v31 = vmul.f32 0.70710677, %v8534_v41 }
 0x322   : > { %v2528_v43 = vmul.f32 %v6227_v3, %v10032_v58  ;;  %v2529_v40 = vmul.f32 %v6227_v3, %v10035_v48  ;;  %v4255_v7 = vadd.f32 -0.28449672, %v4223_v21  ;;  %v8552_v54 = vmul.f32 0.70710677, %v8536_v9 }
 0x323   : > { %v2394_v46 = vsel %vm2361_vm4, %v2392_v28, %v2393_v15  ;;  %v10046_v56 = vrot.slane %v10045_v19, 1  ;;  %v8559_v16 = vmul.f32 0.5, %v8439_v52  ;;  %v4256_v4 = vadd.f32 -0.28449672, %v4224_v38 }
 0x324   : > { %v3937_v1 = vand.u32 2147483647, %v8545_v31  ;;  %v2486_v58 = vadd.f32 %v2394_v46, %v2209_v25  ;;  %v8563_v35 = vmul.f32 0.5, %v8441_v13  ;;  %v4287_v48 = vmul.f32 %v8504_v27, %v4255_v7 }
 0x325   : > { %v2396_v37 = vsel %vm2361_vm4, %v2393_v15, %v10046_v56  ;;  %v3938_v57 = vand.u32 2147483647, %v8552_v54  ;;  %v4288_v18 = vmul.f32 %v8508_v51, %v4256_v4  ;;  %v2637_v53 = vrot.slane %v2528_v43, 2 }
 0x326   : > { %v2487_v5 = vadd.f32 %v2396_v37, %v2210_v26  ;;  %v3969_v33 = vmul.f32 0.3275911, %v3937_v1  ;;  %v4385_v2 = vsub.f32 0.0, %v3937_v1  ;;  %v4319_v39 = vadd.f32 0.2548296, %v4287_v48 }
 0x327   : > { %v3970_v52 = vmul.f32 0.3275911, %v3938_v57  ;;  %v4386_v45 = vsub.f32 0.0, %v3938_v57  ;;  %v2638_v49 = vrot.slane %v2529_v40, 2  ;;  %v4320_v28 = vadd.f32 0.2548296, %v4288_v18 }
 0x328   : > { %v5706_v21 = vpop.eup %5705  ;;  %vm4575_vm14 = vcmp.lt.f32.partialorder %v8449_v8, 0.0  ;;  %v4001_v13 = vadd.f32 1.0, %v3969_v33  ;;  %v4417_v25 = vmul.f32 %v4385_v2, %v3937_v1  ;;  %v2767_v15 = vmul.f32 %v9988_v50, %v10044_v59  ;;  %v10047_v40 = vld [vmem:[#allocation92_spill] sm:$0xff] }
 0x329   : > { %v4351_v26 = vmul.f32 %v8504_v27, %v4319_v39  ;;  %v4002_v38 = vadd.f32 1.0, %v3970_v52  ;;  %v4418_v7 = vmul.f32 %v4386_v45, %v3938_v57  ;;  %v2639_v46 = vsel %vm2606_vm5, %v2637_v53, %v2638_v49 }
 0x32a   : > { %v4352_v43 = vmul.f32 %v8508_v51, %v4320_v28  ;;  %5707 = vrcp.f32 %v4001_v13  ;;  %v4459_v19 = vmul.f32 1.442695, %v4417_v25  ;;  %v10048_v56 = vrot.slane %v10047_v40, 2  ;;  %v10049_v25 = vld [vmem:[#allocation96_spill] sm:$0xff] }
 0x32b   : > { %v4511_v4 = vmul.f32 %v8514_v10, %v4351_v26  ;;  %vm4576_vm15 = vcmp.lt.f32.partialorder %v8457_v17, 0.0  ;;  %5709 = vrcp.f32 %v4002_v38  ;;  %v2731_v1 = vadd.f32 %v2639_v46, %v2486_v58 }
 0x32c   : > { %v2641_v37 = vsel %vm2606_vm5, %v2638_v49, %v10048_v56  ;;  %v4512_v48 = vmul.f32 %v5706_v21, %v4352_v43  ;;  %v4461_v27 = vmul.f32 1.442695, %v4418_v7  ;;  %v2768_v57 = vmul.f32 %v9988_v50, %v7784_v62  ;;  %v10050_v7 = vld [vmem:[#allocation99_spill] sm:$0xff]  ;;  %v10051_v56 = vld [vmem:[#allocation72_spill] sm:$0xff] }
 0x32d   : > { %v2732_v18 = vadd.f32 %v2641_v37, %v2487_v5  ;;  %v4543_v33 = vsub.f32 1.0, %v4511_v4  ;;  %5711 = vpow2.f32 %v4459_v19  ;;  %v2799_v51 = vadd.f32 %v2767_v15, %v2731_v1 }
 0x32e   : > { %v2841_v2 = vmul.f32 %v6386_v42, %v10044_v59  ;;  %v4544_v53 = vsub.f32 1.0, %v4512_v48  ;;  %v2842_v10 = vmul.f32 %v6386_v42, %v7784_v62  ;;  %v3085_v58 = vmul.f32 %v6390_v47, %v10044_v59 }
 0x32f   : > { %v2800_v39 = vadd.f32 %v2768_v57, %v2732_v18  ;;  %v4607_v52 = vsub.f32 0.0, %v4543_v33  ;;  %v3086_v5 = vmul.f32 %v6390_v47, %v7784_v62  ;;  %v3196_v49 = vrot.slane %v7830_v22, 2 }
 0x330   : > { %v2949_v45 = vrot.slane %v2841_v2, 1  ;;  %v4608_v21 = vsub.f32 0.0, %v4544_v53  ;;  %v2950_v28 = vrot.slane %v2842_v10, 1  ;;  %v3193_v13 = vrot.slane %v3085_v58, 2 }
 0x331   : > { %v3323_v15 = vmul.f32 %v7325_v20, %v10049_v25  ;;  %v4639_v26 = vsel %vm4575_vm14, %v4607_v52, %v4543_v33  ;;  %v3194_v38 = vrot.slane %v3086_v5, 2  ;;  %v3324_v46 = vmul.f32 %v7325_v20, %v10050_v7 }
 0x332   : > { %v3397_v43 = vmul.f32 %v6925_v32, %v10049_v25  ;;  %v4640_v19 = vsel %vm4576_vm15, %v4608_v21, %v4544_v53  ;;  %v4671_v22 = vadd.f32 1.0, %v4639_v26  ;;  %v2951_v40 = vsel %vm2361_vm4, %v2949_v45, %v2950_v28  ;;  %v10053_v53 = vld [vmem:[#allocation95_spill] sm:$0xff] }
 0x333   : > { %v10052_v37 = vrot.slane %v10051_v56, 1  ;;  %v4672_v1 = vadd.f32 1.0, %v4640_v19  ;;  %v3043_v8 = vadd.f32 %v2951_v40, %v2799_v51  ;;  %v3195_v18 = vsel %vm2606_vm5, %v3193_v13, %v3194_v38 }
 0x334   : > { %v8605_v57 = vpop.eup %5707  ;;  %v4703_v33 = vmul.f32 %v4671_v22, %v8559_v16  ;;  %v3197_v2 = vsel %vm2606_vm5, %v3194_v38, %v3196_v49  ;;  %v3398_v17 = vmul.f32 %v6925_v32, %v10050_v7  ;;  %v3399_v10 = vmul.f32 %v6925_v32, %v10053_v53 }
 0x335   : > { %v2953_v4 = vsel %vm2361_vm4, %v2950_v28, %v10052_v37  ;;  %v8613_v58 = vpop.eup %5709  ;;  %v4704_v52 = vmul.f32 %v4672_v1, %v8563_v35  ;;  %v4097_v51 = vmul.f32 1.0614054, %v8605_v57  ;;  %v3505_v21 = vrot.slane %v3397_v43, 1 }
 0x336   : > { %v3044_v48 = vadd.f32 %v2953_v4, %v2800_v39  ;;  %v3287_v39 = vadd.f32 %v3195_v18, %v3043_v8  ;;  %v4098_v5 = vmul.f32 1.0614054, %v8613_v58  ;;  %v3506_v16 = vrot.slane %v3398_v17, 1 }
 0x337   : > { %v3508_v28 = vrot.slane %v3399_v10, 1  ;;  %v8618_v49 = vpop.eup %5711  ;;  %v4731_v13 = vpack.c.bf16 %v4704_v52, %v4703_v33  ;;  %v4129_v26 = vadd.f32 -1.4531521, %v4097_v51  ;;  %v3641_v56 = vmul.f32 %v8422_v12, %v10049_v25 }
 0x338   : > { %v3288_v45 = vadd.f32 %v3197_v2, %v3044_v48  ;;  %v3355_v38 = vadd.f32 %v3323_v15, %v3287_v39  ;;  %v4130_v22 = vadd.f32 -1.4531521, %v4098_v5  ;;  %v3507_v40 = vsel %vm2361_vm4, %v3505_v21, %v3506_v16 }
 0x339   : > { %v3509_v35 = vsel %vm2361_vm4, %v3506_v16, %v3508_v28  ;;  %5342 = vmatprep.mubr.bf16.mxu1 %v4731_v13  ;;  %v4161_v37 = vmul.f32 %v8605_v57, %v4129_v26  ;;  %v3642_v1 = vmul.f32 %v8422_v12, %v10050_v7  ;;  %v8629_v15 = vmul.f32 %v6390_v47, %v8217_v29 }
 0x33a   : > { %v3356_v19 = vadd.f32 %v3324_v46, %v3288_v45  ;;  %v3599_v43 = vadd.f32 %v3507_v40, %v3355_v38  ;;  %v4162_v46 = vmul.f32 %v8613_v58, %v4130_v22  ;;  %5713 = vpow2.f32 %v4461_v27 }
 0x33b   : > { %v3643_v8 = vmul.f32 %v8422_v12, %v10053_v53  ;;  %v4193_v48 = vadd.f32 1.4214138, %v4161_v37  ;;  %v3749_v18 = vrot.slane %v3641_v56, 2  ;;  %v3750_v33 = vrot.slane %v3642_v1, 2 }
 0x33c   : > { %v3600_v4 = vadd.f32 %v3509_v35, %v3356_v19  ;;  %v2286_v2 = vmul.f32 %v6195_v60, %v10044_v59  ;;  %v4194_v17 = vadd.f32 1.4214138, %v4162_v46  ;;  %v2287_v52 = vmul.f32 %v6195_v60, %v7784_v62 }
 0x33d   : > { %v3752_v10 = vrot.slane %v3643_v8, 2  ;;  %v2531_v51 = vmul.f32 %v6227_v3, %v10044_v59  ;;  %v4225_v39 = vmul.f32 %v8605_v57, %v4193_v48  ;;  %v3751_v27 = vsel %vm2606_vm5, %v3749_v18, %v3750_v33 }
 0x33e   : > { %v2397_v45 = vrot.slane %v2286_v2, 1  ;;  %v2532_v53 = vmul.f32 %v6227_v3, %v7784_v62  ;;  %v4226_v5 = vmul.f32 %v8613_v58, %v4194_v17  ;;  %v8646_v16 = vadd.f32 %v3751_v27, %v3599_v43 }
 0x33f   : > { %v3753_v21 = vsel %vm2606_vm5, %v3750_v33, %v3752_v10  ;;  %v2398_v28 = vrot.slane %v2287_v52, 1  ;;  %v8649_v13 = vmul.f32 0.5, %v8534_v41  ;;  %v4257_v26 = vadd.f32 -0.28449672, %v4225_v39 }
 0x340   : > { %v8651_v38 = vadd.f32 %v3753_v21, %v3600_v4  ;;  %v2211_v19 = vmul.f32 %v10006_v61, %v10044_v59  ;;  %v4258_v22 = vadd.f32 -0.28449672, %v4226_v5  ;;  %v8656_v40 = vmul.f32 0.70710677, %v8646_v16  ;;  %v10054_v4 = vld [vmem:[#allocation20_spill] sm:$0xff] }
 0x341   : > { %v2399_v35 = vsel %vm2361_vm4, %v2397_v45, %v2398_v28  ;;  %v2643_v56 = vrot.slane %v2532_v53, 2  ;;  %v4289_v37 = vmul.f32 %v8605_v57, %v4257_v26  ;;  %v2212_v41 = vmul.f32 %v10006_v61, %v7784_v62 }
 0x342   : > { %v8661_v43 = vmul.f32 0.70710677, %v8651_v38  ;;  %v10055_v1 = vrot.slane %v10054_v4, 1  ;;  %v4290_v59 = vmul.f32 %v8613_v58, %v4258_v22  ;;  %v3939_v8 = vand.u32 2147483647, %v8656_v40 }
 0x343   : > { %v2488_v48 = vadd.f32 %v2399_v35, %v2211_v19  ;;  %v2642_v18 = vrot.slane %v2531_v51, 2  ;;  %v3874_v33 = vmul.f32 0.5, %v8536_v9  ;;  %v4321_v2 = vadd.f32 0.2548296, %v4289_v37 }
 0x344   : > { %v2401_v46 = vsel %vm2361_vm4, %v2398_v28, %v10055_v1  ;;  %v3940_v17 = vand.u32 2147483647, %v8661_v43  ;;  %v5714_v52 = vpop.eup %5713  ;;  %v4322_v39 = vadd.f32 0.2548296, %v4290_v59  ;;  %vm4577_vm0 = vcmp.lt.f32.partialorder %v8545_v31, 0.0  ;;  %v10056_v28 = vld [vmem:[#allocation24_spill] sm:$0xff] }
 0x345   : > { %v2489_v10 = vadd.f32 %v2401_v46, %v2212_v41  ;;  %v3971_v62 = vmul.f32 0.3275911, %v3939_v8  ;;  %v4387_v27 = vsub.f32 0.0, %v3939_v8  ;;  %v2644_v45 = vsel %vm2606_vm5, %v2642_v18, %v2643_v56 }
 0x346   : > { %v4353_v53 = vmul.f32 %v8605_v57, %v4321_v2  ;;  %v3972_v5 = vmul.f32 0.3275911, %v3940_v17  ;;  %v4388_v21 = vsub.f32 0.0, %v3940_v17  ;;  %v10057_v51 = vrot.slane %v10056_v28, 2  ;;  %v10059_v28 = vld [vmem:[#allocation101_spill] sm:$0xff] }
 0x347   : > { %v4354_v26 = vmul.f32 %v8613_v58, %v4322_v39  ;;  %v4003_v19 = vadd.f32 1.0, %v3971_v62  ;;  %v4419_v22 = vmul.f32 %v4387_v27, %v3939_v8  ;;  %v2733_v35 = vadd.f32 %v2644_v45, %v2488_v48 }
 0x348   : > { %v2646_v9 = vsel %vm2606_vm5, %v2643_v56, %v10057_v51  ;;  %v4513_v37 = vmul.f32 %v8618_v49, %v4353_v53  ;;  %v4004_v41 = vadd.f32 1.0, %v3972_v5  ;;  %v4420_v4 = vmul.f32 %v4388_v21, %v3940_v17  ;;  %v10058_v5 = vld [vmem:[#allocation100_spill] sm:$0xff] }
 0x349   : > { %v2734_v1 = vadd.f32 %v2646_v9, %v2489_v10  ;;  %v4514_v46 = vmul.f32 %v5714_v52, %v4354_v26  ;;  %5715 = vrcp.f32 %v4003_v19  ;;  %v4463_v59 = vmul.f32 1.442695, %v4419_v22 }
 0x34a   : > { %v2769_v57 = vmul.f32 %v9988_v50, %v10049_v25  ;;  %v4545_v18 = vsub.f32 1.0, %v4513_v37  ;;  %vm4578_vm2 = vcmp.lt.f32.partialorder %v8552_v54, 0.0  ;;  %5717 = vrcp.f32 %v4004_v41  ;;  %v10060_v41 = vld [vmem:[#allocation98_spill] sm:$0xff] }
 0x34b   : > { %v2770_v58 = vmul.f32 %v9988_v50, %v10050_v7  ;;  %v4546_v56 = vsub.f32 1.0, %v4514_v46  ;;  %v4465_v8 = vmul.f32 1.442695, %v4420_v4  ;;  %v2844_v49 = vmul.f32 %v6386_v42, %v10049_v25 }
 0x34c   : > { %v2801_v48 = vadd.f32 %v2769_v57, %v2733_v35  ;;  %v4609_v2 = vsub.f32 0.0, %v4545_v18  ;;  %5719 = vpow2.f32 %v4463_v59  ;;  %v2845_v10 = vmul.f32 %v6386_v42, %v10050_v7 }
 0x34d   : > { %v2802_v17 = vadd.f32 %v2770_v58, %v2734_v1  ;;  %v4610_v52 = vsub.f32 0.0, %v4546_v56  ;;  %v2954_v39 = vrot.slane %v2844_v49, 1  ;;  %v3088_v62 = vmul.f32 %v6390_v47, %v10049_v25  ;;  %v10062_v1 = vld [vmem:[#allocation102_spill] sm:$0xff] }
 0x34e   : > { %v3089_v27 = vmul.f32 %v6390_v47, %v10050_v7  ;;  %v4641_v45 = vsel %vm4577_vm0, %v4609_v2, %v4545_v18  ;;  %v2955_v53 = vrot.slane %v2845_v10, 1  ;;  %v3201_v21 = vrot.slane %v10058_v5, 2 }
 0x34f   : > { %v3325_v51 = vmul.f32 %v7325_v20, %v10059_v28  ;;  %v4642_v9 = vsel %vm4578_vm2, %v4610_v52, %v4546_v56  ;;  %v4673_v26 = vadd.f32 1.0, %v4641_v45  ;;  %v3198_v19 = vrot.slane %v3088_v62, 2 }
 0x350   : > { %v3199_v22 = vrot.slane %v3089_v27, 2  ;;  %v4674_v35 = vadd.f32 1.0, %v4642_v9  ;;  %v2956_v37 = vsel %vm2361_vm4, %v2954_v39, %v2955_v53  ;;  %v10061_v4 = vrot.slane %v10060_v41, 1 }
 0x351   : > { %v3326_v46 = vmul.f32 %v7325_v20, %v10062_v1  ;;  %v4705_v59 = vmul.f32 %v4673_v26, %v8649_v13  ;;  %v3045_v57 = vadd.f32 %v2956_v37, %v2801_v48  ;;  %v3400_v49 = vmul.f32 %v6925_v32, %v10059_v28 }
 0x352   : > { %v2958_v31 = vsel %vm2361_vm4, %v2955_v53, %v10061_v4  ;;  %v3200_v54 = vsel %vm2606_vm5, %v3198_v19, %v3199_v22  ;;  %v4706_v58 = vmul.f32 %v4674_v35, %v3874_v33  ;;  %v3202_v56 = vsel %vm2606_vm5, %v3199_v22, %v3201_v21 }
 0x353   : > { %v3046_v18 = vadd.f32 %v2958_v31, %v2802_v17  ;;  %v3401_v2 = vmul.f32 %v6925_v32, %v10062_v1  ;;  %v8713_v10 = vpop.eup %5715  ;;  %v3289_v52 = vadd.f32 %v3200_v54, %v3045_v57  ;;  %v3402_v13 = vmul.f32 %v6925_v32, %v7896_v34 }
 0x354   : > { %v3644_v48 = vmul.f32 %v8422_v12, %v10059_v28  ;;  %v8719_v17 = vpop.eup %5717  ;;  %v4732_v33 = vpack.c.bf16 %v4706_v58, %v4705_v59  ;;  %v4099_v62 = vmul.f32 1.0614054, %v8713_v10  ;;  %v3510_v27 = vrot.slane %v3400_v49, 1 }
 0x355   : > { %v3290_v39 = vadd.f32 %v3202_v56, %v3046_v18  ;;  %v3511_v45 = vrot.slane %v3401_v2, 1  ;;  %v4100_v53 = vmul.f32 1.0614054, %v8719_v17  ;;  %v3357_v5 = vadd.f32 %v3325_v51, %v3289_v52 }
 0x356   : > { %v3513_v9 = vrot.slane %v3402_v13, 1  ;;  %v8723_v26 = vpop.eup %5719  ;;  %5343 = vmatmul.mubr.bf16.gmra.mrb[44].mxu1 %v4732_v33  ;;  %v4131_v19 = vadd.f32 -1.4531521, %v4099_v62  ;;  %v3645_v35 = vmul.f32 %v8422_v12, %v10062_v1  ;;  %v3646_v37 = vmul.f32 %v8422_v12, %v7896_v34 }
 0x357   : > { %v3358_v21 = vadd.f32 %v3326_v46, %v3290_v39  ;;  %v3512_v22 = vsel %vm2361_vm4, %v3510_v27, %v3511_v45  ;;  %v4132_v41 = vadd.f32 -1.4531521, %v4100_v53  ;;  %v3754_v59 = vrot.slane %v3644_v48, 2 }
 0x358   : > { %v3514_v4 = vsel %vm2361_vm4, %v3511_v45, %v3513_v9  ;;  %v3601_v31 = vadd.f32 %v3512_v22, %v3357_v5  ;;  %v4163_v51 = vmul.f32 %v8713_v10, %v4131_v19  ;;  %v3755_v57 = vrot.slane %v3645_v35, 2 }
 0x359   : > { %v3602_v46 = vadd.f32 %v3514_v4, %v3358_v21  ;;  %v3757_v18 = vrot.slane %v3646_v37, 2  ;;  %v2420_v54 = vrot.slane %v8253_v44, 1  ;;  %v4164_v58 = vmul.f32 %v8719_v17, %v4132_v41  ;;  %v10063_v37 = vld [vmem:[#allocation97_spill] sm:$0xff] }
 0x35a   : > { %5721 = vpow2.f32 %v4465_v8  ;;  %v2289_v56 = vmul.f32 %v6195_v60, %v10049_v25  ;;  %v4195_v49 = vadd.f32 1.4214138, %v4163_v51  ;;  %v3756_v34 = vsel %vm2606_vm5, %v3754_v59, %v3755_v57 }
 0x35b   : > { %v3758_v2 = vsel %vm2606_vm5, %v3755_v57, %v3757_v18  ;;  %v2290_v52 = vmul.f32 %v6195_v60, %v10050_v7  ;;  %v4196_v39 = vadd.f32 1.4214138, %v4164_v58  ;;  %v8740_v13 = vadd.f32 %v3756_v34, %v3601_v31 }
 0x35c   : > { %v8742_v48 = vadd.f32 %v3758_v2, %v3602_v46  ;;  %v2213_v33 = vmul.f32 %v10006_v61, %v10049_v25  ;;  %v4227_v8 = vmul.f32 %v8713_v10, %v4195_v49  ;;  %v2214_v62 = vmul.f32 %v10006_v61, %v10050_v7 }
 0x35d   : > { %v2402_v27 = vrot.slane %v2289_v56, 1  ;;  %v2403_v45 = vrot.slane %v2290_v52, 1  ;;  %v4228_v53 = vmul.f32 %v8719_v17, %v4196_v39  ;;  %v8751_v5 = vmul.f32 0.70710677, %v8740_v13 }
 0x35e   : > { %v2534_v21 = vmul.f32 %v6227_v3, %v10049_v25  ;;  %v2535_v9 = vmul.f32 %v6227_v3, %v10050_v7  ;;  %v4259_v19 = vadd.f32 -0.28449672, %v4227_v8  ;;  %v8758_v22 = vmul.f32 0.70710677, %v8742_v48 }
 0x35f   : > { %v2404_v35 = vsel %vm2361_vm4, %v2402_v27, %v2403_v45  ;;  %v10064_v41 = vrot.slane %v10063_v37, 1  ;;  %v8765_v31 = vmul.f32 0.5, %v8646_v16  ;;  %v4260_v59 = vadd.f32 -0.28449672, %v4228_v53 }
 0x360   : > { %v3941_v51 = vand.u32 2147483647, %v8751_v5  ;;  %v2490_v25 = vadd.f32 %v2404_v35, %v2213_v33  ;;  %v8769_v46 = vmul.f32 0.5, %v8651_v38  ;;  %v4291_v7 = vmul.f32 %v8713_v10, %v4259_v19 }
 0x361   : > { %v2406_v4 = vsel %vm2361_vm4, %v2403_v45, %v10064_v41  ;;  %v3942_v57 = vand.u32 2147483647, %v8758_v22  ;;  %v4292_v58 = vmul.f32 %v8719_v17, %v4260_v59  ;;  %v2647_v34 = vrot.slane %v2534_v21, 2 }
 0x362   : > { %v2491_v18 = vadd.f32 %v2406_v4, %v2214_v62  ;;  %v3973_v56 = vmul.f32 0.3275911, %v3941_v51  ;;  %v4389_v49 = vsub.f32 0.0, %v3941_v51  ;;  %v4323_v2 = vadd.f32 0.2548296, %v4291_v7 }
 0x363   : > { %v3974_v16 = vmul.f32 0.3275911, %v3942_v57  ;;  %v4390_v52 = vsub.f32 0.0, %v3942_v57  ;;  %v2648_v39 = vrot.slane %v2535_v9, 2  ;;  %v4324_v27 = vadd.f32 0.2548296, %v4292_v58 }
 0x364   : > { %v5722_v8 = vpop.eup %5721  ;;  %vm4579_vm3 = vcmp.lt.f32.partialorder %v8656_v40, 0.0  ;;  %v4005_v38 = vadd.f32 1.0, %v3973_v56  ;;  %v4421_v33 = vmul.f32 %v4389_v49, %v3941_v51  ;;  %v2771_v45 = vmul.f32 %v9988_v50, %v10059_v28  ;;  %v10065_v9 = vld [vmem:[#allocation76_spill] sm:$0xff] }
 0x365   : > { %v4355_v62 = vmul.f32 %v8713_v10, %v4323_v2  ;;  %v4006_v53 = vadd.f32 1.0, %v3974_v16  ;;  %v4422_v19 = vmul.f32 %v4390_v52, %v3942_v57  ;;  %v2649_v35 = vsel %vm2606_vm5, %v2647_v34, %v2648_v39 }
 0x366   : > { %v4356_v21 = vmul.f32 %v8719_v17, %v4324_v27  ;;  %5723 = vrcp.f32 %v4005_v38  ;;  %v4467_v37 = vmul.f32 1.442695, %v4421_v33  ;;  %v10066_v41 = vrot.slane %v10065_v9, 2  ;;  %v10067_v33 = vld [vmem:[#allocation32_spill] sm:$0xff] }
 0x367   : > { %v4515_v59 = vmul.f32 %v8723_v26, %v4355_v62  ;;  %vm4580_vm6 = vcmp.lt.f32.partialorder %v8661_v43, 0.0  ;;  %5725 = vrcp.f32 %v4006_v53  ;;  %v2735_v51 = vadd.f32 %v2649_v35, %v2490_v25 }
 0x368   : > { %v2651_v4 = vsel %vm2606_vm5, %v2648_v39, %v10066_v41  ;;  %v4516_v7 = vmul.f32 %v5722_v8, %v4356_v21  ;;  %v4469_v10 = vmul.f32 1.442695, %v4422_v19  ;;  %v2772_v57 = vmul.f32 %v9988_v50, %v10062_v1  ;;  %v10068_v19 = vld [vmem:[#allocation26_spill] sm:$0xff] }
 0x369   : > { %v2736_v58 = vadd.f32 %v2651_v4, %v2491_v18  ;;  %v4547_v56 = vsub.f32 1.0, %v4515_v59  ;;  %5727 = vpow2.f32 %v4467_v37  ;;  %v2803_v17 = vadd.f32 %v2771_v45, %v2735_v51  ;;  %v10069_v41 = vld [vmem:[#allocation42_spill] sm:$0xff] }
 0x36a   : > { %v2847_v49 = vmul.f32 %v6386_v42, %v10059_v28  ;;  %v4548_v34 = vsub.f32 1.0, %v4516_v7  ;;  %v2848_v26 = vmul.f32 %v6386_v42, %v10062_v1  ;;  %v3091_v25 = vmul.f32 %v6390_v47, %v10059_v28 }
 0x36b   : > { %v2804_v2 = vadd.f32 %v2772_v57, %v2736_v58  ;;  %v4611_v16 = vsub.f32 0.0, %v4547_v56  ;;  %v3092_v18 = vmul.f32 %v6390_v47, %v10062_v1  ;;  %v3206_v39 = vrot.slane %v8029_v11, 2 }
 0x36c   : > { %v2959_v52 = vrot.slane %v2847_v49, 1  ;;  %v4612_v8 = vsub.f32 0.0, %v4548_v34  ;;  %v2960_v27 = vrot.slane %v2848_v26, 1  ;;  %v3203_v38 = vrot.slane %v3091_v25, 2 }
 0x36d   : > { %v3327_v45 = vmul.f32 %v7325_v20, %v10067_v33  ;;  %v4643_v62 = vsel %vm4579_vm3, %v4611_v16, %v4547_v56  ;;  %v3204_v53 = vrot.slane %v3092_v18, 2  ;;  %v3328_v35 = vmul.f32 %v7325_v20, %v10068_v19 }
 0x36e   : > { %v3403_v21 = vmul.f32 %v6925_v32, %v10067_v33  ;;  %v4644_v37 = vsel %vm4580_vm6, %v4612_v8, %v4548_v34  ;;  %v4675_v11 = vadd.f32 1.0, %v4643_v62  ;;  %v2961_v9 = vsel %vm2361_vm4, %v2959_v52, %v2960_v27 }
 0x36f   : > { %v10070_v4 = vrot.slane %v10069_v41, 1  ;;  %v4676_v51 = vadd.f32 1.0, %v4644_v37  ;;  %v3047_v40 = vadd.f32 %v2961_v9, %v2803_v17  ;;  %v3205_v58 = vsel %vm2606_vm5, %v3203_v38, %v3204_v53 }
 0x370   : > { %v8811_v57 = vpop.eup %5723  ;;  %v4707_v56 = vmul.f32 %v4675_v11, %v8765_v31  ;;  %v3207_v49 = vsel %vm2606_vm5, %v3204_v53, %v3206_v39  ;;  %v3404_v43 = vmul.f32 %v6925_v32, %v10068_v19  ;;  %v3405_v34 = vmul.f32 %v6925_v32, %v8032_v63 }
 0x371   : > { %v2963_v59 = vsel %vm2361_vm4, %v2960_v27, %v10070_v4  ;;  %v8819_v26 = vpop.eup %5725  ;;  %v4708_v25 = vmul.f32 %v4676_v51, %v8769_v46  ;;  %v4101_v17 = vmul.f32 1.0614054, %v8811_v57  ;;  %v3515_v18 = vrot.slane %v3403_v21, 1 }
 0x372   : > { %v3048_v7 = vadd.f32 %v2963_v59, %v2804_v2  ;;  %v3291_v2 = vadd.f32 %v3205_v58, %v3047_v40  ;;  %v4102_v52 = vmul.f32 1.0614054, %v8819_v26  ;;  %v3516_v31 = vrot.slane %v3404_v43, 1 }
 0x373   : > { %v3518_v8 = vrot.slane %v3405_v34, 1  ;;  %v8824_v39 = vpop.eup %5727  ;;  %v4733_v27 = vpack.c.bf16 %v4708_v25, %v4707_v56  ;;  %v4133_v38 = vadd.f32 -1.4531521, %v4101_v17  ;;  %v3647_v9 = vmul.f32 %v8422_v12, %v10067_v33 }
 0x374   : > { %v3292_v16 = vadd.f32 %v3207_v49, %v3048_v7  ;;  %v3359_v62 = vadd.f32 %v3327_v45, %v3291_v2  ;;  %v4134_v37 = vadd.f32 -1.4531521, %v4102_v52  ;;  %v3517_v11 = vsel %vm2361_vm4, %v3515_v18, %v3516_v31 }
 0x375   : > { %v3519_v46 = vsel %vm2361_vm4, %v3516_v31, %v3518_v8  ;;  %5346 = vmatprep.mubr.bf16.mxu1 %v4733_v27  ;;  %v4165_v41 = vmul.f32 %v8811_v57, %v4133_v38  ;;  %v3648_v59 = vmul.f32 %v8422_v12, %v10068_v19  ;;  %v2665_v51 = vrot.slane %v8262_v0, 2 }
 0x376   : > { %v3360_v53 = vadd.f32 %v3328_v35, %v3292_v16  ;;  %v3603_v21 = vadd.f32 %v3517_v11, %v3359_v62  ;;  %v4166_v45 = vmul.f32 %v8819_v26, %v4134_v37  ;;  %5729 = vpow2.f32 %v4469_v10 }
 0x377   : > { %v3649_v35 = vmul.f32 %v8422_v12, %v8032_v63  ;;  %v4197_v40 = vadd.f32 1.4214138, %v4165_v41  ;;  %v3759_v7 = vrot.slane %v3647_v9, 2  ;;  %v3760_v58 = vrot.slane %v3648_v59, 2  ;;  %v10071_v41 = vld [vmem:[#allocation39_spill] sm:$0xff] }
 0x378   : > { %v3604_v4 = vadd.f32 %v3519_v46, %v3360_v53  ;;  %v2292_v56 = vmul.f32 %v6195_v60, %v10059_v28  ;;  %v4198_v49 = vadd.f32 1.4214138, %v4166_v45  ;;  %v2293_v34 = vmul.f32 %v6195_v60, %v10062_v1 }
 0x379   : > { %v3762_v43 = vrot.slane %v3649_v35, 2  ;;  %v2537_v25 = vmul.f32 %v6227_v3, %v10059_v28  ;;  %v4229_v17 = vmul.f32 %v8811_v57, %v4197_v40  ;;  %v3761_v10 = vsel %vm2606_vm5, %v3759_v7, %v3760_v58 }
 0x37a   : > { %v2407_v2 = vrot.slane %v2292_v56, 1  ;;  %v2538_v63 = vmul.f32 %v6227_v3, %v10062_v1  ;;  %v4230_v12 = vmul.f32 %v8819_v26, %v4198_v49  ;;  %v8849_v52 = vadd.f32 %v3761_v10, %v3603_v21 }
 0x37b   : > { %v3763_v16 = vsel %vm2606_vm5, %v3760_v58, %v3762_v43  ;;  %v2408_v18 = vrot.slane %v2293_v34, 1  ;;  %v8852_v31 = vmul.f32 0.5, %v8740_v13  ;;  %v4261_v8 = vadd.f32 -0.28449672, %v4229_v17 }
 0x37c   : > { %v8854_v27 = vadd.f32 %v3763_v16, %v3604_v4  ;;  %v2215_v38 = vmul.f32 %v10006_v61, %v10059_v28  ;;  %v4262_v62 = vadd.f32 -0.28449672, %v4230_v12  ;;  %v8859_v53 = vmul.f32 0.70710677, %v8849_v52  ;;  %v10073_v12 = vld [vmem:[#allocation16_spill] sm:$0xff] }
 0x37d   : > { %v2409_v37 = vsel %vm2361_vm4, %v2407_v2, %v2408_v18  ;;  %v2653_v11 = vrot.slane %v2538_v63, 2  ;;  %v4293_v46 = vmul.f32 %v8811_v57, %v4261_v8  ;;  %v2216_v13 = vmul.f32 %v10006_v61, %v10062_v1 }
 0x37e   : > { %v8864_v9 = vmul.f32 0.70710677, %v8854_v27  ;;  %v10072_v21 = vrot.slane %v10071_v41, 1  ;;  %v4294_v28 = vmul.f32 %v8819_v26, %v4262_v62  ;;  %v3943_v59 = vand.u32 2147483647, %v8859_v53 }
 0x37f   : > { %v2492_v45 = vadd.f32 %v2409_v37, %v2215_v38  ;;  %v2652_v35 = vrot.slane %v2537_v25, 2  ;;  %v3878_v40 = vmul.f32 0.5, %v8742_v48  ;;  %v4325_v7 = vadd.f32 0.2548296, %v4293_v46 }
 0x380   : > { %v2411_v4 = vsel %vm2361_vm4, %v2408_v18, %v10072_v21  ;;  %v3944_v58 = vand.u32 2147483647, %v8864_v9  ;;  %v5730_v49 = vpop.eup %5729  ;;  %v4326_v43 = vadd.f32 0.2548296, %v4294_v28  ;;  %vm4581_vm7 = vcmp.lt.f32.partialorder %v8751_v5, 0.0 }
 0x381   : > { %v2493_v56 = vadd.f32 %v2411_v4, %v2216_v13  ;;  %v3975_v1 = vmul.f32 0.3275911, %v3943_v59  ;;  %v4391_v34 = vsub.f32 0.0, %v3943_v59  ;;  %v2654_v17 = vsel %vm2606_vm5, %v2652_v35, %v2653_v11 }
 0x382   : > { %v4357_v10 = vmul.f32 %v8811_v57, %v4325_v7  ;;  %v3976_v2 = vmul.f32 0.3275911, %v3944_v58  ;;  %v4392_v63 = vsub.f32 0.0, %v3944_v58  ;;  %v10074_v25 = vrot.slane %v10073_v12, 2 }
 0x383   : > { %v4358_v16 = vmul.f32 %v8819_v26, %v4326_v43  ;;  %v4007_v18 = vadd.f32 1.0, %v3975_v1  ;;  %v4423_v8 = vmul.f32 %v4391_v34, %v3943_v59  ;;  %v2737_v38 = vadd.f32 %v2654_v17, %v2492_v45 }
 0x384   : > { %v2656_v48 = vsel %vm2606_vm5, %v2653_v11, %v10074_v25  ;;  %v4517_v62 = vmul.f32 %v8824_v39, %v4357_v10  ;;  %v4008_v37 = vadd.f32 1.0, %v3976_v2  ;;  %v4424_v46 = vmul.f32 %v4392_v63, %v3944_v58 }
 0x385   : > { %v2738_v13 = vadd.f32 %v2656_v48, %v2493_v56  ;;  %v4518_v41 = vmul.f32 %v5730_v49, %v4358_v16  ;;  %5731 = vrcp.f32 %v4007_v18  ;;  %v4471_v21 = vmul.f32 1.442695, %v4423_v8 }
 0x386   : > { %v2773_v57 = vmul.f32 %v9988_v50, %v10067_v33  ;;  %v4549_v4 = vsub.f32 1.0, %v4517_v62  ;;  %vm4582_vm8 = vcmp.lt.f32.partialorder %v8758_v22, 0.0  ;;  %5733 = vrcp.f32 %v4008_v37 }
 0x387   : > { %v2774_v26 = vmul.f32 %v9988_v50, %v10068_v19  ;;  %v4550_v11 = vsub.f32 1.0, %v4518_v41  ;;  %v4473_v28 = vmul.f32 1.442695, %v4424_v46  ;;  %v2850_v39 = vmul.f32 %v6386_v42, %v10067_v33 }
 0x388   : > { %v2805_v59 = vadd.f32 %v2773_v57, %v2737_v38  ;;  %v4613_v45 = vsub.f32 0.0, %v4549_v4  ;;  %5735 = vpow2.f32 %v4471_v21  ;;  %v2851_v7 = vmul.f32 %v6386_v42, %v10068_v19 }
 0x389   : > { %v2806_v35 = vadd.f32 %v2774_v26, %v2738_v13  ;;  %v4614_v58 = vsub.f32 0.0, %v4550_v11  ;;  %v2964_v56 = vrot.slane %v2850_v39, 1  ;;  %v3094_v49 = vmul.f32 %v6390_v47, %v10067_v33 }
 0x38a   : > { %v3095_v43 = vmul.f32 %v6390_v47, %v10068_v19  ;;  %v4645_v1 = vsel %vm4581_vm7, %v4613_v45, %v4549_v4  ;;  %v2965_v34 = vrot.slane %v2851_v7, 1  ;;  %v3211_v17 = vrot.slane %v8110_v55, 2  ;;  %v8923_v4 = vld [vmem:[%s9631_s2 + $0x8] ss:$0 sm:$0xff] }
 0x38b   : > { %v3329_v10 = vmul.f32 %v7325_v20, %v8120_v23  ;;  %v4646_v2 = vsel %vm4582_vm8, %v4614_v58, %v4550_v11  ;;  %v4677_v63 = vadd.f32 1.0, %v4645_v1  ;;  %v3208_v12 = vrot.slane %v3094_v49, 2 }
 0x38c   : > { %v3209_v25 = vrot.slane %v3095_v43, 2  ;;  %v4678_v48 = vadd.f32 1.0, %v4646_v2  ;;  %v2966_v16 = vsel %vm2361_vm4, %v2964_v56, %v2965_v34  ;;  %v10075_v18 = vrot.slane %v8059_v36, 1 }
 0x38d   : > { %v3330_v8 = vmul.f32 %v7325_v20, %v8127_v24  ;;  %v4709_v55 = vmul.f32 %v4677_v63, %v8852_v31  ;;  %v3049_v38 = vadd.f32 %v2966_v16, %v2805_v59  ;;  %v3406_v13 = vmul.f32 %v6925_v32, %v8120_v23 }
 0x38e   : > { %v2968_v5 = vsel %vm2361_vm4, %v2965_v34, %v10075_v18  ;;  %v3210_v22 = vsel %vm2606_vm5, %v3208_v12, %v3209_v25  ;;  %v4710_v37 = vmul.f32 %v4678_v48, %v3878_v40  ;;  %v3212_v46 = vsel %vm2606_vm5, %v3209_v25, %v3211_v17 }
 0x38f   : > { %v3050_v62 = vadd.f32 %v2968_v5, %v2806_v35  ;;  %v3407_v36 = vmul.f32 %v6925_v32, %v8127_v24  ;;  %v8916_v41 = vpop.eup %5731  ;;  %v3293_v21 = vadd.f32 %v3210_v22, %v3049_v38  ;;  %v3408_v31 = vmul.f32 %v6925_v32, %v8217_v29 }
 0x390   : > { %v3650_v40 = vmul.f32 %v8923_v4, %v8120_v23  ;;  %v8927_v26 = vpop.eup %5733  ;;  %v4734_v11 = vpack.c.bf16 %v4710_v37, %v4709_v55  ;;  %v4103_v59 = vmul.f32 1.0614054, %v8916_v41  ;;  %v3520_v39 = vrot.slane %v3406_v13, 1 }
 0x391   : > { %v3294_v57 = vadd.f32 %v3212_v46, %v3050_v62  ;;  %v3521_v45 = vrot.slane %v3407_v36, 1  ;;  %v4104_v35 = vmul.f32 1.0614054, %v8927_v26  ;;  %v3361_v7 = vadd.f32 %v3329_v10, %v3293_v21 }
 0x392   : > { %v3523_v56 = vrot.slane %v3408_v31, 1  ;;  %v8931_v49 = vpop.eup %5735  ;;  %5347 = vmatmul.mubr.bf16.gmra.mrb[48].mxu1 %v4734_v11  ;;  %v4135_v43 = vadd.f32 -1.4531521, %v4103_v59  ;;  %v3651_v34 = vmul.f32 %v8923_v4, %v8127_v24  ;;  %v3652_v17 = vmul.f32 %v8923_v4, %v8217_v29 }
 0x393   : > { %v3362_v58 = vadd.f32 %v3330_v8, %v3294_v57  ;;  %v3522_v1 = vsel %vm2361_vm4, %v3520_v39, %v3521_v45  ;;  %v4136_v2 = vadd.f32 -1.4531521, %v4104_v35  ;;  %v3764_v25 = vrot.slane %v3650_v40, 2 }
 0x394   : > { %v3524_v63 = vsel %vm2361_vm4, %v3521_v45, %v3523_v56  ;;  %v3605_v12 = vadd.f32 %v3522_v1, %v3361_v7  ;;  %v4167_v10 = vmul.f32 %v8916_v41, %v4135_v43  ;;  %v3765_v16 = vrot.slane %v3651_v34, 2 }
 0x395   : > { %v3606_v48 = vadd.f32 %v3524_v63, %v3362_v58  ;;  %v3767_v18 = vrot.slane %v3652_v17, 2  ;;  %v2972_v5 = vrot.slane %v8525_v14, 1  ;;  %v4168_v8 = vmul.f32 %v8927_v26, %v4136_v2 }
 0x396   : > { %5737 = vpow2.f32 %v4473_v28  ;;  %v2295_v55 = vmul.f32 %v6195_v60, %v10067_v33  ;;  %v4199_v38 = vadd.f32 1.4214138, %v4167_v10  ;;  %v3766_v29 = vsel %vm2606_vm5, %v3764_v25, %v3765_v16 }
 0x397   : > { %v3768_v62 = vsel %vm2606_vm5, %v3765_v16, %v3767_v18  ;;  %v2296_v22 = vmul.f32 %v6195_v60, %v10068_v19  ;;  %v4200_v37 = vadd.f32 1.4214138, %v4168_v8  ;;  %v8948_v46 = vadd.f32 %v3766_v29, %v3605_v12 }
 0x398   : > { %v8950_v13 = vadd.f32 %v3768_v62, %v3606_v48  ;;  %v2217_v36 = vmul.f32 %v10006_v61, %v10067_v33  ;;  %v4231_v28 = vmul.f32 %v8916_v41, %v4199_v38  ;;  %v2218_v21 = vmul.f32 %v10006_v61, %v10068_v19 }
 0x399   : > { %v2412_v57 = vrot.slane %v2295_v55, 1  ;;  %v2413_v31 = vrot.slane %v2296_v22, 1  ;;  %v4232_v40 = vmul.f32 %v8927_v26, %v4200_v37  ;;  %v8959_v11 = vmul.f32 0.70710677, %v8948_v46 }
 0x39a   : > { %v2540_v59 = vmul.f32 %v6227_v3, %v10067_v33  ;;  %v2541_v39 = vmul.f32 %v6227_v3, %v10068_v19  ;;  %v4263_v45 = vadd.f32 -0.28449672, %v4231_v28  ;;  %v8966_v35 = vmul.f32 0.70710677, %v8950_v13 }
 0x39b   : > { %v2414_v7 = vsel %vm2361_vm4, %v2412_v57, %v2413_v31  ;;  %v10076_v58 = vrot.slane %v8051_v30, 1  ;;  %v8973_v43 = vmul.f32 0.5, %v8849_v52  ;;  %v4264_v1 = vadd.f32 -0.28449672, %v4232_v40 }
 0x39c   : > { %v3945_v34 = vand.u32 2147483647, %v8959_v11  ;;  %v2494_v33 = vadd.f32 %v2414_v7, %v2217_v36  ;;  %v8977_v17 = vmul.f32 0.5, %v8854_v27  ;;  %v4295_v19 = vmul.f32 %v8916_v41, %v4263_v45 }
 0x39d   : > { %v2416_v56 = vsel %vm2361_vm4, %v2413_v31, %v10076_v58  ;;  %v3946_v2 = vand.u32 2147483647, %v8966_v35  ;;  %v4296_v12 = vmul.f32 %v8927_v26, %v4264_v1  ;;  %v2657_v10 = vrot.slane %v2540_v59, 2 }
 0x39e   : > { %v2495_v63 = vadd.f32 %v2416_v56, %v2218_v21  ;;  %v3977_v30 = vmul.f32 0.3275911, %v3945_v34  ;;  %v4393_v25 = vsub.f32 0.0, %v3945_v34  ;;  %v4327_v48 = vadd.f32 0.2548296, %v4295_v19 }
 0x39f   : > { %v3978_v52 = vmul.f32 0.3275911, %v3946_v2  ;;  %v4394_v16 = vsub.f32 0.0, %v3946_v2  ;;  %v2658_v18 = vrot.slane %v2541_v39, 2  ;;  %v4328_v55 = vadd.f32 0.2548296, %v4296_v12 }
 0x3a0   : > { %v5738_v8 = vpop.eup %5737  ;;  %v4009_v38 = vadd.f32 1.0, %v3977_v30  ;;  %v4425_v29 = vmul.f32 %v4393_v25, %v3945_v34  ;;  %v2775_v27 = vmul.f32 %v9988_v50, %v8120_v23  ;;  %v4359_v62 = vmul.f32 %v8916_v41, %v4327_v48 }
 0x3a1   : > { %v4010_v22 = vadd.f32 1.0, %v3978_v52  ;;  %v4426_v37 = vmul.f32 %v4394_v16, %v3946_v2  ;;  %v2659_v36 = vsel %vm2606_vm5, %v2657_v10, %v2658_v18  ;;  %v4360_v28 = vmul.f32 %v8927_v26, %v4328_v55  ;;  %v10078_v10 = vld [vmem:[#allocation28_spill] sm:$0xff] }
 0x3a2   : > { %vm4583_vm9 = vcmp.lt.f32.partialorder %v8859_v53, 0.0  ;;  %5739 = vrcp.f32 %v4009_v38  ;;  %v10077_v21 = vrot.slane %v8055_v6, 2  ;;  %v4519_v31 = vmul.f32 %v8931_v49, %v4359_v62 }
 0x3a3   : > { %vm4584_vm10 = vcmp.lt.f32.partialorder %v8864_v9, 0.0  ;;  %5741 = vrcp.f32 %v4010_v22  ;;  %v2739_v40 = vadd.f32 %v2659_v36, %v2494_v33  ;;  %v4520_v41 = vmul.f32 %v5738_v8, %v4360_v28 }
 0x3a4   : > { %v2661_v57 = vsel %vm2606_vm5, %v2658_v18, %v10077_v21  ;;  %v4475_v59 = vmul.f32 1.442695, %v4425_v29  ;;  %v2776_v45 = vmul.f32 %v9988_v50, %v8127_v24  ;;  %v4551_v26 = vsub.f32 1.0, %v4519_v31  ;;  %v10079_v18 = vld [vmem:[#allocation29_spill] sm:$0xff] }
 0x3a5   : > { %v2740_v39 = vadd.f32 %v2661_v57, %v2495_v63  ;;  %v4477_v7 = vmul.f32 1.442695, %v4426_v37  ;;  %v2807_v58 = vadd.f32 %v2775_v27, %v2739_v40  ;;  %v2853_v6 = vmul.f32 %v6386_v42, %v8120_v23  ;;  %v10080_v57 = vld [vmem:[#allocation33_spill] sm:$0xff] }
 0x3a6   : > { %v4552_v56 = vsub.f32 1.0, %v4520_v41  ;;  %v2854_v49 = vmul.f32 %v6386_v42, %v8127_v24  ;;  %v3097_v34 = vmul.f32 %v6390_v47, %v8120_v23  ;;  %v4615_v33 = vsub.f32 0.0, %v4551_v26 }
 0x3a7   : > { %v2808_v1 = vadd.f32 %v2776_v45, %v2740_v39  ;;  %v2969_v19 = vrot.slane %v2853_v6, 1  ;;  %v3098_v2 = vmul.f32 %v6390_v47, %v8127_v24  ;;  %v3216_v63 = vrot.slane %v8629_v15, 2 }
 0x3a8   : > { %v4616_v12 = vsub.f32 0.0, %v4552_v56  ;;  %v2970_v30 = vrot.slane %v2854_v49, 1  ;;  %v3213_v25 = vrot.slane %v3097_v34, 2  ;;  %v3331_v48 = vmul.f32 %v7325_v20, %v10078_v10 }
 0x3a9   : > { %v4647_v52 = vsel %vm4583_vm9, %v4615_v33, %v4551_v26  ;;  %v3214_v16 = vrot.slane %v3098_v2, 2  ;;  %v3332_v8 = vmul.f32 %v7325_v20, %v10079_v18  ;;  %v3409_v55 = vmul.f32 %v6925_v32, %v10078_v10 }
 0x3aa   : > { %v4648_v38 = vsel %vm4584_vm10, %v4616_v12, %v4552_v56  ;;  %v4679_v15 = vadd.f32 1.0, %v4647_v52  ;;  %v2971_v29 = vsel %vm2361_vm4, %v2969_v19, %v2970_v30  ;;  %v2973_v27 = vsel %vm2361_vm4, %v2970_v30, %v2972_v5 }
 0x3ab   : > { %v4680_v62 = vadd.f32 1.0, %v4648_v38  ;;  %v3051_v53 = vadd.f32 %v2971_v29, %v2807_v58  ;;  %v3052_v22 = vadd.f32 %v2973_v27, %v2808_v1  ;;  %v3215_v37 = vsel %vm2606_vm5, %v3213_v25, %v3214_v16 }
 0x3ac   : > { %v9019_v36 = vpop.eup %5739  ;;  %v4711_v28 = vmul.f32 %v4679_v15, %v8973_v43  ;;  %v3217_v21 = vsel %vm2606_vm5, %v3214_v16, %v3216_v63  ;;  %v3410_v9 = vmul.f32 %v6925_v32, %v10079_v18  ;;  %v3411_v31 = vmul.f32 %v6925_v32, %v10080_v57 }
 0x3ad   : > { %v9027_v14 = vpop.eup %5741  ;;  %v4712_v5 = vmul.f32 %v4680_v62, %v8977_v17  ;;  %v4105_v40 = vmul.f32 1.0614054, %v9019_v36  ;;  %v3295_v41 = vadd.f32 %v3215_v37, %v3051_v53  ;;  %v3296_v39 = vadd.f32 %v3217_v21, %v3052_v22 }
 0x3ae   : > { %v4106_v45 = vmul.f32 1.0614054, %v9027_v14  ;;  %v3525_v26 = vrot.slane %v3409_v55, 1  ;;  %v3526_v43 = vrot.slane %v3410_v9, 1  ;;  %v3528_v58 = vrot.slane %v3411_v31, 1 }
 0x3af   : > { %v4735_v6 = vpack.c.bf16 %v4712_v5, %v4711_v28  ;;  %v4137_v56 = vadd.f32 -1.4531521, %v4105_v40  ;;  %v3363_v1 = vadd.f32 %v3331_v48, %v3295_v41  ;;  %v3364_v49 = vadd.f32 %v3332_v8, %v3296_v39 }
 0x3b0   : > { %v4138_v34 = vadd.f32 -1.4531521, %v4106_v45  ;;  %v3527_v33 = vsel %vm2361_vm4, %v3525_v26, %v3526_v43  ;;  %v3529_v19 = vsel %vm2361_vm4, %v3526_v43, %v3528_v58  ;;  %v3653_v17 = vmul.f32 %v8923_v4, %v10078_v10 }
 0x3b1   : > { %5350 = vmatprep.mubr.bf16.mxu1 %v4735_v6  ;;  %v4169_v2 = vmul.f32 %v9019_v36, %v4137_v56  ;;  %v3607_v63 = vadd.f32 %v3527_v33, %v3363_v1  ;;  %v3608_v12 = vadd.f32 %v3529_v19, %v3364_v49  ;;  %v3654_v30 = vmul.f32 %v8923_v4, %v10079_v18 }
 0x3b2   : > { %v4170_v25 = vmul.f32 %v9027_v14, %v4138_v34  ;;  %5743 = vpow2.f32 %v4475_v59  ;;  %v3655_v48 = vmul.f32 %v8923_v4, %v10080_v57  ;;  %v3769_v52 = vrot.slane %v3653_v17, 2 }
 0x3b3   : > { %v4201_v16 = vadd.f32 1.4214138, %v4169_v2  ;;  %5745 = vpow2.f32 %v4477_v7  ;;  %v3770_v8 = vrot.slane %v3654_v30, 2  ;;  %v2298_v55 = vmul.f32 %v6195_v60, %v8120_v23 }
 0x3b4   : > { %v4202_v38 = vadd.f32 1.4214138, %v4170_v25  ;;  %v3772_v15 = vrot.slane %v3655_v48, 2  ;;  %v2299_v29 = vmul.f32 %v6195_v60, %v8127_v24  ;;  %v2543_v27 = vmul.f32 %v6227_v3, %v8120_v23 }
 0x3b5   : > { %v4233_v59 = vmul.f32 %v9019_v36, %v4201_v16  ;;  %v3771_v62 = vsel %vm2606_vm5, %v3769_v52, %v3770_v8  ;;  %v2417_v53 = vrot.slane %v2298_v55, 1  ;;  %v2544_v7 = vmul.f32 %v6227_v3, %v8127_v24 }
 0x3b6   : > { %v4234_v22 = vmul.f32 %v9027_v14, %v4202_v38  ;;  %v3773_v37 = vsel %vm2606_vm5, %v3770_v8, %v3772_v15  ;;  %v9054_v28 = vadd.f32 %v3771_v62, %v3607_v63  ;;  %v2418_v21 = vrot.slane %v2299_v29, 1 }
 0x3b7   : > { %v9057_v9 = vmul.f32 0.5, %v8948_v46  ;;  %v4265_v57 = vadd.f32 -0.28449672, %v4233_v59  ;;  %v9059_v31 = vadd.f32 %v3773_v37, %v3608_v12  ;;  %v2219_v5 = vmul.f32 %v10006_v61, %v8120_v23 }
 0x3b8   : > { %v4266_v40 = vadd.f32 -0.28449672, %v4234_v22  ;;  %v9064_v41 = vmul.f32 0.70710677, %v9054_v28  ;;  %v2419_v39 = vsel %vm2361_vm4, %v2417_v53, %v2418_v21  ;;  %v2663_v45 = vrot.slane %v2544_v7, 2 }
 0x3b9   : > { %v4297_v26 = vmul.f32 %v9019_v36, %v4265_v57  ;;  %v9069_v43 = vmul.f32 0.70710677, %v9059_v31  ;;  %v2220_v46 = vmul.f32 %v10006_v61, %v8127_v24  ;;  %v2421_v58 = vsel %vm2361_vm4, %v2418_v21, %v2420_v54 }
 0x3ba   : > { %v4298_v23 = vmul.f32 %v9027_v14, %v4266_v40  ;;  %v3947_v6 = vand.u32 2147483647, %v9064_v41  ;;  %v2496_v56 = vadd.f32 %v2419_v39, %v2219_v5  ;;  %v2662_v1 = vrot.slane %v2543_v27, 2 }
 0x3bb   : > { %v3882_v49 = vmul.f32 0.5, %v8950_v13  ;;  %v4329_v34 = vadd.f32 0.2548296, %v4297_v26  ;;  %v3948_v33 = vand.u32 2147483647, %v9069_v43  ;;  %v2497_v19 = vadd.f32 %v2421_v58, %v2220_v46  ;;  %v10081_v46 = vld [vmem:[#allocation37_spill] sm:$0xff] }
 0x3bc   : > { %v5744_v17 = vpop.eup %5743  ;;  %v4330_v2 = vadd.f32 0.2548296, %v4298_v23  ;;  %v3979_v63 = vmul.f32 0.3275911, %v3947_v6  ;;  %v4395_v24 = vsub.f32 0.0, %v3947_v6  ;;  %v2664_v44 = vsel %vm2606_vm5, %v2662_v1, %v2663_v45  ;;  %v10082_v23 = vld [vmem:[#allocation40_spill] sm:$0xff] }
 0x3bd   : > { %v5746_v12 = vpop.eup %5745  ;;  %v4361_v54 = vmul.f32 %v9019_v36, %v4329_v34  ;;  %v3980_v30 = vmul.f32 0.3275911, %v3948_v33  ;;  %v4396_v25 = vsub.f32 0.0, %v3948_v33  ;;  %v2666_v48 = vsel %vm2606_vm5, %v2663_v45, %v2665_v51 }
 0x3be   : > { %v4362_v13 = vmul.f32 %v9027_v14, %v4330_v2  ;;  %v4011_v52 = vadd.f32 1.0, %v3979_v63  ;;  %v4427_v16 = vmul.f32 %v4395_v24, %v3947_v6  ;;  %v2741_v8 = vadd.f32 %v2664_v44, %v2496_v56  ;;  %v10083_v2 = vld [vmem:[#allocation36_spill] sm:$0xff]  ;;  %v10085_v24 = vld [vmem:[#allocation46_spill] sm:$0xff] }
 0x3bf   : > { %v4521_v55 = vmul.f32 %v5744_v17, %v4361_v54  ;;  %v4012_v38 = vadd.f32 1.0, %v3980_v30  ;;  %v4428_v15 = vmul.f32 %v4396_v25, %v3948_v33  ;;  %v2742_v29 = vadd.f32 %v2666_v48, %v2497_v19 }
 0x3c0   : > { %v4522_v27 = vmul.f32 %v5746_v12, %v4362_v13  ;;  %vm4585_vm11 = vcmp.lt.f32.partialorder %v8959_v11, 0.0  ;;  %5747 = vrcp.f32 %v4011_v52  ;;  %v2777_v36 = vmul.f32 %v9988_v50, %v10078_v10 }
 0x3c1   : > { %v4553_v59 = vsub.f32 1.0, %v4521_v55  ;;  %vm4586_vm12 = vcmp.lt.f32.partialorder %v8966_v35, 0.0  ;;  %5749 = vrcp.f32 %v4012_v38  ;;  %v2778_v0 = vmul.f32 %v9988_v50, %v10079_v18  ;;  %v10086_v38 = vld [vmem:[#allocation41_spill] sm:$0xff] }
 0x3c2   : > { %v4554_v51 = vsub.f32 1.0, %v4522_v27  ;;  %v4479_v14 = vmul.f32 1.442695, %v4427_v16  ;;  %v2809_v62 = vadd.f32 %v2777_v36, %v2741_v8  ;;  %v2856_v53 = vmul.f32 %v6386_v42, %v10078_v10 }
 0x3c3   : > { %v4617_v7 = vsub.f32 0.0, %v4553_v59  ;;  %v9094_v22 = vmul.f32 1.442695, %v4428_v15  ;;  %v2810_v37 = vadd.f32 %v2778_v0, %v2742_v29  ;;  %v2857_v21 = vmul.f32 %v6386_v42, %v10079_v18 }
 0x3c4   : > { %v4618_v57 = vsub.f32 0.0, %v4554_v51  ;;  %v2974_v5 = vrot.slane %v2856_v53, 1  ;;  %v3100_v40 = vmul.f32 %v6390_v47, %v10078_v10  ;;  %v3101_v39 = vmul.f32 %v6390_v47, %v10079_v18 }
 0x3c5   : > { %v4649_v45 = vsel %vm4585_vm11, %v4617_v7, %v4553_v59  ;;  %v2975_v26 = vrot.slane %v2857_v21, 1  ;;  %v3221_v58 = vrot.slane %v10081_v46, 2  ;;  %v3333_v6 = vmul.f32 %v7325_v20, %v10082_v23 }
 0x3c6   : > { %v4650_v56 = vsel %vm4586_vm12, %v4618_v57, %v4554_v51  ;;  %v4681_v1 = vadd.f32 1.0, %v4649_v45  ;;  %v3218_v34 = vrot.slane %v3100_v40, 2  ;;  %v3219_v33 = vrot.slane %v3101_v39, 2 }
 0x3c7   : > { %v4682_v19 = vadd.f32 1.0, %v4650_v56  ;;  %v2976_v17 = vsel %vm2361_vm4, %v2974_v5, %v2975_v26  ;;  %v10084_v63 = vrot.slane %v10083_v2, 1  ;;  %v3334_v44 = vmul.f32 %v7325_v20, %v10085_v24 }
 0x3c8   : > { %v4713_v12 = vmul.f32 %v4681_v1, %v9057_v9  ;;  %v3053_v54 = vadd.f32 %v2976_v17, %v2809_v62  ;;  %v3220_v35 = vsel %vm2606_vm5, %v3218_v34, %v3219_v33  ;;  %v3222_v48 = vsel %vm2606_vm5, %v3219_v33, %v3221_v58 }
 0x3c9   : > { %v2978_v11 = vsel %vm2361_vm4, %v2975_v26, %v10084_v63  ;;  %v4714_v25 = vmul.f32 %v4682_v19, %v3882_v49  ;;  %v3412_v13 = vmul.f32 %v6925_v32, %v10082_v23  ;;  %v3413_v52 = vmul.f32 %v6925_v32, %v10085_v24 }
 0x3ca   : > { %v3054_v30 = vadd.f32 %v2978_v11, %v2810_v37  ;;  %v9122_v16 = vpop.eup %5747  ;;  %v3297_v8 = vadd.f32 %v3220_v35, %v3053_v54  ;;  %v3414_v9 = vmul.f32 %v6925_v32, %v10086_v38  ;;  %v3656_v15 = vmul.f32 %v8923_v4, %v10082_v23 }
 0x3cb   : > { %v9128_v29 = vpop.eup %5749  ;;  %v4736_v49 = vpack.c.bf16 %v4714_v25, %v4713_v12  ;;  %v4107_v27 = vmul.f32 1.0614054, %v9122_v16  ;;  %v3530_v36 = vrot.slane %v3412_v13, 1  ;;  %v3531_v59 = vrot.slane %v3413_v52, 1 }
 0x3cc   : > { %v3298_v55 = vadd.f32 %v3222_v48, %v3054_v30  ;;  %v4108_v0 = vmul.f32 1.0614054, %v9128_v29  ;;  %v3365_v51 = vadd.f32 %v3333_v6, %v3297_v8  ;;  %v3533_v53 = vrot.slane %v3414_v9, 1 }
 0x3cd   : > { %5351 = vmatmul.mubr.bf16.gmra.mrb[52].mxu1 %v4736_v49  ;;  %v4139_v7 = vadd.f32 -1.4531521, %v4107_v27  ;;  %v3532_v37 = vsel %vm2361_vm4, %v3530_v36, %v3531_v59  ;;  %v3657_v21 = vmul.f32 %v8923_v4, %v10085_v24  ;;  %v3658_v57 = vmul.f32 %v8923_v4, %v10086_v38 }
 0x3ce   : > { %v3366_v62 = vadd.f32 %v3334_v44, %v3298_v55  ;;  %v4140_v5 = vadd.f32 -1.4531521, %v4108_v0  ;;  %v3534_v40 = vsel %vm2361_vm4, %v3531_v59, %v3533_v53  ;;  %v3609_v39 = vadd.f32 %v3532_v37, %v3365_v51  ;;  %v10087_v55 = vld [vmem:[#allocation8_spill] sm:$0xff] }
 0x3cf   : > { %v3774_v45 = vrot.slane %v3656_v15, 2  ;;  %v4171_v26 = vmul.f32 %v9122_v16, %v4139_v7  ;;  %v3775_v58 = vrot.slane %v3657_v21, 2  ;;  %v3777_v6 = vrot.slane %v3658_v57, 2 }
 0x3d0   : > { %v3610_v46 = vadd.f32 %v3534_v40, %v3366_v62  ;;  %v4172_v56 = vmul.f32 %v9128_v29, %v4140_v5  ;;  %5751 = vpow2.f32 %v4479_v14  ;;  %v2221_v1 = vmul.f32 %v10006_v61, %v10078_v10 }
 0x3d1   : > { %v2301_v34 = vmul.f32 %v6195_v60, %v10078_v10  ;;  %v4203_v33 = vadd.f32 1.4214138, %v4171_v26  ;;  %v3776_v19 = vsel %vm2606_vm5, %v3774_v45, %v3775_v58  ;;  %v3778_v17 = vsel %vm2606_vm5, %v3775_v58, %v3777_v6 }
 0x3d2   : > { %v2302_v2 = vmul.f32 %v6195_v60, %v10079_v18  ;;  %v4204_v63 = vadd.f32 1.4214138, %v4172_v56  ;;  %v9148_v11 = vadd.f32 %v3776_v19, %v3609_v39  ;;  %v9150_v44 = vadd.f32 %v3778_v17, %v3610_v46 }
 0x3d3   : > { %v2422_v14 = vrot.slane %v2301_v34, 1  ;;  %v4235_v12 = vmul.f32 %v9122_v16, %v4203_v33  ;;  %5753 = vpow2.f32 %v9094_v22  ;;  %v2222_v54 = vmul.f32 %v10006_v61, %v10079_v18  ;;  %v10089_v34 = vld [vmem:[#allocation35_spill] sm:$0xff] }
 0x3d4   : > { %v2423_v30 = vrot.slane %v2302_v2, 1  ;;  %v4236_v35 = vmul.f32 %v9128_v29, %v4204_v63  ;;  %v9158_v25 = vmul.f32 0.70710677, %v9148_v11  ;;  %v2546_v48 = vmul.f32 %v6227_v3, %v10078_v10 }
 0x3d5   : > { %v2547_v13 = vmul.f32 %v6227_v3, %v10079_v18  ;;  %v4267_v52 = vadd.f32 -0.28449672, %v4235_v12  ;;  %v9165_v8 = vmul.f32 0.70710677, %v9150_v44  ;;  %v10088_v38 = vrot.slane %v10087_v55, 1 }
 0x3d6   : > { %v2424_v22 = vsel %vm2361_vm4, %v2422_v14, %v2423_v30  ;;  %v9172_v15 = vmul.f32 0.5, %v9054_v28  ;;  %v4268_v49 = vadd.f32 -0.28449672, %v4236_v35  ;;  %v3949_v27 = vand.u32 2147483647, %v9158_v25 }
 0x3d7   : > { %v2426_v9 = vsel %vm2361_vm4, %v2423_v30, %v10088_v38  ;;  %v2498_v10 = vadd.f32 %v2424_v22, %v2221_v1  ;;  %v9176_v36 = vmul.f32 0.5, %v9059_v31  ;;  %v4299_v18 = vmul.f32 %v9122_v16, %v4267_v52 }
 0x3d8   : > { %v3950_v59 = vand.u32 2147483647, %v9165_v8  ;;  %v2499_v0 = vadd.f32 %v2426_v9, %v2222_v54  ;;  %v4300_v51 = vmul.f32 %v9128_v29, %v4268_v49  ;;  %v3981_v62 = vmul.f32 0.3275911, %v3949_v27  ;;  %v10091_v49 = vld [vmem:[#allocation50_spill] sm:$0xff] }
 0x3d9   : > { %v4397_v53 = vsub.f32 0.0, %v3949_v27  ;;  %v2667_v7 = vrot.slane %v2546_v48, 2  ;;  %v4331_v37 = vadd.f32 0.2548296, %v4299_v18  ;;  %v2668_v57 = vrot.slane %v2547_v13, 2 }
 0x3da   : > { %v3982_v28 = vmul.f32 0.3275911, %v3950_v59  ;;  %v4398_v21 = vsub.f32 0.0, %v3950_v59  ;;  %v5752_v5 = vpop.eup %5751  ;;  %v4332_v40 = vadd.f32 0.2548296, %v4300_v51  ;;  %vm4587_vm13 = vcmp.lt.f32.partialorder %v9064_v41, 0.0 }
 0x3db   : > { %v4013_v31 = vadd.f32 1.0, %v3981_v62  ;;  %v4429_v39 = vmul.f32 %v4397_v53, %v3949_v27  ;;  %v2779_v45 = vmul.f32 %v9988_v50, %v10082_v23  ;;  %v4363_v26 = vmul.f32 %v9122_v16, %v4331_v37  ;;  %v10092_v51 = vld [vmem:[#allocation53_spill] sm:$0xff] }
 0x3dc   : > { %v4014_v46 = vadd.f32 1.0, %v3982_v28  ;;  %v4430_v58 = vmul.f32 %v4398_v21, %v3950_v59  ;;  %v2669_v6 = vsel %vm2606_vm5, %v2667_v7, %v2668_v57  ;;  %v4364_v56 = vmul.f32 %v9128_v29, %v4332_v40  ;;  %v10093_v28 = vld [vmem:[#allocation57_spill] sm:$0xff] }
 0x3dd   : > { %5755 = vrcp.f32 %v4013_v31  ;;  %v4483_v1 = vmul.f32 1.442695, %v4429_v39  ;;  %v10090_v33 = vrot.slane %v10089_v34, 2  ;;  %v5754_v17 = vpop.eup %5753  ;;  %v4523_v2 = vmul.f32 %v5752_v5, %v4363_v26 }
 0x3de   : > { %vm4588_vm14 = vcmp.lt.f32.partialorder %v9069_v43, 0.0  ;;  %5757 = vrcp.f32 %v4014_v46  ;;  %v2743_v63 = vadd.f32 %v2669_v6, %v2498_v10  ;;  %v4524_v14 = vmul.f32 %v5754_v17, %v4364_v56  ;;  %v5336_v10 = vpop.f32.mrb[36].mxu1  ;;  %v10096_v17 = vld [vmem:[#allocation13_spill] sm:$0xff] }
 0x3df   : > { %v2671_v19 = vsel %vm2606_vm5, %v2668_v57, %v10090_v33  ;;  %v9191_v16 = vmul.f32 1.442695, %v4430_v58  ;;  %v2780_v29 = vmul.f32 %v9988_v50, %v10085_v24  ;;  %v4555_v54 = vsub.f32 1.0, %v4523_v2  ;;  %v4841_v53 = vpop.f32.mrb[37].mxu1  ;;  %4970 = vst.msk [vmem:[%s9221_s6 + $0x10] sm:$0xff] %vm402_vm1, %v5336_v10 }
 0x3e0   : > { %v2744_v12 = vadd.f32 %v2671_v19, %v2499_v0  ;;  %5759 = vpow2.f32 %v4483_v1  ;;  %v2811_v30 = vadd.f32 %v2779_v45, %v2743_v63  ;;  %v2859_v35 = vmul.f32 %v6386_v42, %v10082_v23  ;;  %v5337_v5 = vpop.f32.mrb[38].mxu1  ;;  %v10094_v45 = vld [vmem:[#allocation49_spill] sm:$0xff]  ;;  %4968 = vst.msk [vmem:[%s9221_s6] sm:$0xff] %vm402_vm1, %v4841_v53 }
 0x3e1   : > { %v4556_v48 = vsub.f32 1.0, %v4524_v14  ;;  %v2860_v52 = vmul.f32 %v6386_v42, %v10085_v24  ;;  %v3103_v22 = vmul.f32 %v6390_v47, %v10082_v23  ;;  %v4619_v55 = vsub.f32 0.0, %v4555_v54  ;;  %4971 = vst.msk [vmem:[%s9221_s6 + $0x18] sm:$0xff] %vm402_vm1, %v5337_v5  ;;  %v4844_v41 = vpop.f32.mrb[39].mxu1 }
 0x3e2   : > { %v2812_v13 = vadd.f32 %v2780_v29, %v2744_v12  ;;  %v2979_v38 = vrot.slane %v2859_v35, 1  ;;  %v3104_v9 = vmul.f32 %v6390_v47, %v10085_v24  ;;  %v3226_v27 = vrot.slane %v10091_v49, 2  ;;  %4969 = vst.msk [vmem:[%s9221_s6 + $0x8] sm:$0xff] %vm402_vm1, %v4844_v41 }
 0x3e3   : > { %v4620_v18 = vsub.f32 0.0, %v4556_v48  ;;  %v2980_v59 = vrot.slane %v2860_v52, 1  ;;  %v3223_v0 = vrot.slane %v3103_v22, 2  ;;  %v3335_v62 = vmul.f32 %v7325_v20, %v10092_v51 }
 0x3e4   : > { %v4651_v7 = vsel %vm4587_vm13, %v4619_v55, %v4555_v54  ;;  %v3224_v37 = vrot.slane %v3104_v9, 2  ;;  %v3336_v21 = vmul.f32 %v7325_v20, %v10093_v28  ;;  %v3415_v57 = vmul.f32 %v6925_v32, %v10092_v51 }
 0x3e5   : > { %v4652_v40 = vsel %vm4588_vm14, %v4620_v18, %v4556_v48  ;;  %v4683_v31 = vadd.f32 1.0, %v4651_v7  ;;  %v2981_v39 = vsel %vm2361_vm4, %v2979_v38, %v2980_v59  ;;  %v10095_v26 = vrot.slane %v10094_v45, 1 }
 0x3e6   : > { %v4684_v43 = vadd.f32 1.0, %v4652_v40  ;;  %v3055_v58 = vadd.f32 %v2981_v39, %v2811_v30  ;;  %v3225_v56 = vsel %vm2606_vm5, %v3223_v0, %v3224_v37  ;;  %v3227_v33 = vsel %vm2606_vm5, %v3224_v37, %v3226_v27 }
 0x3e7   : > { %v2983_v46 = vsel %vm2361_vm4, %v2980_v59, %v10095_v26  ;;  %v9232_v1 = vpop.eup %5755  ;;  %v4715_v34 = vmul.f32 %v4683_v31, %v9172_v15  ;;  %v3416_v19 = vmul.f32 %v6925_v32, %v10093_v28  ;;  %v3417_v2 = vmul.f32 %v6925_v32, %v10096_v17 }
 0x3e8   : > { %v3056_v6 = vadd.f32 %v2983_v46, %v2812_v13  ;;  %v9240_v63 = vpop.eup %5757  ;;  %v4716_v14 = vmul.f32 %v4684_v43, %v9176_v36  ;;  %v4109_v12 = vmul.f32 1.0614054, %v9232_v1  ;;  %v3299_v29 = vadd.f32 %v3225_v56, %v3055_v58 }
 0x3e9   : > { %v4110_v30 = vmul.f32 1.0614054, %v9240_v63  ;;  %v3535_v35 = vrot.slane %v3415_v57, 1  ;;  %v3536_v15 = vrot.slane %v3416_v19, 1  ;;  %v3538_v48 = vrot.slane %v3417_v2, 1 }
 0x3ea   : > { %v3300_v54 = vadd.f32 %v3227_v33, %v3056_v6  ;;  %v9245_v13 = vpop.eup %5759  ;;  %v4737_v52 = vpack.c.bf16 %v4716_v14, %v4715_v34  ;;  %v4141_v22 = vadd.f32 -1.4531521, %v4109_v12  ;;  %v3367_v55 = vadd.f32 %v3335_v62, %v3299_v29 }
 0x3eb   : > { %v4142_v9 = vadd.f32 -1.4531521, %v4110_v30  ;;  %v3537_v49 = vsel %vm2361_vm4, %v3535_v35, %v3536_v15  ;;  %v3539_v36 = vsel %vm2361_vm4, %v3536_v15, %v3538_v48  ;;  %v3659_v27 = vmul.f32 %v8923_v4, %v10092_v51  ;;  %v10097_v30 = vld [vmem:[#allocation22_spill] sm:$0xff]  ;;  %v10098_v48 = vld [vmem:[#allocation47_spill] sm:$0xff] }
 0x3ec   : > { %v3368_v38 = vadd.f32 %v3336_v21, %v3300_v54  ;;  %5354 = vmatprep.mubr.bf16.mxu1 %v4737_v52  ;;  %v4173_v10 = vmul.f32 %v9232_v1, %v4141_v22  ;;  %v3611_v18 = vadd.f32 %v3537_v49, %v3367_v55  ;;  %v3660_v0 = vmul.f32 %v8923_v4, %v10093_v28 }
 0x3ed   : > { %v4174_v53 = vmul.f32 %v9240_v63, %v4142_v9  ;;  %5761 = vpow2.f32 %v9191_v16  ;;  %v3661_v62 = vmul.f32 %v8923_v4, %v10096_v17  ;;  %v3779_v7 = vrot.slane %v3659_v27, 2  ;;  %v5340_v17 = vpop.f32.mrb[40].mxu1 }
 0x3ee   : > { %v3612_v59 = vadd.f32 %v3539_v36, %v3368_v38  ;;  %v4205_v37 = vadd.f32 1.4214138, %v4173_v10  ;;  %v3780_v21 = vrot.slane %v3660_v0, 2  ;;  %v2223_v57 = vmul.f32 %v10006_v61, %v10082_v23  ;;  %4974 = vst.msk [vmem:[%s9221_s6 + $0x30] sm:$0xff] %vm402_vm1, %v5340_v17  ;;  %v4857_v54 = vpop.f32.mrb[41].mxu1 }
 0x3ef   : > { %v2304_v5 = vmul.f32 %v6195_v60, %v10082_v23  ;;  %v4206_v40 = vadd.f32 1.4214138, %v4174_v53  ;;  %v3782_v31 = vrot.slane %v3661_v62, 2  ;;  %v2305_v39 = vmul.f32 %v6195_v60, %v10085_v24  ;;  %4972 = vst.msk [vmem:[%s9221_s6 + $0x20] sm:$0xff] %vm402_vm1, %v4857_v54  ;;  %v5341_v55 = vpop.f32.mrb[42].mxu1 }
 0x3f0   : > { %v2549_v16 = vmul.f32 %v6227_v3, %v10082_v23  ;;  %v4237_v45 = vmul.f32 %v9232_v1, %v4205_v37  ;;  %v3781_v26 = vsel %vm2606_vm5, %v3779_v7, %v3780_v21  ;;  %v2550_v41 = vmul.f32 %v6227_v3, %v10085_v24  ;;  %4975 = vst.msk [vmem:[%s9221_s6 + $0x38] sm:$0xff] %vm402_vm1, %v5341_v55  ;;  %v4860_v27 = vpop.f32.mrb[43].mxu1 }
 0x3f1   : > { %v2427_v46 = vrot.slane %v2304_v5, 1  ;;  %v4238_v43 = vmul.f32 %v9240_v63, %v4206_v40  ;;  %v3783_v58 = vsel %vm2606_vm5, %v3780_v21, %v3782_v31  ;;  %v9272_v6 = vadd.f32 %v3781_v26, %v3611_v18  ;;  %4973 = vst.msk [vmem:[%s9221_s6 + $0x28] sm:$0xff] %vm402_vm1, %v4860_v27  ;;  %v10100_v40 = vld [vmem:[#allocation48_spill] sm:$0xff] }
 0x3f2   : > { %v2428_v56 = vrot.slane %v2305_v39, 1  ;;  %v4269_v34 = vadd.f32 -0.28449672, %v4237_v45  ;;  %v9274_v33 = vadd.f32 %v3783_v58, %v3612_v59  ;;  %v2224_v23 = vmul.f32 %v10006_v61, %v10085_v24  ;;  %v10103_v27 = vld [vmem:[#allocation60_spill] sm:$0xff] }
 0x3f3   : > { %v2672_v19 = vrot.slane %v2549_v16, 2  ;;  %v4270_v2 = vadd.f32 -0.28449672, %v4238_v43  ;;  %v9279_v14 = vmul.f32 0.70710677, %v9272_v6  ;;  %v2673_v29 = vrot.slane %v2550_v41, 2 }
 0x3f4   : > { %v2429_v12 = vsel %vm2361_vm4, %v2427_v46, %v2428_v56  ;;  %v3550_v35 = vrot.slane %v10097_v30, 1  ;;  %v4301_v15 = vmul.f32 %v9232_v1, %v4269_v34  ;;  %v9287_v24 = vmul.f32 0.70710677, %v9274_v33  ;;  %v10128_v30 = vld [vmem:[#allocation83_spill] sm:$0xff] }
 0x3f5   : > { %v10099_v52 = vrot.slane %v10098_v48, 1  ;;  %v3885_v38 = vmul.f32 0.5, %v9148_v11  ;;  %v4302_v9 = vmul.f32 %v9240_v63, %v4270_v2  ;;  %v3951_v49 = vand.u32 2147483647, %v9279_v14 }
 0x3f6   : > { %v2500_v36 = vadd.f32 %v2429_v12, %v2223_v57  ;;  %v3886_v10 = vmul.f32 0.5, %v9150_v44  ;;  %v4333_v18 = vadd.f32 0.2548296, %v4301_v15  ;;  %v3952_v59 = vand.u32 2147483647, %v9287_v24 }
 0x3f7   : > { %v2431_v22 = vsel %vm2361_vm4, %v2428_v56, %v10099_v52  ;;  %v5762_v53 = vpop.eup %5761  ;;  %v4334_v62 = vadd.f32 0.2548296, %v4302_v9  ;;  %vm4589_vm15 = vcmp.lt.f32.partialorder %v9158_v25, 0.0  ;;  %v3983_v11 = vmul.f32 0.3275911, %v3951_v49 }
 0x3f8   : > { %v2501_v0 = vadd.f32 %v2431_v22, %v2224_v23  ;;  %v4399_v7 = vsub.f32 0.0, %v3951_v49  ;;  %v2674_v37 = vsel %vm2606_vm5, %v2672_v19, %v2673_v29  ;;  %v4365_v21 = vmul.f32 %v9232_v1, %v4333_v18 }
 0x3f9   : > { %v3984_v57 = vmul.f32 0.3275911, %v3952_v59  ;;  %v4400_v5 = vsub.f32 0.0, %v3952_v59  ;;  %v10101_v44 = vrot.slane %v10100_v40, 2  ;;  %v4366_v39 = vmul.f32 %v9240_v63, %v4334_v62 }
 0x3fa   : > { %v4015_v16 = vadd.f32 1.0, %v3983_v11  ;;  %v4431_v45 = vmul.f32 %v4399_v7, %v3951_v49  ;;  %v2745_v26 = vadd.f32 %v2674_v37, %v2500_v36  ;;  %v4525_v46 = vmul.f32 %v9245_v13, %v4365_v21  ;;  %v10102_v49 = vld [vmem:[#allocation9_spill] sm:$0xff]  ;;  %v10104_v37 = vld [vmem:[#allocation58_spill] sm:$0xff] }
 0x3fb   : > { %v2676_v31 = vsel %vm2606_vm5, %v2673_v29, %v10101_v44  ;;  %v4016_v41 = vadd.f32 1.0, %v3984_v57  ;;  %v4432_v43 = vmul.f32 %v4400_v5, %v3952_v59  ;;  %v4526_v56 = vmul.f32 %v5762_v53, %v4366_v39  ;;  %v10106_v57 = vld [vmem:[#allocation63_spill] sm:$0xff] }
 0x3fc   : > { %v2746_v58 = vadd.f32 %v2676_v31, %v2501_v0  ;;  %5763 = vrcp.f32 %v4015_v16  ;;  %v4487_v34 = vmul.f32 1.442695, %v4431_v45  ;;  %v2781_v1 = vmul.f32 %v9988_v50, %v10092_v51 }
 0x3fd   : > { %v4557_v23 = vsub.f32 1.0, %v4525_v46  ;;  %vm4590_vm0 = vcmp.lt.f32.partialorder %v9165_v8, 0.0  ;;  %5765 = vrcp.f32 %v4016_v41  ;;  %v2782_v63 = vmul.f32 %v9988_v50, %v10093_v28 }
 0x3fe   : > { %v4558_v19 = vsub.f32 1.0, %v4526_v56  ;;  %v4489_v17 = vmul.f32 1.442695, %v4432_v43  ;;  %v2813_v2 = vadd.f32 %v2781_v1, %v2745_v26  ;;  %v2862_v13 = vmul.f32 %v6386_v42, %v10092_v51 }
 0x3ff   : > { %v4621_v12 = vsub.f32 0.0, %v4557_v23  ;;  %5767 = vpow2.f32 %v4487_v34  ;;  %v2814_v29 = vadd.f32 %v2782_v63, %v2746_v58  ;;  %v2863_v54 = vmul.f32 %v6386_v42, %v10093_v28  ;;  %v10107_v58 = vld [vmem:[#allocation74_spill] sm:$0xff] }
 0x400   : > { %v4622_v15 = vsub.f32 0.0, %v4558_v19  ;;  %v2984_v48 = vrot.slane %v2862_v13, 1  ;;  %v3106_v52 = vmul.f32 %v6390_v47, %v10092_v51  ;;  %v3107_v22 = vmul.f32 %v6390_v47, %v10093_v28 }
 0x401   : > { %v4653_v55 = vsel %vm4589_vm15, %v4621_v12, %v4557_v23  ;;  %v2985_v9 = vrot.slane %v2863_v54, 1  ;;  %v3231_v36 = vrot.slane %v10102_v49, 2  ;;  %v3337_v18 = vmul.f32 %v7325_v20, %v10103_v27 }
 0x402   : > { %v4654_v59 = vsel %vm4590_vm0, %v4622_v15, %v4558_v19  ;;  %v4685_v0 = vadd.f32 1.0, %v4653_v55  ;;  %v3228_v53 = vrot.slane %v3106_v52, 2  ;;  %v3229_v62 = vrot.slane %v3107_v22, 2 }
 0x403   : > { %v4686_v11 = vadd.f32 1.0, %v4654_v59  ;;  %v2986_v7 = vsel %vm2361_vm4, %v2984_v48, %v2985_v9  ;;  %v10105_v21 = vrot.slane %v10104_v37, 1  ;;  %v3338_v5 = vmul.f32 %v7325_v20, %v10106_v57 }
 0x404   : > { %v4717_v40 = vmul.f32 %v4685_v0, %v3885_v38  ;;  %v3057_v44 = vadd.f32 %v2986_v7, %v2813_v2  ;;  %v3230_v39 = vsel %vm2606_vm5, %v3228_v53, %v3229_v62  ;;  %v3232_v16 = vsel %vm2606_vm5, %v3229_v62, %v3231_v36 }
 0x405   : > { %v2988_v25 = vsel %vm2361_vm4, %v2985_v9, %v10105_v21  ;;  %v4718_v8 = vmul.f32 %v4686_v11, %v3886_v10  ;;  %v3418_v45 = vmul.f32 %v6925_v32, %v10103_v27  ;;  %v3419_v26 = vmul.f32 %v6925_v32, %v10106_v57 }
 0x406   : > { %v3058_v31 = vadd.f32 %v2988_v25, %v2814_v29  ;;  %v9343_v46 = vpop.eup %5763  ;;  %v3301_v41 = vadd.f32 %v3230_v39, %v3057_v44  ;;  %v3420_v38 = vmul.f32 %v6925_v32, %v10107_v58  ;;  %v3662_v56 = vmul.f32 %v8923_v4, %v10103_v27  ;;  %v9359_v4 = vld [vmem:[%s9631_s2 + $0x8] ss:$0 sm:$0xff] }
 0x407   : > { %v9349_v34 = vpop.eup %5765  ;;  %v4738_v10 = vpack.c.bf16 %v4718_v8, %v4717_v40  ;;  %v4111_v1 = vmul.f32 1.0614054, %v9343_v46  ;;  %v3540_v23 = vrot.slane %v3418_v45, 1  ;;  %v3541_v63 = vrot.slane %v3419_v26, 1 }
 0x408   : > { %v3302_v43 = vadd.f32 %v3232_v16, %v3058_v31  ;;  %v4112_v19 = vmul.f32 1.0614054, %v9349_v34  ;;  %v3369_v2 = vadd.f32 %v3337_v18, %v3301_v41  ;;  %v3543_v12 = vrot.slane %v3420_v38, 1  ;;  %v10108_v31 = vld [vmem:[#allocation45_spill] sm:$0xff] }
 0x409   : > { %v9353_v29 = vpop.eup %5767  ;;  %5355 = vmatmul.mubr.bf16.gmra.mrb[56].mxu1 %v4738_v10  ;;  %v4143_v54 = vadd.f32 -1.4531521, %v4111_v1  ;;  %v3542_v15 = vsel %vm2361_vm4, %v3540_v23, %v3541_v63  ;;  %v3663_v48 = vmul.f32 %v9359_v4, %v10106_v57  ;;  %v3664_v52 = vmul.f32 %v9359_v4, %v10107_v58  ;;  %v10109_v10 = vld [vmem:[#allocation14_spill] sm:$0xff] }
 0x40a   : > { %v3370_v13 = vadd.f32 %v3338_v5, %v3302_v43  ;;  %v4144_v22 = vadd.f32 -1.4531521, %v4112_v19  ;;  %v3544_v55 = vsel %vm2361_vm4, %v3541_v63, %v3543_v12  ;;  %v3613_v9 = vadd.f32 %v3542_v15, %v3369_v2 }
 0x40b   : > { %v3784_v49 = vrot.slane %v3662_v56, 2  ;;  %v4175_v36 = vmul.f32 %v9343_v46, %v4143_v54  ;;  %v3785_v59 = vrot.slane %v3663_v48, 2  ;;  %v3787_v0 = vrot.slane %v3664_v52, 2 }
 0x40c   : > { %v3614_v18 = vadd.f32 %v3544_v55, %v3370_v13  ;;  %v4176_v53 = vmul.f32 %v9349_v34, %v4144_v22  ;;  %5769 = vpow2.f32 %v4489_v17  ;;  %v2225_v62 = vmul.f32 %v10006_v61, %v10092_v51 }
 0x40d   : > { %v2307_v11 = vmul.f32 %v6195_v60, %v10092_v51  ;;  %v4207_v7 = vadd.f32 1.4214138, %v4175_v36  ;;  %v3786_v37 = vsel %vm2606_vm5, %v3784_v49, %v3785_v59  ;;  %v3788_v21 = vsel %vm2606_vm5, %v3785_v59, %v3787_v0 }
 0x40e   : > { %v2308_v25 = vmul.f32 %v6195_v60, %v10093_v28  ;;  %v4208_v5 = vadd.f32 1.4214138, %v4176_v53  ;;  %v9376_v40 = vadd.f32 %v3786_v37, %v3613_v9  ;;  %v9378_v44 = vadd.f32 %v3788_v21, %v3614_v18  ;;  %v10111_v37 = vld [vmem:[#allocation5_spill] sm:$0xff] }
 0x40f   : > { %v2432_v17 = vrot.slane %v2307_v11, 1  ;;  %v3794_v39 = vrot.slane %v10108_v31, 2  ;;  %v4239_v8 = vmul.f32 %v9343_v46, %v4207_v7  ;;  %v2226_v16 = vmul.f32 %v10006_v61, %v10093_v28 }
 0x410   : > { %v2433_v45 = vrot.slane %v2308_v25, 1  ;;  %v4240_v26 = vmul.f32 %v9349_v34, %v4208_v5  ;;  %v9386_v41 = vmul.f32 0.70710677, %v9376_v40  ;;  %v2552_v60 = vmul.f32 %v6227_v3, %v10092_v51 }
 0x411   : > { %v2553_v43 = vmul.f32 %v6227_v3, %v10093_v28  ;;  %v4271_v58 = vadd.f32 -0.28449672, %v4239_v8  ;;  %v9393_v38 = vmul.f32 0.70710677, %v9378_v44  ;;  %v10110_v61 = vrot.slane %v10109_v10, 1 }
 0x412   : > { %v2434_v56 = vsel %vm2361_vm4, %v2432_v17, %v2433_v45  ;;  %v9400_v23 = vmul.f32 0.5, %v9272_v6  ;;  %v4272_v63 = vadd.f32 -0.28449672, %v4240_v26  ;;  %v3953_v19 = vand.u32 2147483647, %v9386_v41 }
 0x413   : > { %v2436_v1 = vsel %vm2361_vm4, %v2433_v45, %v10110_v61  ;;  %v2502_v51 = vadd.f32 %v2434_v56, %v2225_v62  ;;  %v9404_v2 = vmul.f32 0.5, %v9274_v33  ;;  %v4303_v3 = vmul.f32 %v9343_v46, %v4271_v58 }
 0x414   : > { %v3954_v28 = vand.u32 2147483647, %v9393_v38  ;;  %v2503_v13 = vadd.f32 %v2436_v1, %v2226_v16  ;;  %v4304_v12 = vmul.f32 %v9349_v34, %v4272_v63  ;;  %vm4591_vm2 = vcmp.lt.f32.partialorder %v9279_v14, 0.0 }
 0x415   : > { %v3985_v54 = vmul.f32 0.3275911, %v3953_v19  ;;  %v4401_v15 = vsub.f32 0.0, %v3953_v19  ;;  %v2677_v6 = vrot.slane %v2552_v60, 2  ;;  %v4335_v48 = vadd.f32 0.2548296, %v4303_v3 }
 0x416   : > { %v3986_v52 = vmul.f32 0.3275911, %v3954_v28  ;;  %v4402_v22 = vsub.f32 0.0, %v3954_v28  ;;  %v2678_v55 = vrot.slane %v2553_v43, 2  ;;  %v5770_v9 = vpop.eup %5769  ;;  %v4336_v49 = vadd.f32 0.2548296, %v4304_v12 }
 0x417   : > { %v4017_v33 = vadd.f32 1.0, %v3985_v54  ;;  %v4433_v36 = vmul.f32 %v4401_v15, %v3953_v19  ;;  %v2783_v18 = vmul.f32 %v9988_v50, %v10103_v27  ;;  %v4367_v59 = vmul.f32 %v9343_v46, %v4335_v48  ;;  %v10115_v54 = vld [vmem:[#allocation75_spill] sm:$0xff] }
 0x418   : > { %vm4592_vm3 = vcmp.lt.f32.partialorder %v9287_v24, 0.0  ;;  %v4018_v0 = vadd.f32 1.0, %v3986_v52  ;;  %v4434_v53 = vmul.f32 %v4402_v22, %v3954_v28  ;;  %v2679_v62 = vsel %vm2606_vm5, %v2677_v6, %v2678_v55  ;;  %v10114_v28 = vld [vmem:[#allocation73_spill] sm:$0xff]  ;;  %v10116_v48 = vld [vmem:[#allocation31_spill] sm:$0xff] }
 0x419   : > { %v4368_v11 = vmul.f32 %v9349_v34, %v4336_v49  ;;  %5771 = vrcp.f32 %v4017_v33  ;;  %v4491_v7 = vmul.f32 1.442695, %v4433_v36  ;;  %v10112_v21 = vrot.slane %v10111_v37, 2 }
 0x41a   : > { %v4527_v5 = vmul.f32 %v9353_v29, %v4367_v59  ;;  %5773 = vrcp.f32 %v4018_v0  ;;  %v4493_v17 = vmul.f32 1.442695, %v4434_v53  ;;  %v2747_v8 = vadd.f32 %v2679_v62, %v2502_v51 }
 0x41b   : > { %v2681_v25 = vsel %vm2606_vm5, %v2678_v55, %v10112_v21  ;;  %v4528_v46 = vmul.f32 %v5770_v9, %v4368_v11  ;;  %5775 = vpow2.f32 %v4491_v7  ;;  %v2784_v45 = vmul.f32 %v9988_v50, %v10106_v57  ;;  %v10113_v50 = vld [vmem:[#allocation34_spill] sm:$0xff] }
 0x41c   : > { %v2748_v16 = vadd.f32 %v2681_v25, %v2503_v13  ;;  %v4559_v26 = vsub.f32 1.0, %v4527_v5  ;;  %5777 = vpow2.f32 %v4493_v17  ;;  %v2815_v34 = vadd.f32 %v2783_v18, %v2747_v8 }
 0x41d   : > { %v2865_v60 = vmul.f32 %v6386_v42, %v10103_v27  ;;  %v4560_v43 = vsub.f32 1.0, %v4528_v46  ;;  %v2866_v29 = vmul.f32 %v6386_v42, %v10106_v57  ;;  %v3109_v56 = vmul.f32 %v6390_v47, %v10103_v27 }
 0x41e   : > { %v2816_v58 = vadd.f32 %v2784_v45, %v2748_v16  ;;  %v4623_v10 = vsub.f32 0.0, %v4559_v26  ;;  %v3110_v1 = vmul.f32 %v6390_v47, %v10106_v57  ;;  %v3236_v63 = vrot.slane %v10113_v50, 2  ;;  %v10118_v45 = vld [vmem:[#allocation84_spill] sm:$0xff]  ;;  %v10122_v50 = vld [vmem:[#allocation11_spill] sm:$0xff] }
 0x41f   : > { %v2989_v61 = vrot.slane %v2865_v60, 1  ;;  %v4624_v19 = vsub.f32 0.0, %v4560_v43  ;;  %v2990_v51 = vrot.slane %v2866_v29, 1  ;;  %v3233_v3 = vrot.slane %v3109_v56, 2 }
 0x420   : > { %v3339_v13 = vmul.f32 %v7325_v20, %v10114_v28  ;;  %v4655_v12 = vsel %vm4591_vm2, %v4623_v10, %v4559_v26  ;;  %v3234_v42 = vrot.slane %v3110_v1, 2  ;;  %v3340_v27 = vmul.f32 %v7325_v20, %v10115_v54  ;;  %v10120_v10 = vld [vmem:[#allocation30_spill] sm:$0xff] }
 0x421   : > { %v3421_v15 = vmul.f32 %v6925_v32, %v10114_v28  ;;  %v4656_v47 = vsel %vm4592_vm3, %v4624_v19, %v4560_v43  ;;  %v4687_v57 = vadd.f32 1.0, %v4655_v12  ;;  %v2991_v6 = vsel %vm2361_vm4, %v2989_v61, %v2990_v51 }
 0x422   : > { %v10117_v52 = vrot.slane %v10116_v48, 1  ;;  %v4688_v55 = vadd.f32 1.0, %v4656_v47  ;;  %v3059_v14 = vadd.f32 %v2991_v6, %v2815_v34  ;;  %v3235_v49 = vsel %vm2606_vm5, %v3233_v3, %v3234_v42  ;;  %v10125_v3 = vld [vmem:[#allocation54_spill] sm:$0xff] }
 0x423   : > { %v9446_v33 = vpop.eup %5771  ;;  %v4719_v20 = vmul.f32 %v4687_v57, %v9400_v23  ;;  %v3237_v36 = vsel %vm2606_vm5, %v3234_v42, %v3236_v63  ;;  %v3422_v24 = vmul.f32 %v6925_v32, %v10115_v54  ;;  %v3545_v18 = vrot.slane %v3421_v15, 1  ;;  %v10126_v42 = vld [vmem:[#allocation7_spill] sm:$0xff] }
 0x424   : > { %v2993_v22 = vsel %vm2361_vm4, %v2990_v51, %v10117_v52  ;;  %v9452_v59 = vpop.eup %5773  ;;  %v4720_v0 = vmul.f32 %v4688_v55, %v9404_v2  ;;  %v4113_v53 = vmul.f32 1.0614054, %v9446_v33  ;;  %v3303_v62 = vadd.f32 %v3235_v49, %v3059_v14  ;;  %v10124_v51 = vld [vmem:[#allocation85_spill] sm:$0xff] }
 0x425   : > { %v3060_v9 = vadd.f32 %v2993_v22, %v2816_v58  ;;  %v9456_v7 = vpop.eup %5775  ;;  %v4114_v37 = vmul.f32 1.0614054, %v9452_v59  ;;  %v3546_v21 = vrot.slane %v3422_v24, 1  ;;  %v3665_v23 = vmul.f32 %v9359_v4, %v10114_v28 }
 0x426   : > { %v3666_v32 = vmul.f32 %v9359_v4, %v10115_v54  ;;  %v5778_v25 = vpop.eup %5777  ;;  %v4739_v5 = vpack.c.bf16 %v4720_v0, %v4719_v20  ;;  %v4145_v17 = vadd.f32 -1.4531521, %v4113_v53  ;;  %v3371_v8 = vadd.f32 %v3339_v13, %v3303_v62 }
 0x427   : > { %v3304_v11 = vadd.f32 %v3237_v36, %v3060_v9  ;;  %v4146_v46 = vadd.f32 -1.4531521, %v4114_v37  ;;  %v3547_v16 = vsel %vm2361_vm4, %v3545_v18, %v3546_v21  ;;  %v10119_v26 = vrot.slane %v10118_v45, 1 }
 0x428   : > { %v3789_v60 = vrot.slane %v3665_v23, 2  ;;  %5358 = vmatprep.mubr.bf16.mxu1 %v4739_v5  ;;  %v4177_v43 = vmul.f32 %v9446_v33, %v4145_v17  ;;  %v3615_v58 = vadd.f32 %v3547_v16, %v3371_v8  ;;  %v3790_v56 = vrot.slane %v3666_v32, 2 }
 0x429   : > { %v3372_v2 = vadd.f32 %v3340_v27, %v3304_v11  ;;  %v3549_v34 = vsel %vm2361_vm4, %v3546_v21, %v10119_v26  ;;  %v4178_v4 = vmul.f32 %v9452_v59, %v4146_v46  ;;  %v10121_v61 = vrot.slane %v10120_v10, 1  ;;  %v5344_v49 = vpop.f32.mrb[44].mxu1 }
 0x42a   : > { %v10123_v63 = vrot.slane %v10122_v50, 2  ;;  %v9481_v28 = vadd.f32 %v10125_v3, %v10124_v51  ;;  %v4209_v13 = vadd.f32 1.4214138, %v4177_v43  ;;  %v3791_v12 = vsel %vm2606_vm5, %v3789_v60, %v3790_v56  ;;  %4978 = vst.msk [vmem:[%s9221_s6 + $0x50] sm:$0xff] %vm402_vm1, %v5344_v49  ;;  %v4873_v18 = vpop.f32.mrb[45].mxu1 }
 0x42b   : > { %v3616_v29 = vadd.f32 %v3549_v34, %v3372_v2  ;;  %v3552_v1 = vsel %vm2361_vm4, %v3550_v35, %v10121_v61  ;;  %v10127_v54 = vrot.slane %v10126_v42, 2  ;;  %v4210_v35 = vadd.f32 1.4214138, %v4178_v4  ;;  %4976 = vst.msk [vmem:[%s9221_s6 + $0x40] sm:$0xff] %vm402_vm1, %v4873_v18  ;;  %v5345_v11 = vpop.f32.mrb[46].mxu1 }
 0x42c   : > { %v3796_v19 = vsel %vm2606_vm5, %v3794_v39, %v10123_v63  ;;  %v3617_v15 = vadd.f32 %v3552_v1, %v10128_v30  ;;  %v9488_v47 = vadd.f32 %v3791_v12, %v3615_v58  ;;  %v4241_v39 = vmul.f32 %v9446_v33, %v4209_v13  ;;  %4979 = vst.msk [vmem:[%s9221_s6 + $0x58] sm:$0xff] %vm402_vm1, %v5345_v11  ;;  %v4876_v17 = vpop.f32.mrb[47].mxu1 }
 0x42d   : > { %v3793_v27 = vsel %vm2606_vm5, %v3790_v56, %v10127_v54  ;;  %v4242_v6 = vmul.f32 %v9452_v59, %v4210_v35  ;;  %v9500_v52 = vmul.f32 0.70710677, %v9481_v28  ;;  %4977 = vst.msk [vmem:[%s9221_s6 + $0x48] sm:$0xff] %vm402_vm1, %v4876_v17  ;;  %vm4594_vm4 = vcmp.lt.f32.partialorder %v9393_v38, 0.0 }
 0x42e   : > { %v9490_v31 = vadd.f32 %v3793_v27, %v3616_v29  ;;  %v9493_v57 = vadd.f32 %v3796_v19, %v3617_v15  ;;  %v9497_v48 = vmul.f32 0.70710677, %v9488_v47  ;;  %v4273_v22 = vadd.f32 -0.28449672, %v4241_v39 }
 0x42f   : > { %v4274_v14 = vadd.f32 -0.28449672, %v4242_v6  ;;  %v3958_v62 = vand.u32 2147483647, %v9500_v52  ;;  %vm4593_vm5 = vcmp.lt.f32.partialorder %v9386_v41, 0.0  ;;  %v3889_v10 = vmul.f32 0.5, %v9376_v40 }
 0x430   : > { %v9503_v55 = vmul.f32 0.70710677, %v9490_v31  ;;  %v3955_v9 = vand.u32 2147483647, %v9497_v48  ;;  %v4305_v20 = vmul.f32 %v9446_v33, %v4273_v22  ;;  %v9509_v24 = vmul.f32 0.70710677, %v9493_v57 }
 0x431   : > { %v4306_v0 = vmul.f32 %v9452_v59, %v4274_v14  ;;  %v3990_v46 = vmul.f32 0.3275911, %v3958_v62  ;;  %v3890_v63 = vmul.f32 0.5, %v9378_v44  ;;  %v4406_v3 = vsub.f32 0.0, %v3958_v62 }
 0x432   : > { %v3956_v36 = vand.u32 2147483647, %v9503_v55  ;;  %v3987_v53 = vmul.f32 0.3275911, %v3955_v9  ;;  %v4337_v37 = vadd.f32 0.2548296, %v4305_v20 }
 0x433   : > { %v4338_v23 = vadd.f32 0.2548296, %v4306_v0  ;;  %v3957_v5 = vand.u32 2147483647, %v9509_v24  ;;  %v4022_v34 = vadd.f32 1.0, %v3990_v46  ;;  %v4403_v56 = vsub.f32 0.0, %v3955_v9 }
 0x434   : > { %v3988_v21 = vmul.f32 0.3275911, %v3956_v36  ;;  %v4019_v32 = vadd.f32 1.0, %v3987_v53  ;;  %v4369_v8 = vmul.f32 %v9446_v33, %v4337_v37  ;;  %v4404_v4 = vsub.f32 0.0, %v3956_v36 }
 0x435   : > { %v4370_v16 = vmul.f32 %v9452_v59, %v4338_v23  ;;  %v3989_v45 = vmul.f32 0.3275911, %v3957_v5  ;;  %v4435_v50 = vmul.f32 %v4403_v56, %v3955_v9  ;;  %v4438_v39 = vmul.f32 %v4406_v3, %v3958_v62 }
 0x436   : > { %v4020_v2 = vadd.f32 1.0, %v3988_v21  ;;  %5779 = vrcp.f32 %v4019_v32  ;;  %v4529_v26 = vmul.f32 %v9456_v7, %v4369_v8  ;;  %v4436_v51 = vmul.f32 %v4404_v4, %v3956_v36 }
 0x437   : > { %v4530_v60 = vmul.f32 %v5778_v25, %v4370_v16  ;;  %v4021_v43 = vadd.f32 1.0, %v3989_v45  ;;  %v4405_v25 = vsub.f32 0.0, %v3957_v5  ;;  %v4495_v41 = vmul.f32 1.442695, %v4435_v50 }
 0x438   : > { %5781 = vrcp.f32 %v4020_v2  ;;  %v4561_v58 = vsub.f32 1.0, %v4529_v26  ;;  %v4497_v35 = vmul.f32 1.442695, %v4436_v51  ;;  %v4501_v53 = vmul.f32 1.442695, %v4438_v39 }
 0x439   : > { %v4562_v29 = vsub.f32 1.0, %v4530_v60  ;;  %5783 = vrcp.f32 %v4021_v43  ;;  %v4437_v30 = vmul.f32 %v4405_v25, %v3957_v5  ;;  %vm4595_vm6 = vcmp.lt.f32.partialorder %v9497_v48, 0.0 }
 0x43a   : > { %v4625_v33 = vsub.f32 0.0, %v4561_v58  ;;  %5785 = vrcp.f32 %v4022_v34  ;;  %vm4596_vm7 = vcmp.lt.f32.partialorder %v9503_v55, 0.0  ;;  %v3892_v39 = vmul.f32 0.5, %v9490_v31 }
 0x43b   : > { %v4626_v59 = vsub.f32 0.0, %v4562_v29  ;;  %5787 = vpow2.f32 %v4495_v41  ;;  %v4499_v36 = vmul.f32 1.442695, %v4437_v30  ;;  %v3891_v30 = vmul.f32 0.5, %v9488_v47 }
 0x43c   : > { %v4657_v61 = vsel %vm4593_vm5, %v4625_v33, %v4561_v58  ;;  %5789 = vpow2.f32 %v4497_v35  ;;  %vm4598_vm8 = vcmp.lt.f32.partialorder %v9500_v52, 0.0  ;;  %vm4597_vm9 = vcmp.lt.f32.partialorder %v9509_v24, 0.0 }
 0x43d   : > { %v4658_v7 = vsel %vm4594_vm4, %v4626_v59, %v4562_v29  ;;  %v4689_v1 = vadd.f32 1.0, %v4657_v61  ;;  %5791 = vpow2.f32 %v4499_v36  ;;  %v3894_v31 = vmul.f32 0.5, %v9481_v28 }
 0x43e   : > { %v4690_v19 = vadd.f32 1.0, %v4658_v7  ;;  %5793 = vpow2.f32 %v4501_v53 }
 0x43f   : > { %v4721_v12 = vmul.f32 %v4689_v1, %v3889_v10 }
 0x440   : > { %v5780_v13 = vpop.eup %5779  ;;  %v4722_v42 = vmul.f32 %v4690_v19, %v3890_v63 }
 0x441   : > { %v4115_v54 = vmul.f32 1.0614054, %v5780_v13 }
 0x442   : > { %v5782_v38 = vpop.eup %5781  ;;  %v4740_v15 = vpack.c.bf16 %v4722_v42, %v4721_v12 }
 0x443   : > { %v4116_v27 = vmul.f32 1.0614054, %v5782_v38  ;;  %v4147_v40 = vadd.f32 -1.4531521, %v4115_v54  ;;  %v5784_v6 = vpop.eup %5783 }
 0x444   : > { %v5786_v14 = vpop.eup %5785  ;;  %5359 = vmatmul.mubr.bf16.gmra.mrb[60].mxu1 %v4740_v15  ;;  %v4117_v9 = vmul.f32 1.0614054, %v5784_v6 }
 0x445   : > { %v4148_v22 = vadd.f32 -1.4531521, %v4116_v27  ;;  %v4179_v44 = vmul.f32 %v5780_v13, %v4147_v40  ;;  %v4118_v20 = vmul.f32 1.0614054, %v5786_v14  ;;  %v5788_v43 = vpop.eup %5787 }
 0x446   : > { %v4149_v0 = vadd.f32 -1.4531521, %v4117_v9  ;;  %v5790_v56 = vpop.eup %5789 }
 0x447   : > { %v4180_v49 = vmul.f32 %v5782_v38, %v4148_v22  ;;  %v4211_v18 = vadd.f32 1.4214138, %v4179_v44  ;;  %v4150_v37 = vadd.f32 -1.4531521, %v4118_v20  ;;  %v5792_v1 = vpop.eup %5791  ;;  %v3893_v20 = vmul.f32 0.5, %v9493_v57 }
 0x448   : > { %v4181_v23 = vmul.f32 %v5784_v6, %v4149_v0  ;;  %v5794_v63 = vpop.eup %5793 }
 0x449   : > { %v4212_v11 = vadd.f32 1.4214138, %v4180_v49  ;;  %v4243_v21 = vmul.f32 %v5780_v13, %v4211_v18  ;;  %v4182_v62 = vmul.f32 %v5786_v14, %v4150_v37 }
 0x44a   : > { %v4213_v17 = vadd.f32 1.4214138, %v4181_v23 }
 0x44b   : > { %v4244_v32 = vmul.f32 %v5782_v38, %v4212_v11  ;;  %v4275_v5 = vadd.f32 -0.28449672, %v4243_v21  ;;  %v4214_v2 = vadd.f32 1.4214138, %v4182_v62 }
 0x44c   : > { %v4245_v16 = vmul.f32 %v5784_v6, %v4213_v17 }
 0x44d   : > { %v4276_v8 = vadd.f32 -0.28449672, %v4244_v32  ;;  %v4307_v46 = vmul.f32 %v5780_v13, %v4275_v5  ;;  %v4246_v26 = vmul.f32 %v5786_v14, %v4214_v2 }
 0x44e   : > { %v4277_v60 = vadd.f32 -0.28449672, %v4245_v16 }
 0x44f   : > { %v4308_v45 = vmul.f32 %v5782_v38, %v4276_v8  ;;  %v4339_v34 = vadd.f32 0.2548296, %v4307_v46  ;;  %v4278_v29 = vadd.f32 -0.28449672, %v4246_v26 }
 0x450   : > { %v4309_v4 = vmul.f32 %v5784_v6, %v4277_v60 }
 0x451   : > { %v4340_v58 = vadd.f32 0.2548296, %v4308_v45  ;;  %v4371_v33 = vmul.f32 %v5780_v13, %v4339_v34  ;;  %v4310_v10 = vmul.f32 %v5786_v14, %v4278_v29 }
 0x452   : > { %v4341_v7 = vadd.f32 0.2548296, %v4309_v4 }
 0x453   : > { %v4372_v59 = vmul.f32 %v5782_v38, %v4340_v58  ;;  %v4531_v61 = vmul.f32 %v5788_v43, %v4371_v33  ;;  %v4342_v25 = vadd.f32 0.2548296, %v4310_v10 }
 0x454   : > { %v4373_v51 = vmul.f32 %v5784_v6, %v4341_v7 }
 0x455   : > { %v4532_v50 = vmul.f32 %v5790_v56, %v4372_v59  ;;  %v4563_v19 = vsub.f32 1.0, %v4531_v61  ;;  %v4374_v12 = vmul.f32 %v5786_v14, %v4342_v25 }
 0x456   : > { %v4533_v54 = vmul.f32 %v5792_v1, %v4373_v51 }
 0x457   : > { %v4564_v3 = vsub.f32 1.0, %v4532_v50  ;;  %v4627_v42 = vsub.f32 0.0, %v4563_v19  ;;  %v4534_v41 = vmul.f32 %v5794_v63, %v4374_v12 }
 0x458   : > { %v4565_v38 = vsub.f32 1.0, %v4533_v54 }
 0x459   : > { %v4628_v27 = vsub.f32 0.0, %v4564_v3  ;;  %v4659_v13 = vsel %vm4595_vm6, %v4627_v42, %v4563_v19  ;;  %v4566_v35 = vsub.f32 1.0, %v4534_v41 }
 0x45a   : > { %v4691_v40 = vadd.f32 1.0, %v4659_v13  ;;  %v4629_v48 = vsub.f32 0.0, %v4565_v38 }
 0x45b   : > { %v4660_v15 = vsel %vm4596_vm7, %v4628_v27, %v4564_v3  ;;  %v4630_v22 = vsub.f32 0.0, %v4566_v35 }
 0x45c   : > { %v4692_v6 = vadd.f32 1.0, %v4660_v15  ;;  %v4723_v14 = vmul.f32 %v4691_v40, %v3891_v30  ;;  %v4661_v55 = vsel %vm4597_vm9, %v4629_v48, %v4565_v38 }
 0x45d   : > { %v4662_v9 = vsel %vm4598_vm8, %v4630_v22, %v4566_v35  ;;  %v4693_v47 = vadd.f32 1.0, %v4661_v55 }
 0x45e   : > { %v4724_v44 = vmul.f32 %v4692_v6, %v3892_v39  ;;  %v4694_v52 = vadd.f32 1.0, %v4662_v9 }
 0x45f   : > { %v4725_v24 = vmul.f32 %v4693_v47, %v3893_v20 }
 0x460   : > { %v4741_v49 = vpack.c.bf16 %v4724_v44, %v4723_v14  ;;  %v4726_v36 = vmul.f32 %v4694_v52, %v3894_v31 }
 0x462   : > { %5362 = vmatprep.mubr.bf16.mxu1 %v4741_v49  ;;  %v4742_v18 = vpack.c.bf16 %v4726_v36, %v4725_v24 }
 0x464   : > { %5363 = vmatmul.mubr.bf16.gmra.mrb[64].mxu1 %v4742_v18 }
 0x465   : > { %v5348_v0 = vpop.f32.mrb[48].mxu1 }
 0x466   : > { %4982 = vst.msk [vmem:[%s9221_s6 + $0x70] sm:$0xff] %vm402_vm1, %v5348_v0  ;;  %v4889_v53 = vpop.f32.mrb[49].mxu1 }
 0x467   : > { %4980 = vst.msk [vmem:[%s9221_s6 + $0x60] sm:$0xff] %vm402_vm1, %v4889_v53  ;;  %v5349_v57 = vpop.f32.mrb[50].mxu1 }
 0x468   : > { %4983 = vst.msk [vmem:[%s9221_s6 + $0x78] sm:$0xff] %vm402_vm1, %v5349_v57  ;;  %v4892_v28 = vpop.f32.mrb[51].mxu1 }
 0x469   : > { %4981 = vst.msk [vmem:[%s9221_s6 + $0x68] sm:$0xff] %vm402_vm1, %v4892_v28 }
 0x4a0   : > { %v5352_v11 = vpop.f32.mrb[52].mxu1 }
 0x4a1   : > { %4986 = vst.msk [vmem:[%s9221_s6 + $0x90] sm:$0xff] %vm402_vm1, %v5352_v11  ;;  %v4905_v37 = vpop.f32.mrb[53].mxu1 }
 0x4a2   : > { %4984 = vst.msk [vmem:[%s9221_s6 + $0x80] sm:$0xff] %vm402_vm1, %v4905_v37  ;;  %v5353_v21 = vpop.f32.mrb[54].mxu1 }
 0x4a3   : > { %4987 = vst.msk [vmem:[%s9221_s6 + $0x98] sm:$0xff] %vm402_vm1, %v5353_v21  ;;  %v4908_v23 = vpop.f32.mrb[55].mxu1 }
 0x4a4   : > { %4985 = vst.msk [vmem:[%s9221_s6 + $0x88] sm:$0xff] %vm402_vm1, %v4908_v23 }
 0x4dc   : > { %v5356_v32 = vpop.f32.mrb[56].mxu1 }
 0x4dd   : > { %4990 = vst.msk [vmem:[%s9221_s6 + $0xb0] sm:$0xff] %vm402_vm1, %v5356_v32  ;;  %v4921_v62 = vpop.f32.mrb[57].mxu1 }
 0x4de   : > { %4988 = vst.msk [vmem:[%s9221_s6 + $0xa0] sm:$0xff] %vm402_vm1, %v4921_v62  ;;  %v5357_v5 = vpop.f32.mrb[58].mxu1 }
 0x4df   : > { %4991 = vst.msk [vmem:[%s9221_s6 + $0xb8] sm:$0xff] %vm402_vm1, %v5357_v5  ;;  %v4924_v17 = vpop.f32.mrb[59].mxu1 }
 0x4e0   : > { %4989 = vst.msk [vmem:[%s9221_s6 + $0xa8] sm:$0xff] %vm402_vm1, %v4924_v17 }
 0x517   : > { %v5360_v8 = vpop.f32.mrb[60].mxu1 }
 0x518   : > { %4994 = vst.msk [vmem:[%s9221_s6 + $0xd0] sm:$0xff] %vm402_vm1, %v5360_v8  ;;  %v4937_v2 = vpop.f32.mrb[61].mxu1 }
 0x519   : > { %4992 = vst.msk [vmem:[%s9221_s6 + $0xc0] sm:$0xff] %vm402_vm1, %v4937_v2  ;;  %v5361_v46 = vpop.f32.mrb[62].mxu1 }
 0x51a   : > { %4995 = vst.msk [vmem:[%s9221_s6 + $0xd8] sm:$0xff] %vm402_vm1, %v5361_v46  ;;  %v4940_v16 = vpop.f32.mrb[63].mxu1 }
 0x51b   : > { %4993 = vst.msk [vmem:[%s9221_s6 + $0xc8] sm:$0xff] %vm402_vm1, %v4940_v16 }
 0x537   : > { %v5364_v45 = vpop.f32.mrb[64].mxu1 }
 0x538   : > { %4998 = vst.msk [vmem:[%s9221_s6 + $0xf0] sm:$0xff] %vm402_vm1, %v5364_v45  ;;  %v4953_v26 = vpop.f32.mrb[65].mxu1 }
 0x539   : > { %4996 = vst.msk [vmem:[%s9221_s6 + $0xe0] sm:$0xff] %vm402_vm1, %v4953_v26  ;;  %v5365_v34 = vpop.f32.mrb[66].mxu1 }
 0x53a   : > { %4999 = vst.msk [vmem:[%s9221_s6 + $0xf8] sm:$0xff] %vm402_vm1, %v5365_v34  ;;  %v4956_v60 = vpop.f32.mrb[67].mxu1 }
 0x53b   : > { %4997 = vst.msk [vmem:[%s9221_s6 + $0xe8] sm:$0xff] %vm402_vm1, %v4956_v60 }
 0x53c   : > { %5813 = shalt.err (!%p5810_p3)
}
 0x53d   : > { %s5814_s27 = scalar_lea.hbm %s9576_s13, 4096  ;;  %s5818_s30 = scalar_lea.hbm %s9633_s4, 16384 }
 0x53e   : > { %p5815_p4 = scmp.ne.s32.totalorder %s9576_s13, %s5814_s27  ;;  %p5819_p9 = scmp.lt.u32.totalorder %s9576_s13, %s9633_s4 }
 0x53f   : > { %p5820_p10 = scmp.lt.u32.totalorder %s5818_s30, %s5814_s27  ;;  %p5822_p12 = scmp.lt.u32.totalorder %s5814_s27, %s9576_s13 }
 0x540   : > { %p5816_p7 = pnand %p5815_p4, %p5932_p5 }
 0x541   : > { %p5821_p11 = por %p5820_p10, %p5819_p9 }
 0x542   : > { %p5817_p8 = pneg %p5816_p7 }
 0x543   : > { %p5823_p13 = por %p5822_p12, %p5821_p11 }
 0x545   : > { %p5824_p0 = pnand %p5823_p13, %p5817_p8 }
 0x547   : > { %5827 = shalt.err (!%p5824_p0)
}
 0x548   : > { %s5867_s7 = smov 128   ;;  %s5868_s8 = smov 8  }
 0x549   : > { %5371 = dma.vmem_to_hbm [thread:$0]  (%p5932_p5), %s9578_s10, 4096, %s9576_s13, %s9588_s19, %s5867_s7, %s5867_s7, %s5868_s8  }
 0x54a PF: > { %p5377_p1 = scmp.ge.s32.totalorder %s5862_s18, 2  ;;  %s5029_s9 = sand.u32 1, %s5850_s15  }
 0x54b   : > { %s5030_s11 = scalar_lea.sflag [#allocation3], %s5029_s9 }
 0x54c   : > { %p5374_p2 = pnand %p5377_p1, %p5936_p6 }
 0x54e   : > { %5845 = dma.done.wait (!%p5374_p2), %s5030_s11, 4096  }
 0x54f   : > { %5847 = vsyncadd (!%p5374_p2), %s5030_s11, 4294963200  ;;  %p14_p3 = scmp.ge.s32.totalorder %s5919_s21, 6   ;;  %s10129_s15 = smov %s5854_s16 }
 0x550   : > { %s10130_s16 = smov %s5858_s17  ;;  %s10131_s17 = smov %s5930_s24 }
 0x551   : > { %s10132_s18 = smov %s5919_s21  ;;  %16 = sbr.rel (!%p14_p3) target bundleno = 3 (0x3), region = 71 }
 0x558   :  { %5035 = vsyncpa [#allocation3], 1 }
 0x559   :  { %5037 = vsyncpa [#allocation3 + $0x1], 1 }

</bundles_post_ra>
